<compile_context>
chip_gen: v7x
topology: tpu7x:2x2x1
jax: 0.10.0
libtpu: 0.0.40
codegen_flags: <defaults>
</compile_context>

<pallas_src>
import functools

import jax
import jax.numpy as jnp
import numpy as np
from jax import lax
from jax.experimental import pallas as pl
from jax.experimental.pallas import tpu as pltpu


# -----------------------------------------------------------------------------
# Kernel 1: LSTM recurrence.  gates_x = x @ W_ih is precomputed outside (bf16);
# each timestep does h @ W_hh on the MXU (f32 accumulate), adds bias in f32, and
# runs the gate nonlinearities.  One grid step handles t_chunk timesteps; h/c
# persist in f32 VMEM scratch across the (sequential) time axis.
# -----------------------------------------------------------------------------
def lstm_recurrence_kernel(gx_ref, whh_ref, bias_ref, h_out_ref, h_sc, c_sc,
                           *, t_chunk, t_total, unroll, masked):
    s = pl.program_id(1)  # time-chunk index (sequential / "arbitrary" axis)

    @pl.when(s == 0)
    def _():
        h_sc[...] = jnp.zeros_like(h_sc)
        c_sc[...] = jnp.zeros_like(c_sc)

    H = h_sc.shape[-1]
    bias = bias_ref[...]  # (1, 4H) f32, broadcast over the batch tile

    def step(t, carry):
        h, c = carry
        # gx_ref[t]: (B_TILE, 4H) bf16 precomputed input projection for this step.
        gates = (gx_ref[t].astype(jnp.float32)
                 + jnp.dot(h.astype(whh_ref.dtype), whh_ref[...],
                           preferred_element_type=jnp.float32)
                 + bias)
        # sigmoid(x) = 0.5*(tanh(0.5x)+1): one EUP op per gate (vs exp + divide).
        i_g = 0.5 * (jnp.tanh(0.5 * gates[:, 0 * H:1 * H]) + 1.0)
        f_g = 0.5 * (jnp.tanh(0.5 * gates[:, 1 * H:2 * H]) + 1.0)
        g_g = jnp.tanh(gates[:, 2 * H:3 * H])
        o_g = 0.5 * (jnp.tanh(0.5 * gates[:, 3 * H:4 * H]) + 1.0)
        c_new = f_g * c + i_g * g_g
        h_new = o_g * jnp.tanh(c_new)
        if masked:  # only emitted when T was padded to a multiple of t_chunk
            valid = (s * t_chunk + t) < t_total
            h_new = jnp.where(valid, h_new, h)
            c_new = jnp.where(valid, c_new, c)
        return h_new, c_new

    # Partial unroll: enough for the LLO scheduler to hide MXU/EUP latency without
    # exploding vreg pressure for large batch tiles.
    h, c = lax.fori_loop(0, t_chunk, step, (h_sc[...], c_sc[...]), unroll=unroll)
    h_sc[...] = h
    c_sc[...] = c

    # Output block index is constant along the time axis (resident accumulator);
    # only materialize the store on the final chunk.
    @pl.when(s == pl.num_programs(1) - 1)
    def _():
        h_out_ref[...] = h.astype(h_out_ref.dtype)


# -----------------------------------------------------------------------------
# Kernel 2: final FC (h_T @ W_fc + b_fc), tiled over the vocab dimension so W_fc
# is streamed tile-by-tile and the output stores are lane-dense.
# -----------------------------------------------------------------------------
def fc_kernel(h_ref, wfc_ref, bfc_ref, out_ref):
    out_ref[...] = (jnp.dot(h_ref[...], wfc_ref[...],
                            preferred_element_type=jnp.float32)
                    + bfc_ref[...]).astype(out_ref.dtype)


# ------------------------------- sizing helpers -------------------------------
def _tpu_config():
    """Generation-aware tiling / VMEM budgets."""
    try:
        kind = jax.devices()[0].device_kind.lower()
    except Exception:  # pragma: no cover - defensive
        kind = ""
    if "v7" in kind:
        # 64 MiB physical VMEM per TensorCore: budget well below it.
        return dict(mxu_rows=256, vmem_limit=52 << 20, gx_budget=36 << 20,
                    t_chunk_cap=64)
    if "v6" in kind:
        # 128 MiB VMEM: spend it on larger time chunks.
        return dict(mxu_rows=256, vmem_limit=104 << 20, gx_budget=80 << 20,
                    t_chunk_cap=128)
    if "v5" in kind:
        # MXU is 128x128: rows beyond 128 buy nothing; prefer larger T_CHUNK.
        return dict(mxu_rows=128, vmem_limit=104 << 20, gx_budget=80 << 20,
                    t_chunk_cap=128)
    # Unknown generation: conservative (fits v7x-like VMEM, 128-row MXU).
    return dict(mxu_rows=128, vmem_limit=48 << 20, gx_budget=32 << 20,
                t_chunk_cap=64)


def _pick_batch_tiling(b, mxu_rows):
    """Returns (B_TILE, B_pad).  Single tile unless the batch exceeds MXU rows."""
    b_pad = max(8, ((b + 7) // 8) * 8)
    if b_pad <= mxu_rows:
        return b_pad, b_pad
    n_tiles = -(-b_pad // mxu_rows)          # ceil
    tile = ((-(-b_pad // n_tiles) + 7) // 8) * 8
    return tile, tile * n_tiles


def _pick_t_chunk(T, cap):
    """Returns (T_CHUNK, T_pad).  Prefers exact divisors; pads+masks otherwise."""
    cap = max(1, min(cap, T))
    best = 1
    for c in range(cap, 0, -1):
        if T % c == 0:
            best = c
            break
    if best == T or best * 2 >= cap:
        return best, T
    t_chunk = cap
    return t_chunk, -(-T // t_chunk) * t_chunk


def _largest_divisor_from(n, candidates):
    for c in candidates:
        if c <= n and n % c == 0:
            return c
    return n


# ----------------------------------- wrapper -----------------------------------
def simple_lstm_forward(tokens, params, *, compute_dtype=jnp.bfloat16):
    """tokens: (B, T) int32. Returns (B, vocab) float32 logits."""
    emb = params["embedding"]           # (V, E)
    w_ih = params["w_ih"]               # (E, 4H)
    w_hh = params["w_hh"]               # (H, 4H)
    bias = params["bias"]               # (1, 4H)  (= b_ih + b_hh)
    w_fc = params["w_fc"]               # (H, V)
    b_fc = params["b_fc"]               # (1, V)

    B, T = tokens.shape
    H = w_hh.shape[0]
    V = w_fc.shape[1]
    G = 4 * H

    cfg = _tpu_config()
    B_TILE, B_pad = _pick_batch_tiling(B, cfg["mxu_rows"])
    itemsize = jnp.dtype(compute_dtype).itemsize

    # Glue: time-major embedding gather (no separate transpose pass), bf16.
    x_emb = emb[tokens.T].astype(compute_dtype)              # (T, B, E)
    if B_pad != B:
        x_emb = jnp.pad(x_emb, ((0, 0), (0, B_pad - B), (0, 0)))

    # Hoisted input projection: one large parallel matmul with f32 accumulation,
    # then stored bf16 (bias is added in f32 inside the kernel).
    gates_x = jnp.einsum("tbe,eg->tbg", x_emb, w_ih.astype(compute_dtype),
                         preferred_element_type=jnp.float32
                         ).astype(compute_dtype)              # (T, B_pad, 4H)

    # Time-chunk sizing: fit 2x (double-buffered) gx blocks in the per-gen budget.
    gx_bytes_per_step = 2 * B_TILE * G * itemsize
    cap = max(1, min(cfg["t_chunk_cap"], cfg["gx_budget"] // gx_bytes_per_step))
    T_CHUNK, T_pad = _pick_t_chunk(T, cap)
    if T_pad != T:
        gates_x = jnp.pad(gates_x, ((0, T_pad - T), (0, 0), (0, 0)))
    masked = T_pad != T
    unroll = min(T_CHUNK, 8)

    grid = (B_pad // B_TILE, T_pad // T_CHUNK)

    h_T = pl.pallas_call(
        functools.partial(lstm_recurrence_kernel, t_chunk=T_CHUNK, t_total=T,
                          unroll=unroll, masked=masked),
        out_shape=jax.ShapeDtypeStruct((B_pad, H), compute_dtype),
        grid=grid,
        in_specs=[
            pl.BlockSpec((T_CHUNK, B_TILE, G), lambda b, s: (s, b, 0)),  # gx bf16
            pl.BlockSpec((H, G), lambda b, s: (0, 0)),                   # W_hh bf16
            pl.BlockSpec((1, G), lambda b, s: (0, 0)),                   # bias f32
        ],
        out_specs=pl.BlockSpec((B_TILE, H), lambda b, s: (b, 0)),
        scratch_shapes=[
            pltpu.VMEM((B_TILE, H), jnp.float32),             # h state
            pltpu.VMEM((B_TILE, H), jnp.float32),             # c state
        ],
        compiler_params=pltpu.CompilerParams(
            dimension_semantics=("parallel", "arbitrary"),
            vmem_limit_bytes=cfg["vmem_limit"]),
    )(gates_x, w_hh.astype(compute_dtype), bias.astype(jnp.float32))

    # Final FC as its own pallas_call, tiled over the vocab dimension (lane-dense
    # output stores; W_fc never resident during the recurrence).
    TILE_V = _largest_divisor_from(V, (2048, 1024, 512, 256, 128))
    logits = pl.pallas_call(
        fc_kernel,
        out_shape=jax.ShapeDtypeStruct((B_pad, V), jnp.float32),
        grid=(V // TILE_V,),
        in_specs=[
            pl.BlockSpec((B_pad, H), lambda j: (0, 0)),       # h_T (bf16)
            pl.BlockSpec((H, TILE_V), lambda j: (0, j)),      # W_fc tile (bf16)
            pl.BlockSpec((1, TILE_V), lambda j: (0, j)),      # b_fc tile (f32)
        ],
        out_specs=pl.BlockSpec((B_pad, TILE_V), lambda j: (0, j)),
        compiler_params=pltpu.CompilerParams(
            dimension_semantics=("parallel",),
            vmem_limit_bytes=cfg["vmem_limit"]),
    )(h_T, w_fc.astype(compute_dtype), b_fc.astype(jnp.float32))

    return logits[:B]


# ------------------------------ pure-JAX reference ------------------------------
def reference_forward(tokens, params):
    """Pure-JAX f32 reference matching PyTorch nn.LSTM semantics (gate order i,f,g,o)."""
    emb = params["embedding"]
    w_ih, w_hh = params["w_ih"], params["w_hh"]
    bias = params["bias"][0]
    w_fc, b_fc = params["w_fc"], params["b_fc"][0]
    H = w_hh.shape[0]

    x = emb[tokens].astype(jnp.float32)          # (B, T, E)
    B = x.shape[0]
    h0 = jnp.zeros((B, H), jnp.float32)
    c0 = jnp.zeros((B, H), jnp.float32)

    def step(carry, x_t):
        h, c = carry
        g = x_t @ w_ih + h @ w_hh + bias
        i = jax.nn.sigmoid(g[:, 0 * H:1 * H])
        f = jax.nn.sigmoid(g[:, 1 * H:2 * H])
        gg = jnp.tanh(g[:, 2 * H:3 * H])
        o = jax.nn.sigmoid(g[:, 3 * H:4 * H])
        c = f * c + i * gg
        h = o * jnp.tanh(c)
        return (h, c), None

    (h_T, _), _ = lax.scan(step, (h0, c0), jnp.transpose(x, (1, 0, 2)))
    return h_T @ w_fc + b_fc


def init_params(key, vocab_size, embed_size, hidden_size):
    ks = jax.random.split(key, 7)
    s = 1.0 / np.sqrt(hidden_size)
    return {
        "embedding": jax.random.normal(ks[0], (vocab_size, embed_size), jnp.float32),
        "w_ih": jax.random.uniform(ks[1], (embed_size, 4 * hidden_size),
                                   jnp.float32, -s, s),
        "w_hh": jax.random.uniform(ks[2], (hidden_size, 4 * hidden_size),
                                   jnp.float32, -s, s),
        # bias = b_ih + b_hh (PyTorch keeps them separate; the sum is equivalent)
        "bias": (jax.random.uniform(ks[3], (1, 4 * hidden_size), jnp.float32, -s, s)
                 + jax.random.uniform(ks[4], (1, 4 * hidden_size), jnp.float32, -s, s)),
        "w_fc": jax.random.uniform(ks[5], (hidden_size, vocab_size),
                                   jnp.float32, -s, s),
        "b_fc": jax.random.uniform(ks[6], (1, vocab_size), jnp.float32, -s, s),
    }


if __name__ == "__main__":
    # Shapes consistent with the module (embed=128, hidden=256); small demo batch/seq.
    VOCAB, EMBED, HIDDEN = 256, 128, 256
    B, T = 2, 8

    key = jax.random.PRNGKey(0)
    k_params, k_tok = jax.random.split(key)
    params = init_params(k_params, VOCAB, EMBED, HIDDEN)
    tokens = jax.random.randint(k_tok, (B, T), 0, VOCAB, dtype=jnp.int32)

    out = jax.block_until_ready(simple_lstm_forward(tokens, params))
    ref = jax.block_until_ready(reference_forward(tokens, params))

    assert out.shape == (B, VOCAB)
    # bf16 MXU inputs / bf16 gates_x vs. full-f32 reference -> loosened tolerance.
    np.testing.assert_allclose(np.asarray(out), np.asarray(ref),
                               rtol=5e-2, atol=5e-2)
    print("KERNEL_OK")
</pallas_src>

<mosaic_0001>
module attributes {stable_mosaic.version = 11 : i64} {
  func.func @lstm_recurrence_kernel(%arg0: i32, %arg1: i32, %arg2: memref<8x8x1024xbf16, #tpu.memory_space<vmem>>, %arg3: memref<256x1024xbf16, #tpu.memory_space<vmem>>, %arg4: memref<1x1024xf32, #tpu.memory_space<vmem>>, %arg5: memref<8x256xbf16, #tpu.memory_space<vmem>>, %arg6: memref<8x256xf32, #tpu.memory_space<vmem>>, %arg7: memref<8x256xf32, #tpu.memory_space<vmem>>) attributes {dimension_semantics = [#tpu.dimension_semantics<parallel>, #tpu.dimension_semantics<arbitrary>], iteration_bounds = array<i64: 1, 1>, scalar_prefetch = 0 : i64, scratch_operands = 2 : i64, tpu.core_type = #tpu.core_type<tc>, window_params = [{transform_indices = @transform_0, window_bounds = array<i64: 8, 8, 1024>}, {pipeline_mode = #tpu.pipeline_mode<synchronous>, transform_indices = @transform_1, window_bounds = array<i64: 256, 1024>}, {pipeline_mode = #tpu.pipeline_mode<synchronous>, transform_indices = @transform_2, window_bounds = array<i64: 1, 1024>}, {transform_indices = @transform_3, window_bounds = array<i64: 8, 256>}]} {
    %c0_i32 = arith.constant 0 : i32
    %0 = arith.cmpi eq, %arg1, %c0_i32 : i32
    %1 = arith.extui %0 : i1 to i32
    %c0_i32_0 = arith.constant 0 : i32
    %2 = arith.cmpi ne, %1, %c0_i32_0 : i32
    scf.if %2 {
      %cst_124 = arith.constant 0.000000e+00 : f32
      %339 = vector.broadcast %cst_124 : f32 to vector<8x256xf32>
      %c0_125 = arith.constant 0 : index
      %c0_126 = arith.constant 0 : index
      %340 = vector.load %arg6[%c0_125, %c0_126] : memref<8x256xf32, #tpu.memory_space<vmem>>, vector<8x256xf32>
      tpu.vector_store %arg6[%c0_125, %c0_126], %339 {strides = array<i32>} : memref<8x256xf32, #tpu.memory_space<vmem>>, vector<8x256xf32>,
      %cst_127 = arith.constant 0.000000e+00 : f32
      %341 = vector.broadcast %cst_127 : f32 to vector<8x256xf32>
      %c0_128 = arith.constant 0 : index
      %c0_129 = arith.constant 0 : index
      %342 = vector.load %arg7[%c0_128, %c0_129] : memref<8x256xf32, #tpu.memory_space<vmem>>, vector<8x256xf32>
      tpu.vector_store %arg7[%c0_128, %c0_129], %341 {strides = array<i32>} : memref<8x256xf32, #tpu.memory_space<vmem>>, vector<8x256xf32>,
    } else {
    }
    %c0 = arith.constant 0 : index
    %c0_1 = arith.constant 0 : index
    %3 = vector.load %arg4[%c0, %c0_1] : memref<1x1024xf32, #tpu.memory_space<vmem>>, vector<1x1024xf32>
    %c0_2 = arith.constant 0 : index
    %c0_3 = arith.constant 0 : index
    %4 = vector.load %arg6[%c0_2, %c0_3] : memref<8x256xf32, #tpu.memory_space<vmem>>, vector<8x256xf32>
    %c0_4 = arith.constant 0 : index
    %c0_5 = arith.constant 0 : index
    %5 = vector.load %arg7[%c0_4, %c0_5] : memref<8x256xf32, #tpu.memory_space<vmem>>, vector<8x256xf32>
    %c0_i32_6 = arith.constant 0 : i32
    %6 = arith.index_cast %c0_i32_6 : i32 to index
    %c0_7 = arith.constant 0 : index
    %c0_8 = arith.constant 0 : index
    %7 = vector.load %arg2[%6, %c0_7, %c0_8] : memref<8x8x1024xbf16, #tpu.memory_space<vmem>>, vector<1x8x1024xbf16>
    %8 = vector.shape_cast %7 : vector<1x8x1024xbf16> to vector<8x1024xbf16>
    %9 = arith.extf %8 : vector<8x1024xbf16> to vector<8x1024xf32>
    %10 = arith.truncf %4 : vector<8x256xf32> to vector<8x256xbf16>
    %c0_9 = arith.constant 0 : index
    %c0_10 = arith.constant 0 : index
    %11 = vector.load %arg3[%c0_9, %c0_10] : memref<256x1024xbf16, #tpu.memory_space<vmem>>, vector<256x1024xbf16>
    %cst = arith.constant dense<0.000000e+00> : vector<8x1024xf32>
    %12 = tpu.matmul %10, %11, %cst {dimension_numbers = #tpu.dot_dimension_numbers<[1], [0], [0], [1], [0, 0, 1, 1], [], []>} : vector<8x256xbf16>, vector<256x1024xbf16>, vector<8x1024xf32> -> vector<8x1024xf32>
    %13 = arith.addf %9, %12 : vector<8x1024xf32>
    %14 = vector.broadcast %3 : vector<1x1024xf32> to vector<8x1024xf32>
    %15 = arith.addf %13, %14 : vector<8x1024xf32>
    %16 = vector.extract_strided_slice %15 {offsets = [0, 0], sizes = [8, 256], strides = [1, 1]} : vector<8x1024xf32> to vector<8x256xf32>
    %cst_11 = arith.constant 5.000000e-01 : f32
    %17 = vector.broadcast %cst_11 : f32 to vector<8x256xf32>
    %18 = arith.mulf %17, %16 : vector<8x256xf32>
    %19 = math.tanh %18 : vector<8x256xf32>
    %cst_12 = arith.constant 1.000000e+00 : f32
    %20 = vector.broadcast %cst_12 : f32 to vector<8x256xf32>
    %21 = arith.addf %19, %20 : vector<8x256xf32>
    %cst_13 = arith.constant 5.000000e-01 : f32
    %22 = vector.broadcast %cst_13 : f32 to vector<8x256xf32>
    %23 = arith.mulf %22, %21 : vector<8x256xf32>
    %24 = vector.extract_strided_slice %15 {offsets = [0, 256], sizes = [8, 256], strides = [1, 1]} : vector<8x1024xf32> to vector<8x256xf32>
    %cst_14 = arith.constant 5.000000e-01 : f32
    %25 = vector.broadcast %cst_14 : f32 to vector<8x256xf32>
    %26 = arith.mulf %25, %24 : vector<8x256xf32>
    %27 = math.tanh %26 : vector<8x256xf32>
    %cst_15 = arith.constant 1.000000e+00 : f32
    %28 = vector.broadcast %cst_15 : f32 to vector<8x256xf32>
    %29 = arith.addf %27, %28 : vector<8x256xf32>
    %cst_16 = arith.constant 5.000000e-01 : f32
    %30 = vector.broadcast %cst_16 : f32 to vector<8x256xf32>
    %31 = arith.mulf %30, %29 : vector<8x256xf32>
    %32 = vector.extract_strided_slice %15 {offsets = [0, 512], sizes = [8, 256], strides = [1, 1]} : vector<8x1024xf32> to vector<8x256xf32>
    %33 = math.tanh %32 : vector<8x256xf32>
    %34 = vector.extract_strided_slice %15 {offsets = [0, 768], sizes = [8, 256], strides = [1, 1]} : vector<8x1024xf32> to vector<8x256xf32>
    %cst_17 = arith.constant 5.000000e-01 : f32
    %35 = vector.broadcast %cst_17 : f32 to vector<8x256xf32>
    %36 = arith.mulf %35, %34 : vector<8x256xf32>
    %37 = math.tanh %36 : vector<8x256xf32>
    %cst_18 = arith.constant 1.000000e+00 : f32
    %38 = vector.broadcast %cst_18 : f32 to vector<8x256xf32>
    %39 = arith.addf %37, %38 : vector<8x256xf32>
    %cst_19 = arith.constant 5.000000e-01 : f32
    %40 = vector.broadcast %cst_19 : f32 to vector<8x256xf32>
    %41 = arith.mulf %40, %39 : vector<8x256xf32>
    %42 = arith.mulf %31, %5 : vector<8x256xf32>
    %43 = arith.mulf %23, %33 : vector<8x256xf32>
    %44 = arith.addf %42, %43 : vector<8x256xf32>
    %45 = math.tanh %44 : vector<8x256xf32>
    %46 = arith.mulf %41, %45 : vector<8x256xf32>
    %c1_i32 = arith.constant 1 : i32
    %47 = arith.index_cast %c1_i32 : i32 to index
    %c0_20 = arith.constant 0 : index
    %c0_21 = arith.constant 0 : index
    %48 = vector.load %arg2[%47, %c0_20, %c0_21] : memref<8x8x1024xbf16, #tpu.memory_space<vmem>>, vector<1x8x1024xbf16>
    %49 = vector.shape_cast %48 : vector<1x8x1024xbf16> to vector<8x1024xbf16>
    %50 = arith.extf %49 : vector<8x1024xbf16> to vector<8x1024xf32>
    %51 = arith.truncf %46 : vector<8x256xf32> to vector<8x256xbf16>
    %c0_22 = arith.constant 0 : index
    %c0_23 = arith.constant 0 : index
    %52 = vector.load %arg3[%c0_22, %c0_23] : memref<256x1024xbf16, #tpu.memory_space<vmem>>, vector<256x1024xbf16>
    %cst_24 = arith.constant dense<0.000000e+00> : vector<8x1024xf32>
    %53 = tpu.matmul %51, %52, %cst_24 {dimension_numbers = #tpu.dot_dimension_numbers<[1], [0], [0], [1], [0, 0, 1, 1], [], []>} : vector<8x256xbf16>, vector<256x1024xbf16>, vector<8x1024xf32> -> vector<8x1024xf32>
    %54 = arith.addf %50, %53 : vector<8x1024xf32>
    %55 = vector.broadcast %3 : vector<1x1024xf32> to vector<8x1024xf32>
    %56 = arith.addf %54, %55 : vector<8x1024xf32>
    %57 = vector.extract_strided_slice %56 {offsets = [0, 0], sizes = [8, 256], strides = [1, 1]} : vector<8x1024xf32> to vector<8x256xf32>
    %cst_25 = arith.constant 5.000000e-01 : f32
    %58 = vector.broadcast %cst_25 : f32 to vector<8x256xf32>
    %59 = arith.mulf %58, %57 : vector<8x256xf32>
    %60 = math.tanh %59 : vector<8x256xf32>
    %cst_26 = arith.constant 1.000000e+00 : f32
    %61 = vector.broadcast %cst_26 : f32 to vector<8x256xf32>
    %62 = arith.addf %60, %61 : vector<8x256xf32>
    %cst_27 = arith.constant 5.000000e-01 : f32
    %63 = vector.broadcast %cst_27 : f32 to vector<8x256xf32>
    %64 = arith.mulf %63, %62 : vector<8x256xf32>
    %65 = vector.extract_strided_slice %56 {offsets = [0, 256], sizes = [8, 256], strides = [1, 1]} : vector<8x1024xf32> to vector<8x256xf32>
    %cst_28 = arith.constant 5.000000e-01 : f32
    %66 = vector.broadcast %cst_28 : f32 to vector<8x256xf32>
    %67 = arith.mulf %66, %65 : vector<8x256xf32>
    %68 = math.tanh %67 : vector<8x256xf32>
    %cst_29 = arith.constant 1.000000e+00 : f32
    %69 = vector.broadcast %cst_29 : f32 to vector<8x256xf32>
    %70 = arith.addf %68, %69 : vector<8x256xf32>
    %cst_30 = arith.constant 5.000000e-01 : f32
    %71 = vector.broadcast %cst_30 : f32 to vector<8x256xf32>
    %72 = arith.mulf %71, %70 : vector<8x256xf32>
    %73 = vector.extract_strided_slice %56 {offsets = [0, 512], sizes = [8, 256], strides = [1, 1]} : vector<8x1024xf32> to vector<8x256xf32>
    %74 = math.tanh %73 : vector<8x256xf32>
    %75 = vector.extract_strided_slice %56 {offsets = [0, 768], sizes = [8, 256], strides = [1, 1]} : vector<8x1024xf32> to vector<8x256xf32>
    %cst_31 = arith.constant 5.000000e-01 : f32
    %76 = vector.broadcast %cst_31 : f32 to vector<8x256xf32>
    %77 = arith.mulf %76, %75 : vector<8x256xf32>
    %78 = math.tanh %77 : vector<8x256xf32>
    %cst_32 = arith.constant 1.000000e+00 : f32
    %79 = vector.broadcast %cst_32 : f32 to vector<8x256xf32>
    %80 = arith.addf %78, %79 : vector<8x256xf32>
    %cst_33 = arith.constant 5.000000e-01 : f32
    %81 = vector.broadcast %cst_33 : f32 to vector<8x256xf32>
    %82 = arith.mulf %81, %80 : vector<8x256xf32>
    %83 = arith.mulf %72, %44 : vector<8x256xf32>
    %84 = arith.mulf %64, %74 : vector<8x256xf32>
    %85 = arith.addf %83, %84 : vector<8x256xf32>
    %86 = math.tanh %85 : vector<8x256xf32>
    %87 = arith.mulf %82, %86 : vector<8x256xf32>
    %c2_i32 = arith.constant 2 : i32
    %88 = arith.index_cast %c2_i32 : i32 to index
    %c0_34 = arith.constant 0 : index
    %c0_35 = arith.constant 0 : index
    %89 = vector.load %arg2[%88, %c0_34, %c0_35] : memref<8x8x1024xbf16, #tpu.memory_space<vmem>>, vector<1x8x1024xbf16>
    %90 = vector.shape_cast %89 : vector<1x8x1024xbf16> to vector<8x1024xbf16>
    %91 = arith.extf %90 : vector<8x1024xbf16> to vector<8x1024xf32>
    %92 = arith.truncf %87 : vector<8x256xf32> to vector<8x256xbf16>
    %c0_36 = arith.constant 0 : index
    %c0_37 = arith.constant 0 : index
    %93 = vector.load %arg3[%c0_36, %c0_37] : memref<256x1024xbf16, #tpu.memory_space<vmem>>, vector<256x1024xbf16>
    %cst_38 = arith.constant dense<0.000000e+00> : vector<8x1024xf32>
    %94 = tpu.matmul %92, %93, %cst_38 {dimension_numbers = #tpu.dot_dimension_numbers<[1], [0], [0], [1], [0, 0, 1, 1], [], []>} : vector<8x256xbf16>, vector<256x1024xbf16>, vector<8x1024xf32> -> vector<8x1024xf32>
    %95 = arith.addf %91, %94 : vector<8x1024xf32>
    %96 = vector.broadcast %3 : vector<1x1024xf32> to vector<8x1024xf32>
    %97 = arith.addf %95, %96 : vector<8x1024xf32>
    %98 = vector.extract_strided_slice %97 {offsets = [0, 0], sizes = [8, 256], strides = [1, 1]} : vector<8x1024xf32> to vector<8x256xf32>
    %cst_39 = arith.constant 5.000000e-01 : f32
    %99 = vector.broadcast %cst_39 : f32 to vector<8x256xf32>
    %100 = arith.mulf %99, %98 : vector<8x256xf32>
    %101 = math.tanh %100 : vector<8x256xf32>
    %cst_40 = arith.constant 1.000000e+00 : f32
    %102 = vector.broadcast %cst_40 : f32 to vector<8x256xf32>
    %103 = arith.addf %101, %102 : vector<8x256xf32>
    %cst_41 = arith.constant 5.000000e-01 : f32
    %104 = vector.broadcast %cst_41 : f32 to vector<8x256xf32>
    %105 = arith.mulf %104, %103 : vector<8x256xf32>
    %106 = vector.extract_strided_slice %97 {offsets = [0, 256], sizes = [8, 256], strides = [1, 1]} : vector<8x1024xf32> to vector<8x256xf32>
    %cst_42 = arith.constant 5.000000e-01 : f32
    %107 = vector.broadcast %cst_42 : f32 to vector<8x256xf32>
    %108 = arith.mulf %107, %106 : vector<8x256xf32>
    %109 = math.tanh %108 : vector<8x256xf32>
    %cst_43 = arith.constant 1.000000e+00 : f32
    %110 = vector.broadcast %cst_43 : f32 to vector<8x256xf32>
    %111 = arith.addf %109, %110 : vector<8x256xf32>
    %cst_44 = arith.constant 5.000000e-01 : f32
    %112 = vector.broadcast %cst_44 : f32 to vector<8x256xf32>
    %113 = arith.mulf %112, %111 : vector<8x256xf32>
    %114 = vector.extract_strided_slice %97 {offsets = [0, 512], sizes = [8, 256], strides = [1, 1]} : vector<8x1024xf32> to vector<8x256xf32>
    %115 = math.tanh %114 : vector<8x256xf32>
    %116 = vector.extract_strided_slice %97 {offsets = [0, 768], sizes = [8, 256], strides = [1, 1]} : vector<8x1024xf32> to vector<8x256xf32>
    %cst_45 = arith.constant 5.000000e-01 : f32
    %117 = vector.broadcast %cst_45 : f32 to vector<8x256xf32>
    %118 = arith.mulf %117, %116 : vector<8x256xf32>
    %119 = math.tanh %118 : vector<8x256xf32>
    %cst_46 = arith.constant 1.000000e+00 : f32
    %120 = vector.broadcast %cst_46 : f32 to vector<8x256xf32>
    %121 = arith.addf %119, %120 : vector<8x256xf32>
    %cst_47 = arith.constant 5.000000e-01 : f32
    %122 = vector.broadcast %cst_47 : f32 to vector<8x256xf32>
    %123 = arith.mulf %122, %121 : vector<8x256xf32>
    %124 = arith.mulf %113, %85 : vector<8x256xf32>
    %125 = arith.mulf %105, %115 : vector<8x256xf32>
    %126 = arith.addf %124, %125 : vector<8x256xf32>
    %127 = math.tanh %126 : vector<8x256xf32>
    %128 = arith.mulf %123, %127 : vector<8x256xf32>
    %c3_i32 = arith.constant 3 : i32
    %129 = arith.index_cast %c3_i32 : i32 to index
    %c0_48 = arith.constant 0 : index
    %c0_49 = arith.constant 0 : index
    %130 = vector.load %arg2[%129, %c0_48, %c0_49] : memref<8x8x1024xbf16, #tpu.memory_space<vmem>>, vector<1x8x1024xbf16>
    %131 = vector.shape_cast %130 : vector<1x8x1024xbf16> to vector<8x1024xbf16>
    %132 = arith.extf %131 : vector<8x1024xbf16> to vector<8x1024xf32>
    %133 = arith.truncf %128 : vector<8x256xf32> to vector<8x256xbf16>
    %c0_50 = arith.constant 0 : index
    %c0_51 = arith.constant 0 : index
    %134 = vector.load %arg3[%c0_50, %c0_51] : memref<256x1024xbf16, #tpu.memory_space<vmem>>, vector<256x1024xbf16>
    %cst_52 = arith.constant dense<0.000000e+00> : vector<8x1024xf32>
    %135 = tpu.matmul %133, %134, %cst_52 {dimension_numbers = #tpu.dot_dimension_numbers<[1], [0], [0], [1], [0, 0, 1, 1], [], []>} : vector<8x256xbf16>, vector<256x1024xbf16>, vector<8x1024xf32> -> vector<8x1024xf32>
    %136 = arith.addf %132, %135 : vector<8x1024xf32>
    %137 = vector.broadcast %3 : vector<1x1024xf32> to vector<8x1024xf32>
    %138 = arith.addf %136, %137 : vector<8x1024xf32>
    %139 = vector.extract_strided_slice %138 {offsets = [0, 0], sizes = [8, 256], strides = [1, 1]} : vector<8x1024xf32> to vector<8x256xf32>
    %cst_53 = arith.constant 5.000000e-01 : f32
    %140 = vector.broadcast %cst_53 : f32 to vector<8x256xf32>
    %141 = arith.mulf %140, %139 : vector<8x256xf32>
    %142 = math.tanh %141 : vector<8x256xf32>
    %cst_54 = arith.constant 1.000000e+00 : f32
    %143 = vector.broadcast %cst_54 : f32 to vector<8x256xf32>
    %144 = arith.addf %142, %143 : vector<8x256xf32>
    %cst_55 = arith.constant 5.000000e-01 : f32
    %145 = vector.broadcast %cst_55 : f32 to vector<8x256xf32>
    %146 = arith.mulf %145, %144 : vector<8x256xf32>
    %147 = vector.extract_strided_slice %138 {offsets = [0, 256], sizes = [8, 256], strides = [1, 1]} : vector<8x1024xf32> to vector<8x256xf32>
    %cst_56 = arith.constant 5.000000e-01 : f32
    %148 = vector.broadcast %cst_56 : f32 to vector<8x256xf32>
    %149 = arith.mulf %148, %147 : vector<8x256xf32>
    %150 = math.tanh %149 : vector<8x256xf32>
    %cst_57 = arith.constant 1.000000e+00 : f32
    %151 = vector.broadcast %cst_57 : f32 to vector<8x256xf32>
    %152 = arith.addf %150, %151 : vector<8x256xf32>
    %cst_58 = arith.constant 5.000000e-01 : f32
    %153 = vector.broadcast %cst_58 : f32 to vector<8x256xf32>
    %154 = arith.mulf %153, %152 : vector<8x256xf32>
    %155 = vector.extract_strided_slice %138 {offsets = [0, 512], sizes = [8, 256], strides = [1, 1]} : vector<8x1024xf32> to vector<8x256xf32>
    %156 = math.tanh %155 : vector<8x256xf32>
    %157 = vector.extract_strided_slice %138 {offsets = [0, 768], sizes = [8, 256], strides = [1, 1]} : vector<8x1024xf32> to vector<8x256xf32>
    %cst_59 = arith.constant 5.000000e-01 : f32
    %158 = vector.broadcast %cst_59 : f32 to vector<8x256xf32>
    %159 = arith.mulf %158, %157 : vector<8x256xf32>
    %160 = math.tanh %159 : vector<8x256xf32>
    %cst_60 = arith.constant 1.000000e+00 : f32
    %161 = vector.broadcast %cst_60 : f32 to vector<8x256xf32>
    %162 = arith.addf %160, %161 : vector<8x256xf32>
    %cst_61 = arith.constant 5.000000e-01 : f32
    %163 = vector.broadcast %cst_61 : f32 to vector<8x256xf32>
    %164 = arith.mulf %163, %162 : vector<8x256xf32>
    %165 = arith.mulf %154, %126 : vector<8x256xf32>
    %166 = arith.mulf %146, %156 : vector<8x256xf32>
    %167 = arith.addf %165, %166 : vector<8x256xf32>
    %168 = math.tanh %167 : vector<8x256xf32>
    %169 = arith.mulf %164, %168 : vector<8x256xf32>
    %c4_i32 = arith.constant 4 : i32
    %170 = arith.index_cast %c4_i32 : i32 to index
    %c0_62 = arith.constant 0 : index
    %c0_63 = arith.constant 0 : index
    %171 = vector.load %arg2[%170, %c0_62, %c0_63] : memref<8x8x1024xbf16, #tpu.memory_space<vmem>>, vector<1x8x1024xbf16>
    %172 = vector.shape_cast %171 : vector<1x8x1024xbf16> to vector<8x1024xbf16>
    %173 = arith.extf %172 : vector<8x1024xbf16> to vector<8x1024xf32>
    %174 = arith.truncf %169 : vector<8x256xf32> to vector<8x256xbf16>
    %c0_64 = arith.constant 0 : index
    %c0_65 = arith.constant 0 : index
    %175 = vector.load %arg3[%c0_64, %c0_65] : memref<256x1024xbf16, #tpu.memory_space<vmem>>, vector<256x1024xbf16>
    %cst_66 = arith.constant dense<0.000000e+00> : vector<8x1024xf32>
    %176 = tpu.matmul %174, %175, %cst_66 {dimension_numbers = #tpu.dot_dimension_numbers<[1], [0], [0], [1], [0, 0, 1, 1], [], []>} : vector<8x256xbf16>, vector<256x1024xbf16>, vector<8x1024xf32> -> vector<8x1024xf32>
    %177 = arith.addf %173, %176 : vector<8x1024xf32>
    %178 = vector.broadcast %3 : vector<1x1024xf32> to vector<8x1024xf32>
    %179 = arith.addf %177, %178 : vector<8x1024xf32>
    %180 = vector.extract_strided_slice %179 {offsets = [0, 0], sizes = [8, 256], strides = [1, 1]} : vector<8x1024xf32> to vector<8x256xf32>
    %cst_67 = arith.constant 5.000000e-01 : f32
    %181 = vector.broadcast %cst_67 : f32 to vector<8x256xf32>
    %182 = arith.mulf %181, %180 : vector<8x256xf32>
    %183 = math.tanh %182 : vector<8x256xf32>
    %cst_68 = arith.constant 1.000000e+00 : f32
    %184 = vector.broadcast %cst_68 : f32 to vector<8x256xf32>
    %185 = arith.addf %183, %184 : vector<8x256xf32>
    %cst_69 = arith.constant 5.000000e-01 : f32
    %186 = vector.broadcast %cst_69 : f32 to vector<8x256xf32>
    %187 = arith.mulf %186, %185 : vector<8x256xf32>
    %188 = vector.extract_strided_slice %179 {offsets = [0, 256], sizes = [8, 256], strides = [1, 1]} : vector<8x1024xf32> to vector<8x256xf32>
    %cst_70 = arith.constant 5.000000e-01 : f32
    %189 = vector.broadcast %cst_70 : f32 to vector<8x256xf32>
    %190 = arith.mulf %189, %188 : vector<8x256xf32>
    %191 = math.tanh %190 : vector<8x256xf32>
    %cst_71 = arith.constant 1.000000e+00 : f32
    %192 = vector.broadcast %cst_71 : f32 to vector<8x256xf32>
    %193 = arith.addf %191, %192 : vector<8x256xf32>
    %cst_72 = arith.constant 5.000000e-01 : f32
    %194 = vector.broadcast %cst_72 : f32 to vector<8x256xf32>
    %195 = arith.mulf %194, %193 : vector<8x256xf32>
    %196 = vector.extract_strided_slice %179 {offsets = [0, 512], sizes = [8, 256], strides = [1, 1]} : vector<8x1024xf32> to vector<8x256xf32>
    %197 = math.tanh %196 : vector<8x256xf32>
    %198 = vector.extract_strided_slice %179 {offsets = [0, 768], sizes = [8, 256], strides = [1, 1]} : vector<8x1024xf32> to vector<8x256xf32>
    %cst_73 = arith.constant 5.000000e-01 : f32
    %199 = vector.broadcast %cst_73 : f32 to vector<8x256xf32>
    %200 = arith.mulf %199, %198 : vector<8x256xf32>
    %201 = math.tanh %200 : vector<8x256xf32>
    %cst_74 = arith.constant 1.000000e+00 : f32
    %202 = vector.broadcast %cst_74 : f32 to vector<8x256xf32>
    %203 = arith.addf %201, %202 : vector<8x256xf32>
    %cst_75 = arith.constant 5.000000e-01 : f32
    %204 = vector.broadcast %cst_75 : f32 to vector<8x256xf32>
    %205 = arith.mulf %204, %203 : vector<8x256xf32>
    %206 = arith.mulf %195, %167 : vector<8x256xf32>
    %207 = arith.mulf %187, %197 : vector<8x256xf32>
    %208 = arith.addf %206, %207 : vector<8x256xf32>
    %209 = math.tanh %208 : vector<8x256xf32>
    %210 = arith.mulf %205, %209 : vector<8x256xf32>
    %c5_i32 = arith.constant 5 : i32
    %211 = arith.index_cast %c5_i32 : i32 to index
    %c0_76 = arith.constant 0 : index
    %c0_77 = arith.constant 0 : index
    %212 = vector.load %arg2[%211, %c0_76, %c0_77] : memref<8x8x1024xbf16, #tpu.memory_space<vmem>>, vector<1x8x1024xbf16>
    %213 = vector.shape_cast %212 : vector<1x8x1024xbf16> to vector<8x1024xbf16>
    %214 = arith.extf %213 : vector<8x1024xbf16> to vector<8x1024xf32>
    %215 = arith.truncf %210 : vector<8x256xf32> to vector<8x256xbf16>
    %c0_78 = arith.constant 0 : index
    %c0_79 = arith.constant 0 : index
    %216 = vector.load %arg3[%c0_78, %c0_79] : memref<256x1024xbf16, #tpu.memory_space<vmem>>, vector<256x1024xbf16>
    %cst_80 = arith.constant dense<0.000000e+00> : vector<8x1024xf32>
    %217 = tpu.matmul %215, %216, %cst_80 {dimension_numbers = #tpu.dot_dimension_numbers<[1], [0], [0], [1], [0, 0, 1, 1], [], []>} : vector<8x256xbf16>, vector<256x1024xbf16>, vector<8x1024xf32> -> vector<8x1024xf32>
    %218 = arith.addf %214, %217 : vector<8x1024xf32>
    %219 = vector.broadcast %3 : vector<1x1024xf32> to vector<8x1024xf32>
    %220 = arith.addf %218, %219 : vector<8x1024xf32>
    %221 = vector.extract_strided_slice %220 {offsets = [0, 0], sizes = [8, 256], strides = [1, 1]} : vector<8x1024xf32> to vector<8x256xf32>
    %cst_81 = arith.constant 5.000000e-01 : f32
    %222 = vector.broadcast %cst_81 : f32 to vector<8x256xf32>
    %223 = arith.mulf %222, %221 : vector<8x256xf32>
    %224 = math.tanh %223 : vector<8x256xf32>
    %cst_82 = arith.constant 1.000000e+00 : f32
    %225 = vector.broadcast %cst_82 : f32 to vector<8x256xf32>
    %226 = arith.addf %224, %225 : vector<8x256xf32>
    %cst_83 = arith.constant 5.000000e-01 : f32
    %227 = vector.broadcast %cst_83 : f32 to vector<8x256xf32>
    %228 = arith.mulf %227, %226 : vector<8x256xf32>
    %229 = vector.extract_strided_slice %220 {offsets = [0, 256], sizes = [8, 256], strides = [1, 1]} : vector<8x1024xf32> to vector<8x256xf32>
    %cst_84 = arith.constant 5.000000e-01 : f32
    %230 = vector.broadcast %cst_84 : f32 to vector<8x256xf32>
    %231 = arith.mulf %230, %229 : vector<8x256xf32>
    %232 = math.tanh %231 : vector<8x256xf32>
    %cst_85 = arith.constant 1.000000e+00 : f32
    %233 = vector.broadcast %cst_85 : f32 to vector<8x256xf32>
    %234 = arith.addf %232, %233 : vector<8x256xf32>
    %cst_86 = arith.constant 5.000000e-01 : f32
    %235 = vector.broadcast %cst_86 : f32 to vector<8x256xf32>
    %236 = arith.mulf %235, %234 : vector<8x256xf32>
    %237 = vector.extract_strided_slice %220 {offsets = [0, 512], sizes = [8, 256], strides = [1, 1]} : vector<8x1024xf32> to vector<8x256xf32>
    %238 = math.tanh %237 : vector<8x256xf32>
    %239 = vector.extract_strided_slice %220 {offsets = [0, 768], sizes = [8, 256], strides = [1, 1]} : vector<8x1024xf32> to vector<8x256xf32>
    %cst_87 = arith.constant 5.000000e-01 : f32
    %240 = vector.broadcast %cst_87 : f32 to vector<8x256xf32>
    %241 = arith.mulf %240, %239 : vector<8x256xf32>
    %242 = math.tanh %241 : vector<8x256xf32>
    %cst_88 = arith.constant 1.000000e+00 : f32
    %243 = vector.broadcast %cst_88 : f32 to vector<8x256xf32>
    %244 = arith.addf %242, %243 : vector<8x256xf32>
    %cst_89 = arith.constant 5.000000e-01 : f32
    %245 = vector.broadcast %cst_89 : f32 to vector<8x256xf32>
    %246 = arith.mulf %245, %244 : vector<8x256xf32>
    %247 = arith.mulf %236, %208 : vector<8x256xf32>
    %248 = arith.mulf %228, %238 : vector<8x256xf32>
    %249 = arith.addf %247, %248 : vector<8x256xf32>
    %250 = math.tanh %249 : vector<8x256xf32>
    %251 = arith.mulf %246, %250 : vector<8x256xf32>
    %c6_i32 = arith.constant 6 : i32
    %252 = arith.index_cast %c6_i32 : i32 to index
    %c0_90 = arith.constant 0 : index
    %c0_91 = arith.constant 0 : index
    %253 = vector.load %arg2[%252, %c0_90, %c0_91] : memref<8x8x1024xbf16, #tpu.memory_space<vmem>>, vector<1x8x1024xbf16>
    %254 = vector.shape_cast %253 : vector<1x8x1024xbf16> to vector<8x1024xbf16>
    %255 = arith.extf %254 : vector<8x1024xbf16> to vector<8x1024xf32>
    %256 = arith.truncf %251 : vector<8x256xf32> to vector<8x256xbf16>
    %c0_92 = arith.constant 0 : index
    %c0_93 = arith.constant 0 : index
    %257 = vector.load %arg3[%c0_92, %c0_93] : memref<256x1024xbf16, #tpu.memory_space<vmem>>, vector<256x1024xbf16>
    %cst_94 = arith.constant dense<0.000000e+00> : vector<8x1024xf32>
    %258 = tpu.matmul %256, %257, %cst_94 {dimension_numbers = #tpu.dot_dimension_numbers<[1], [0], [0], [1], [0, 0, 1, 1], [], []>} : vector<8x256xbf16>, vector<256x1024xbf16>, vector<8x1024xf32> -> vector<8x1024xf32>
    %259 = arith.addf %255, %258 : vector<8x1024xf32>
    %260 = vector.broadcast %3 : vector<1x1024xf32> to vector<8x1024xf32>
    %261 = arith.addf %259, %260 : vector<8x1024xf32>
    %262 = vector.extract_strided_slice %261 {offsets = [0, 0], sizes = [8, 256], strides = [1, 1]} : vector<8x1024xf32> to vector<8x256xf32>
    %cst_95 = arith.constant 5.000000e-01 : f32
    %263 = vector.broadcast %cst_95 : f32 to vector<8x256xf32>
    %264 = arith.mulf %263, %262 : vector<8x256xf32>
    %265 = math.tanh %264 : vector<8x256xf32>
    %cst_96 = arith.constant 1.000000e+00 : f32
    %266 = vector.broadcast %cst_96 : f32 to vector<8x256xf32>
    %267 = arith.addf %265, %266 : vector<8x256xf32>
    %cst_97 = arith.constant 5.000000e-01 : f32
    %268 = vector.broadcast %cst_97 : f32 to vector<8x256xf32>
    %269 = arith.mulf %268, %267 : vector<8x256xf32>
    %270 = vector.extract_strided_slice %261 {offsets = [0, 256], sizes = [8, 256], strides = [1, 1]} : vector<8x1024xf32> to vector<8x256xf32>
    %cst_98 = arith.constant 5.000000e-01 : f32
    %271 = vector.broadcast %cst_98 : f32 to vector<8x256xf32>
    %272 = arith.mulf %271, %270 : vector<8x256xf32>
    %273 = math.tanh %272 : vector<8x256xf32>
    %cst_99 = arith.constant 1.000000e+00 : f32
    %274 = vector.broadcast %cst_99 : f32 to vector<8x256xf32>
    %275 = arith.addf %273, %274 : vector<8x256xf32>
    %cst_100 = arith.constant 5.000000e-01 : f32
    %276 = vector.broadcast %cst_100 : f32 to vector<8x256xf32>
    %277 = arith.mulf %276, %275 : vector<8x256xf32>
    %278 = vector.extract_strided_slice %261 {offsets = [0, 512], sizes = [8, 256], strides = [1, 1]} : vector<8x1024xf32> to vector<8x256xf32>
    %279 = math.tanh %278 : vector<8x256xf32>
    %280 = vector.extract_strided_slice %261 {offsets = [0, 768], sizes = [8, 256], strides = [1, 1]} : vector<8x1024xf32> to vector<8x256xf32>
    %cst_101 = arith.constant 5.000000e-01 : f32
    %281 = vector.broadcast %cst_101 : f32 to vector<8x256xf32>
    %282 = arith.mulf %281, %280 : vector<8x256xf32>
    %283 = math.tanh %282 : vector<8x256xf32>
    %cst_102 = arith.constant 1.000000e+00 : f32
    %284 = vector.broadcast %cst_102 : f32 to vector<8x256xf32>
    %285 = arith.addf %283, %284 : vector<8x256xf32>
    %cst_103 = arith.constant 5.000000e-01 : f32
    %286 = vector.broadcast %cst_103 : f32 to vector<8x256xf32>
    %287 = arith.mulf %286, %285 : vector<8x256xf32>
    %288 = arith.mulf %277, %249 : vector<8x256xf32>
    %289 = arith.mulf %269, %279 : vector<8x256xf32>
    %290 = arith.addf %288, %289 : vector<8x256xf32>
    %291 = math.tanh %290 : vector<8x256xf32>
    %292 = arith.mulf %287, %291 : vector<8x256xf32>
    %c7_i32 = arith.constant 7 : i32
    %293 = arith.index_cast %c7_i32 : i32 to index
    %c0_104 = arith.constant 0 : index
    %c0_105 = arith.constant 0 : index
    %294 = vector.load %arg2[%293, %c0_104, %c0_105] : memref<8x8x1024xbf16, #tpu.memory_space<vmem>>, vector<1x8x1024xbf16>
    %295 = vector.shape_cast %294 : vector<1x8x1024xbf16> to vector<8x1024xbf16>
    %296 = arith.extf %295 : vector<8x1024xbf16> to vector<8x1024xf32>
    %297 = arith.truncf %292 : vector<8x256xf32> to vector<8x256xbf16>
    %c0_106 = arith.constant 0 : index
    %c0_107 = arith.constant 0 : index
    %298 = vector.load %arg3[%c0_106, %c0_107] : memref<256x1024xbf16, #tpu.memory_space<vmem>>, vector<256x1024xbf16>
    %cst_108 = arith.constant dense<0.000000e+00> : vector<8x1024xf32>
    %299 = tpu.matmul %297, %298, %cst_108 {dimension_numbers = #tpu.dot_dimension_numbers<[1], [0], [0], [1], [0, 0, 1, 1], [], []>} : vector<8x256xbf16>, vector<256x1024xbf16>, vector<8x1024xf32> -> vector<8x1024xf32>
    %300 = arith.addf %296, %299 : vector<8x1024xf32>
    %301 = vector.broadcast %3 : vector<1x1024xf32> to vector<8x1024xf32>
    %302 = arith.addf %300, %301 : vector<8x1024xf32>
    %303 = vector.extract_strided_slice %302 {offsets = [0, 0], sizes = [8, 256], strides = [1, 1]} : vector<8x1024xf32> to vector<8x256xf32>
    %cst_109 = arith.constant 5.000000e-01 : f32
    %304 = vector.broadcast %cst_109 : f32 to vector<8x256xf32>
    %305 = arith.mulf %304, %303 : vector<8x256xf32>
    %306 = math.tanh %305 : vector<8x256xf32>
    %cst_110 = arith.constant 1.000000e+00 : f32
    %307 = vector.broadcast %cst_110 : f32 to vector<8x256xf32>
    %308 = arith.addf %306, %307 : vector<8x256xf32>
    %cst_111 = arith.constant 5.000000e-01 : f32
    %309 = vector.broadcast %cst_111 : f32 to vector<8x256xf32>
    %310 = arith.mulf %309, %308 : vector<8x256xf32>
    %311 = vector.extract_strided_slice %302 {offsets = [0, 256], sizes = [8, 256], strides = [1, 1]} : vector<8x1024xf32> to vector<8x256xf32>
    %cst_112 = arith.constant 5.000000e-01 : f32
    %312 = vector.broadcast %cst_112 : f32 to vector<8x256xf32>
    %313 = arith.mulf %312, %311 : vector<8x256xf32>
    %314 = math.tanh %313 : vector<8x256xf32>
    %cst_113 = arith.constant 1.000000e+00 : f32
    %315 = vector.broadcast %cst_113 : f32 to vector<8x256xf32>
    %316 = arith.addf %314, %315 : vector<8x256xf32>
    %cst_114 = arith.constant 5.000000e-01 : f32
    %317 = vector.broadcast %cst_114 : f32 to vector<8x256xf32>
    %318 = arith.mulf %317, %316 : vector<8x256xf32>
    %319 = vector.extract_strided_slice %302 {offsets = [0, 512], sizes = [8, 256], strides = [1, 1]} : vector<8x1024xf32> to vector<8x256xf32>
    %320 = math.tanh %319 : vector<8x256xf32>
    %321 = vector.extract_strided_slice %302 {offsets = [0, 768], sizes = [8, 256], strides = [1, 1]} : vector<8x1024xf32> to vector<8x256xf32>
    %cst_115 = arith.constant 5.000000e-01 : f32
    %322 = vector.broadcast %cst_115 : f32 to vector<8x256xf32>
    %323 = arith.mulf %322, %321 : vector<8x256xf32>
    %324 = math.tanh %323 : vector<8x256xf32>
    %cst_116 = arith.constant 1.000000e+00 : f32
    %325 = vector.broadcast %cst_116 : f32 to vector<8x256xf32>
    %326 = arith.addf %324, %325 : vector<8x256xf32>
    %cst_117 = arith.constant 5.000000e-01 : f32
    %327 = vector.broadcast %cst_117 : f32 to vector<8x256xf32>
    %328 = arith.mulf %327, %326 : vector<8x256xf32>
    %329 = arith.mulf %318, %290 : vector<8x256xf32>
    %330 = arith.mulf %310, %320 : vector<8x256xf32>
    %331 = arith.addf %329, %330 : vector<8x256xf32>
    %332 = math.tanh %331 : vector<8x256xf32>
    %333 = arith.mulf %328, %332 : vector<8x256xf32>
    %c8_i32 = arith.constant 8 : i32
    %c0_118 = arith.constant 0 : index
    %c0_119 = arith.constant 0 : index
    %334 = vector.load %arg6[%c0_118, %c0_119] : memref<8x256xf32, #tpu.memory_space<vmem>>, vector<8x256xf32>
    tpu.vector_store %arg6[%c0_118, %c0_119], %333 {strides = array<i32>} : memref<8x256xf32, #tpu.memory_space<vmem>>, vector<8x256xf32>,
    %c0_120 = arith.constant 0 : index
    %c0_121 = arith.constant 0 : index
    %335 = vector.load %arg7[%c0_120, %c0_121] : memref<8x256xf32, #tpu.memory_space<vmem>>, vector<8x256xf32>
    tpu.vector_store %arg7[%c0_120, %c0_121], %331 {strides = array<i32>} : memref<8x256xf32, #tpu.memory_space<vmem>>, vector<8x256xf32>,
    %c0_i32_122 = arith.constant 0 : i32
    %336 = arith.cmpi eq, %arg1, %c0_i32_122 : i32
    %337 = arith.extui %336 : i1 to i32
    %c0_i32_123 = arith.constant 0 : i32
    %338 = arith.cmpi ne, %337, %c0_i32_123 : i32
    scf.if %338 {
      %339 = arith.truncf %333 : vector<8x256xf32> to vector<8x256xbf16>
      %c0_124 = arith.constant 0 : index
      %c0_125 = arith.constant 0 : index
      %340 = vector.load %arg5[%c0_124, %c0_125] : memref<8x256xbf16, #tpu.memory_space<vmem>>, vector<8x256xbf16>
      tpu.vector_store %arg5[%c0_124, %c0_125], %339 {strides = array<i32>} : memref<8x256xbf16, #tpu.memory_space<vmem>>, vector<8x256xbf16>,
    } else {
    }
    return
  }
  func.func @transform_0(%arg0: i32, %arg1: i32) -> (i32, i32, i32) {
    %c0_i32 = arith.constant 0 : i32
    %c0_i32_0 = arith.constant 0 : i32
    return %arg1, %arg0, %c0_i32 : i32, i32, i32
  }
  func.func @transform_1(%arg0: i32, %arg1: i32) -> (i32, i32) {
    %c0_i32 = arith.constant 0 : i32
    %c0_i32_0 = arith.constant 0 : i32
    %c0_i32_1 = arith.constant 0 : i32
    return %c0_i32, %c0_i32_0 : i32, i32
  }
  func.func @transform_2(%arg0: i32, %arg1: i32) -> (i32, i32) {
    %c0_i32 = arith.constant 0 : i32
    %c0_i32_0 = arith.constant 0 : i32
    %c0_i32_1 = arith.constant 0 : i32
    return %c0_i32, %c0_i32_0 : i32, i32
  }
  func.func @transform_3(%arg0: i32, %arg1: i32) -> (i32, i32) {
    %c0_i32 = arith.constant 0 : i32
    %c0_i32_0 = arith.constant 0 : i32
    return %arg0, %c0_i32 : i32, i32
  }
}

</mosaic_0001>

<bundles_post_ra>
// kernel: tpu_custom_call.1
= control target key start
LH: loop header
LB: loop body
LE: loop exit
PB: predicated region body
PF: predicated region fallthrough
CT: control target
= control target key end

     0   :  { %8 = vsyncpa [#allocation5], 0  ;;  %s4694_s0 = inlined_call_operand.hbm [shape: bf16[8,8,1024], index: 0, kind: input, shape index: {}]   ;;  %s4695_s1 = inlined_call_operand.hbm [shape: bf16[256,1024], index: 1, kind: input, shape index: {}]   ;;  %s4696_s2 = inlined_call_operand.hbm [shape: f32[1,1024], index: 2, kind: input, shape index: {}]   ;;  %s4697_s3 = inlined_call_operand.hbm [shape: bf16[8,256], index: 3, kind: output, shape index: {}]  }
   0x1   :  { %9 = vsyncpa [#allocation8], 0 }
   0x2   :  { %10 = vsyncpa [#allocation6], 0  ;;  %s3146_s12 = smov [#allocation7]   ;;  %s3147_s14 = smov [#allocation4]  }
   0x3   :  { %s28_s13 = sshll.u32 %s3146_s12, 4  ;;  %s16_s15 = sshll.u32 %s3147_s14, 4  ;;  %s29_s13 = int_to_ptr.vmem [resolvable:$true] %s28_s13  ;;  %s3173_s15 = int_to_ptr.vmem [resolvable:$true] %s16_s15 }
   0x4   :  { %s3052_s18 = scalar_lea.hbm %s4695_s1, 16384 }
   0x5   :  { %p3053_p0 = scmp.ne.s32.totalorder %s4695_s1, %s3052_s18  ;;  %p3056_p1 = scmp.lt.u32.totalorder %s3052_s18, %s4695_s1 }
   0x7   :  { %p3058_p2 = pnand %p3056_p1, %p3053_p0 }
   0x9   :  { %3061 = shalt.err (!%p3058_p2)
}
   0xa   :  { %s3062_s23 = scalar_lea.vmem %s29_s13, 16384  ;;  %p3067_p4 = scmp.lt.s32.totalorder %s29_s13, %s29_s13 }
   0xb   :  { %p3063_p3 = scmp.ne.s32.totalorder %s29_s13, %s3062_s23  ;;  %p3068_p5 = scmp.lt.s32.totalorder %s3062_s23, %s3062_s23 }
   0xd   :  { %p3069_p6 = por %p3068_p5, %p3067_p4 }
   0xf   :  { %p3070_p7 = pnand %p3069_p6, %p3063_p3 }
  0x11   :  { %3073 = shalt.err (!%p3070_p7)
}
  0x12   :  { %s3148_s24 = smov 512   ;;  %s3149_s25 = smov 32  }
  0x13   :  { %34 = dma.hbm_to_vmem [thread:$0]  %s4695_s1, 16384, %s29_s13, [#allocation8], %s3148_s24, %s3148_s24, %s3149_s25  }
  0x14   :  { %s3074_s30 = scalar_lea.hbm %s4694_s0, 4096 }
  0x15   :  { %p3075_p8 = scmp.ne.s32.totalorder %s4694_s0, %s3074_s30  ;;  %p3078_p9 = scmp.lt.u32.totalorder %s3074_s30, %s4694_s0 }
  0x17   :  { %p3080_p10 = pnand %p3078_p9, %p3075_p8 }
  0x19   :  { %3083 = shalt.err (!%p3080_p10)
}
  0x1a   :  { %s3084_s8 = scalar_lea.vmem %s3173_s15, 4096  ;;  %p3089_p12 = scmp.lt.s32.totalorder %s3173_s15, %s3173_s15 }
  0x1b   :  { %p3085_p11 = scmp.ne.s32.totalorder %s3173_s15, %s3084_s8  ;;  %p3090_p13 = scmp.lt.s32.totalorder %s3084_s8, %s3084_s8 }
  0x1d   :  { %p3091_p0 = por %p3090_p13, %p3089_p12 }
  0x1f   :  { %p3092_p1 = pnand %p3091_p0, %p3085_p11 }
  0x21   :  { %3095 = shalt.err (!%p3092_p1)
}
  0x22   :  { %22 = dma.hbm_to_vmem [thread:$0]  %s4694_s0, 4096, %s3173_s15, [#allocation5], %s3148_s24, %s3148_s24, %s3149_s25  }
  0x23   :  { %s3150_s10 = smov [#allocation9]   ;;  %s3096_s14 = scalar_lea.hbm %s4696_s2, 128 }
  0x24   :  { %s41_s11 = sshll.u32 %s3150_s10, 4  ;;  %p3097_p2 = scmp.ne.s32.totalorder %s4696_s2, %s3096_s14  ;;  %s42_s11 = int_to_ptr.vmem [resolvable:$true] %s41_s11 }
  0x25   :  { %p3100_p3 = scmp.lt.u32.totalorder %s3096_s14, %s4696_s2 }
  0x27   :  { %p3102_p4 = pnand %p3100_p3, %p3097_p2 }
  0x29   :  { %3105 = shalt.err (!%p3102_p4)
}
  0x2a   :  { %s3106_s20 = scalar_lea.vmem %s42_s11, 128  ;;  %p3111_p6 = scmp.lt.s32.totalorder %s42_s11, %s42_s11 }
  0x2b   :  { %p3107_p5 = scmp.ne.s32.totalorder %s42_s11, %s3106_s20  ;;  %p3112_p7 = scmp.lt.s32.totalorder %s3106_s20, %s3106_s20 }
  0x2d   :  { %p3113_p8 = por %p3112_p7, %p3111_p6 }
  0x2f   :  { %p3114_p9 = pnand %p3113_p8, %p3107_p5 }
  0x31   :  { %3117 = shalt.err (!%p3114_p9)
}
  0x32   :  { %44 = dma.hbm_to_vmem [thread:$0]  %s4696_s2, 128, %s42_s11, [#allocation8]  }
  0x33   :  { %3140 = dma.done.wait [#allocation5], 4096  }
  0x34   :  { %3141 = vsyncadd [#allocation5], 4294963200 }
  0x35   :  { %3142 = dma.done.wait [#allocation8], 16512  }
  0x36   :  { %3143 = vsyncadd [#allocation8], 4294950784  ;;  %v4698_v0 = vmov 0.0|0.0   ;;  %v81_v1 = vld [vmem:[#allocation7] sm:$0xff]  ;;  %v82_v7 = vld [vmem:[#allocation7 + $0x8] sm:$0xff]  ;;  %s3152_s2 = smov [#allocation10]  }
  0x37   :  { %881 = vmatprep.mubr.bf16.mxu0 %v4698_v0  ;;  %922 = vmatprep.mubr.bf16.mxu1 %v4698_v0  ;;  %v85_v2 = vld [vmem:[#allocation7 + $0x20] sm:$0xff]  ;;  %v86_v8 = vld [vmem:[#allocation7 + $0x28] sm:$0xff]  ;;  %s2745_s21 = sshll.u32 %s3152_s2, 4  ;;  %s2746_s21 = int_to_ptr.vmem [resolvable:$true] %s2745_s21 }
  0x38   :  { %v89_v3 = vld [vmem:[#allocation7 + $0x40] sm:$0xff]  ;;  %v3218_v4 = vcombine.high %v81_v1, %v85_v2  ;;  %v3220_v5 = vcombine.low %v81_v1, %v85_v2  ;;  %v3224_v10 = vcombine.high %v82_v7, %v86_v8  ;;  %v3226_v11 = vcombine.low %v82_v7, %v86_v8  ;;  %v90_v14 = vld [vmem:[#allocation7 + $0x48] sm:$0xff]  ;;  %s3118_s22 = scalar_lea.vmem %s2746_s21, 128  ;;  %p3123_p11 = scmp.lt.s32.totalorder %s2746_s21, %s2746_s21 }
  0x39   :  { %v93_v6 = vld [vmem:[#allocation7 + $0x60] sm:$0xff]  ;;  %v94_v15 = vld [vmem:[#allocation7 + $0x68] sm:$0xff]  ;;  %p3119_p10 = scmp.ne.s32.totalorder %s2746_s21, %s3118_s22  ;;  %p3124_p12 = scmp.lt.s32.totalorder %s3118_s22, %s3118_s22 }
  0x3a   :  { %4981 = vst [vmem:[#allocation14_spill] sm:$0xff] %v3218_v4  ;;  %4982 = vst [vmem:[#allocation15_spill] sm:$0xff] %v3220_v5  ;;  %v3222_v9 = vcombine.high %v89_v3, %v93_v6  ;;  %v97_v12 = vld [vmem:[#allocation7 + $0x80] sm:$0xff]  ;;  %849 = vmatprep.subr.bf16.mxu0 %v3218_v4  ;;  %v3230_v16 = vcombine.low %v89_v3, %v93_v6  ;;  %890 = vmatprep.subr.bf16.mxu1 %v3224_v10  ;;  %v98_v18 = vld [vmem:[#allocation7 + $0x88] sm:$0xff] }
  0x3b   :  { %4984 = vst [vmem:[#allocation17_spill] sm:$0xff] %v3224_v10  ;;  %4985 = vst [vmem:[#allocation18_spill] sm:$0xff] %v3226_v11  ;;  %v101_v13 = vld [vmem:[#allocation7 + $0xa0] sm:$0xff]  ;;  %850 = vmatpush1.bf16.msra.mxu0 %v3220_v5  ;;  %v3233_v17 = vcombine.high %v90_v14, %v94_v15  ;;  %v102_v19 = vld [vmem:[#allocation7 + $0xa8] sm:$0xff]  ;;  %891 = vmatpush1.bf16.msra.mxu1 %v3226_v11  ;;  %v3239_v21 = vcombine.low %v90_v14, %v94_v15  ;;  %p3125_p13 = por %p3124_p12, %p3123_p11 }
  0x3c   :  { %4983 = vst [vmem:[#allocation16_spill] sm:$0xff] %v3222_v9  ;;  %4986 = vst [vmem:[#allocation19_spill] sm:$0xff] %v3230_v16  ;;  %851 = vmatprep.subr.bf16.mxu0 %v3222_v9  ;;  %v3237_v20 = vcombine.high %v97_v12, %v101_v13  ;;  %v105_v22 = vld [vmem:[#allocation7 + $0xc0] sm:$0xff]  ;;  %v3242_v24 = vcombine.high %v98_v18, %v102_v19  ;;  %v106_v25 = vld [vmem:[#allocation7 + $0xc8] sm:$0xff]  ;;  %v3245_v27 = vcombine.low %v97_v12, %v101_v13 }
  0x3d   :  { %4987 = vst [vmem:[#allocation20_spill] sm:$0xff] %v3233_v17  ;;  %4989 = vst [vmem:[#allocation22_spill] sm:$0xff] %v3239_v21  ;;  %892 = vmatprep.subr.bf16.mxu1 %v3233_v17  ;;  %v109_v23 = vld [vmem:[#allocation7 + $0xe0] sm:$0xff]  ;;  %v110_v26 = vld [vmem:[#allocation7 + $0xe8] sm:$0xff]  ;;  %v3251_v29 = vcombine.low %v98_v18, %v102_v19  ;;  %p3126_p0 = pnand %p3125_p13, %p3119_p10 }
  0x3e   :  { %4988 = vst [vmem:[#allocation21_spill] sm:$0xff] %v3237_v20  ;;  %4990 = vst [vmem:[#allocation23_spill] sm:$0xff] %v3242_v24  ;;  %v3249_v28 = vcombine.high %v105_v22, %v109_v23  ;;  %v113_v30 = vld [vmem:[#allocation7 + $0x100] sm:$0xff]  ;;  %v3254_v32 = vcombine.high %v106_v25, %v110_v26  ;;  %v114_v33 = vld [vmem:[#allocation7 + $0x108] sm:$0xff]  ;;  %v3257_v35 = vcombine.low %v105_v22, %v109_v23 }
  0x3f   :  { %852 = vmatpush1.bf16.msra.mxu0 %v3230_v16  ;;  %4991 = vst [vmem:[#allocation24_spill] sm:$0xff] %v3245_v27  ;;  %893 = vmatpush1.bf16.msra.mxu1 %v3239_v21  ;;  %4993 = vst [vmem:[#allocation26_spill] sm:$0xff] %v3251_v29  ;;  %v117_v31 = vld [vmem:[#allocation7 + $0x120] sm:$0xff]  ;;  %v118_v34 = vld [vmem:[#allocation7 + $0x128] sm:$0xff]  ;;  %v3263_v37 = vcombine.low %v106_v25, %v110_v26 }
  0x40   :  { %853 = vmatprep.subr.bf16.mxu0 %v3237_v20  ;;  %4992 = vst [vmem:[#allocation25_spill] sm:$0xff] %v3249_v28  ;;  %894 = vmatprep.subr.bf16.mxu1 %v3242_v24  ;;  %4994 = vst [vmem:[#allocation27_spill] sm:$0xff] %v3254_v32  ;;  %v3261_v36 = vcombine.high %v113_v30, %v117_v31  ;;  %v121_v38 = vld [vmem:[#allocation7 + $0x140] sm:$0xff]  ;;  %v3266_v40 = vcombine.high %v114_v33, %v118_v34  ;;  %v122_v41 = vld [vmem:[#allocation7 + $0x148] sm:$0xff] }
  0x41   :  { %4995 = vst [vmem:[#allocation28_spill] sm:$0xff] %v3257_v35  ;;  %4997 = vst [vmem:[#allocation30_spill] sm:$0xff] %v3263_v37  ;;  %v125_v39 = vld [vmem:[#allocation7 + $0x160] sm:$0xff]  ;;  %v126_v42 = vld [vmem:[#allocation7 + $0x168] sm:$0xff]  ;;  %v3269_v43 = vcombine.low %v113_v30, %v117_v31  ;;  %v3275_v45 = vcombine.low %v114_v33, %v118_v34 }
  0x42   :  { %4996 = vst [vmem:[#allocation29_spill] sm:$0xff] %v3261_v36  ;;  %4998 = vst [vmem:[#allocation31_spill] sm:$0xff] %v3266_v40  ;;  %v3273_v44 = vcombine.high %v121_v38, %v125_v39  ;;  %v129_v46 = vld [vmem:[#allocation7 + $0x180] sm:$0xff]  ;;  %v3278_v48 = vcombine.high %v122_v41, %v126_v42  ;;  %v130_v49 = vld [vmem:[#allocation7 + $0x188] sm:$0xff]  ;;  %v3281_v51 = vcombine.low %v121_v38, %v125_v39 }
  0x43   :  { %854 = vmatpush1.bf16.msra.mxu0 %v3245_v27  ;;  %895 = vmatpush1.bf16.msra.mxu1 %v3251_v29  ;;  %4999 = vst [vmem:[#allocation32_spill] sm:$0xff] %v3269_v43  ;;  %5001 = vst [vmem:[#allocation34_spill] sm:$0xff] %v3275_v45  ;;  %v133_v47 = vld [vmem:[#allocation7 + $0x1a0] sm:$0xff]  ;;  %v134_v50 = vld [vmem:[#allocation7 + $0x1a8] sm:$0xff]  ;;  %v3287_v53 = vcombine.low %v122_v41, %v126_v42 }
  0x44   :  { %855 = vmatprep.subr.bf16.mxu0 %v3249_v28  ;;  %896 = vmatprep.subr.bf16.mxu1 %v3254_v32  ;;  %5000 = vst [vmem:[#allocation33_spill] sm:$0xff] %v3273_v44  ;;  %5002 = vst [vmem:[#allocation35_spill] sm:$0xff] %v3278_v48  ;;  %v3285_v52 = vcombine.high %v129_v46, %v133_v47  ;;  %v137_v54 = vld [vmem:[#allocation7 + $0x1c0] sm:$0xff]  ;;  %v3290_v56 = vcombine.high %v130_v49, %v134_v50  ;;  %v138_v57 = vld [vmem:[#allocation7 + $0x1c8] sm:$0xff] }
  0x45   :  { %5003 = vst [vmem:[#allocation36_spill] sm:$0xff] %v3281_v51  ;;  %5005 = vst [vmem:[#allocation38_spill] sm:$0xff] %v3287_v53  ;;  %v141_v55 = vld [vmem:[#allocation7 + $0x1e0] sm:$0xff]  ;;  %v142_v58 = vld [vmem:[#allocation7 + $0x1e8] sm:$0xff]  ;;  %v3293_v59 = vcombine.low %v129_v46, %v133_v47  ;;  %v3299_v61 = vcombine.low %v130_v49, %v134_v50 }
  0x46   :  { %5004 = vst [vmem:[#allocation37_spill] sm:$0xff] %v3285_v52  ;;  %5006 = vst [vmem:[#allocation39_spill] sm:$0xff] %v3290_v56  ;;  %v3297_v60 = vcombine.high %v137_v54, %v141_v55  ;;  %v145_v62 = vld [vmem:[#allocation7 + $0x200] sm:$0xff]  ;;  %v3302_v1 = vcombine.high %v138_v57, %v142_v58  ;;  %v146_v2 = vld [vmem:[#allocation7 + $0x208] sm:$0xff]  ;;  %v3305_v6 = vcombine.low %v137_v54, %v141_v55 }
  0x47   :  { %856 = vmatpush1.bf16.msra.mxu0 %v3257_v35  ;;  %897 = vmatpush1.bf16.msra.mxu1 %v3263_v37  ;;  %5007 = vst [vmem:[#allocation40_spill] sm:$0xff] %v3293_v59  ;;  %5009 = vst [vmem:[#allocation42_spill] sm:$0xff] %v3299_v61  ;;  %v149_v63 = vld [vmem:[#allocation7 + $0x220] sm:$0xff]  ;;  %v150_v3 = vld [vmem:[#allocation7 + $0x228] sm:$0xff]  ;;  %v3311_v8 = vcombine.low %v138_v57, %v142_v58 }
  0x48   :  { %857 = vmatprep.subr.bf16.mxu0 %v3261_v36  ;;  %898 = vmatprep.subr.bf16.mxu1 %v3266_v40  ;;  %5008 = vst [vmem:[#allocation41_spill] sm:$0xff] %v3297_v60  ;;  %5010 = vst [vmem:[#allocation43_spill] sm:$0xff] %v3302_v1  ;;  %v3309_v7 = vcombine.high %v145_v62, %v149_v63  ;;  %v153_v12 = vld [vmem:[#allocation7 + $0x240] sm:$0xff]  ;;  %v3314_v14 = vcombine.high %v146_v2, %v150_v3  ;;  %v154_v15 = vld [vmem:[#allocation7 + $0x248] sm:$0xff] }
  0x49   :  { %5011 = vst [vmem:[#allocation44_spill] sm:$0xff] %v3305_v6  ;;  %5013 = vst [vmem:[#allocation46_spill] sm:$0xff] %v3311_v8  ;;  %v157_v13 = vld [vmem:[#allocation7 + $0x260] sm:$0xff]  ;;  %v158_v18 = vld [vmem:[#allocation7 + $0x268] sm:$0xff]  ;;  %v3317_v19 = vcombine.low %v145_v62, %v149_v63  ;;  %v3323_v23 = vcombine.low %v146_v2, %v150_v3 }
  0x4a   :  { %5012 = vst [vmem:[#allocation45_spill] sm:$0xff] %v3309_v7  ;;  %5014 = vst [vmem:[#allocation47_spill] sm:$0xff] %v3314_v14  ;;  %v3321_v22 = vcombine.high %v153_v12, %v157_v13  ;;  %v161_v25 = vld [vmem:[#allocation7 + $0x280] sm:$0xff]  ;;  %v3326_v30 = vcombine.high %v154_v15, %v158_v18  ;;  %v162_v31 = vld [vmem:[#allocation7 + $0x288] sm:$0xff]  ;;  %v3329_v34 = vcombine.low %v153_v12, %v157_v13 }
  0x4b   :  { %858 = vmatpush1.bf16.msra.mxu0 %v3269_v43  ;;  %899 = vmatpush1.bf16.msra.mxu1 %v3275_v45  ;;  %5015 = vst [vmem:[#allocation48_spill] sm:$0xff] %v3317_v19  ;;  %5017 = vst [vmem:[#allocation50_spill] sm:$0xff] %v3323_v23  ;;  %v165_v26 = vld [vmem:[#allocation7 + $0x2a0] sm:$0xff]  ;;  %v166_v33 = vld [vmem:[#allocation7 + $0x2a8] sm:$0xff]  ;;  %v3335_v39 = vcombine.low %v154_v15, %v158_v18 }
  0x4c   :  { %859 = vmatprep.subr.bf16.mxu0 %v3273_v44  ;;  %900 = vmatprep.subr.bf16.mxu1 %v3278_v48  ;;  %5016 = vst [vmem:[#allocation49_spill] sm:$0xff] %v3321_v22  ;;  %5018 = vst [vmem:[#allocation51_spill] sm:$0xff] %v3326_v30  ;;  %v3333_v38 = vcombine.high %v161_v25, %v165_v26  ;;  %v169_v41 = vld [vmem:[#allocation7 + $0x2c0] sm:$0xff]  ;;  %v3338_v46 = vcombine.high %v162_v31, %v166_v33  ;;  %v170_v47 = vld [vmem:[#allocation7 + $0x2c8] sm:$0xff] }
  0x4d   :  { %5019 = vst [vmem:[#allocation52_spill] sm:$0xff] %v3329_v34  ;;  %5021 = vst [vmem:[#allocation54_spill] sm:$0xff] %v3335_v39  ;;  %v173_v42 = vld [vmem:[#allocation7 + $0x2e0] sm:$0xff]  ;;  %v174_v49 = vld [vmem:[#allocation7 + $0x2e8] sm:$0xff]  ;;  %v3341_v50 = vcombine.low %v161_v25, %v165_v26  ;;  %v3347_v55 = vcombine.low %v162_v31, %v166_v33 }
  0x4e   :  { %5020 = vst [vmem:[#allocation53_spill] sm:$0xff] %v3333_v38  ;;  %5022 = vst [vmem:[#allocation55_spill] sm:$0xff] %v3338_v46  ;;  %v3345_v54 = vcombine.high %v169_v41, %v173_v42  ;;  %v177_v57 = vld [vmem:[#allocation7 + $0x300] sm:$0xff]  ;;  %v3350_v62 = vcombine.high %v170_v47, %v174_v49  ;;  %v178_v63 = vld [vmem:[#allocation7 + $0x308] sm:$0xff]  ;;  %v3353_v3 = vcombine.low %v169_v41, %v173_v42 }
  0x4f   :  { %860 = vmatpush1.bf16.msra.mxu0 %v3281_v51  ;;  %901 = vmatpush1.bf16.msra.mxu1 %v3287_v53  ;;  %5023 = vst [vmem:[#allocation56_spill] sm:$0xff] %v3341_v50  ;;  %5025 = vst [vmem:[#allocation58_spill] sm:$0xff] %v3347_v55  ;;  %v181_v58 = vld [vmem:[#allocation7 + $0x320] sm:$0xff]  ;;  %v182_v2 = vld [vmem:[#allocation7 + $0x328] sm:$0xff]  ;;  %v3359_v13 = vcombine.low %v170_v47, %v174_v49 }
  0x50   :  { %861 = vmatprep.subr.bf16.mxu0 %v3285_v52  ;;  %902 = vmatprep.subr.bf16.mxu1 %v3290_v56  ;;  %5024 = vst [vmem:[#allocation57_spill] sm:$0xff] %v3345_v54  ;;  %5026 = vst [vmem:[#allocation59_spill] sm:$0xff] %v3350_v62  ;;  %v3357_v12 = vcombine.high %v177_v57, %v181_v58  ;;  %v185_v15 = vld [vmem:[#allocation7 + $0x340] sm:$0xff]  ;;  %v3362_v25 = vcombine.high %v178_v63, %v182_v2  ;;  %v186_v26 = vld [vmem:[#allocation7 + $0x348] sm:$0xff] }
  0x51   :  { %5027 = vst [vmem:[#allocation60_spill] sm:$0xff] %v3353_v3  ;;  %5029 = vst [vmem:[#allocation62_spill] sm:$0xff] %v3359_v13  ;;  %v189_v18 = vld [vmem:[#allocation7 + $0x360] sm:$0xff]  ;;  %v190_v31 = vld [vmem:[#allocation7 + $0x368] sm:$0xff]  ;;  %v3365_v33 = vcombine.low %v177_v57, %v181_v58  ;;  %v3371_v42 = vcombine.low %v178_v63, %v182_v2 }
  0x52   :  { %5028 = vst [vmem:[#allocation61_spill] sm:$0xff] %v3357_v12  ;;  %5030 = vst [vmem:[#allocation63_spill] sm:$0xff] %v3362_v25  ;;  %v3369_v41 = vcombine.high %v185_v15, %v189_v18  ;;  %v193_v47 = vld [vmem:[#allocation7 + $0x380] sm:$0xff]  ;;  %v3374_v0 = vcombine.high %v186_v26, %v190_v31  ;;  %v3377_v57 = vcombine.low %v185_v15, %v189_v18 }
  0x53   :  { %862 = vmatpush1.bf16.msra.mxu0 %v3293_v59  ;;  %903 = vmatpush1.bf16.msra.mxu1 %v3299_v61  ;;  %5031 = vst [vmem:[#allocation64_spill] sm:$0xff] %v3365_v33  ;;  %5033 = vst [vmem:[#allocation66_spill] sm:$0xff] %v3371_v42  ;;  %v197_v49 = vld [vmem:[#allocation7 + $0x3a0] sm:$0xff]  ;;  %v3383_v63 = vcombine.low %v186_v26, %v190_v31  ;;  %v83_v31 = vld [vmem:[#allocation7 + $0x10] sm:$0xff] }
  0x54   :  { %863 = vmatprep.subr.bf16.mxu0 %v3297_v60  ;;  %904 = vmatprep.subr.bf16.mxu1 %v3302_v1  ;;  %5032 = vst [vmem:[#allocation65_spill] sm:$0xff] %v3369_v41  ;;  %5034 = vst [vmem:[#allocation67_spill] sm:$0xff] %v3374_v0  ;;  %v3381_v58 = vcombine.high %v193_v47, %v197_v49  ;;  %v201_v2 = vld [vmem:[#allocation7 + $0x3c0] sm:$0xff]  ;;  %v3389_v15 = vcombine.low %v193_v47, %v197_v49 }
  0x55   :  { %5035 = vst [vmem:[#allocation68_spill] sm:$0xff] %v3377_v57  ;;  %5037 = vst [vmem:[#allocation70_spill] sm:$0xff] %v3383_v63 }
  0x56   :  { %5036 = vst [vmem:[#allocation69_spill] sm:$0xff] %v3381_v58  ;;  %5039 = vst [vmem:[#allocation72_spill] sm:$0xff] %v3389_v15 }
  0x57   :  { %864 = vmatpush1.bf16.msra.mxu0 %v3305_v6  ;;  %905 = vmatpush1.bf16.msra.mxu1 %v3311_v8 }
  0x58   :  { %865 = vmatprep.subr.bf16.mxu0 %v3309_v7  ;;  %906 = vmatprep.subr.bf16.mxu1 %v3314_v14 }
  0x5b   :  { %866 = vmatpush1.bf16.msra.mxu0 %v3317_v19  ;;  %907 = vmatpush1.bf16.msra.mxu1 %v3323_v23 }
  0x5c   :  { %867 = vmatprep.subr.bf16.mxu0 %v3321_v22  ;;  %908 = vmatprep.subr.bf16.mxu1 %v3326_v30 }
  0x5f   :  { %868 = vmatpush1.bf16.msra.mxu0 %v3329_v34  ;;  %909 = vmatpush1.bf16.msra.mxu1 %v3335_v39 }
  0x60   :  { %869 = vmatprep.subr.bf16.mxu0 %v3333_v38  ;;  %910 = vmatprep.subr.bf16.mxu1 %v3338_v46 }
  0x63   :  { %870 = vmatpush1.bf16.msra.mxu0 %v3341_v50  ;;  %911 = vmatpush1.bf16.msra.mxu1 %v3347_v55  ;;  %v120_v55 = vld [vmem:[#allocation7 + $0x138] sm:$0xff] }
  0x64   :  { %871 = vmatprep.subr.bf16.mxu0 %v3345_v54  ;;  %912 = vmatprep.subr.bf16.mxu1 %v3350_v62  ;;  %v194_v62 = vld [vmem:[#allocation7 + $0x388] sm:$0xff] }
  0x65   :  { %v198_v54 = vld [vmem:[#allocation7 + $0x3a8] sm:$0xff] }
  0x66   :  { %v3395_v26 = vcombine.low %v194_v62, %v198_v54 }
  0x67   :  { %872 = vmatpush1.bf16.msra.mxu0 %v3353_v3  ;;  %913 = vmatpush1.bf16.msra.mxu1 %v3359_v13  ;;  %v202_v13 = vld [vmem:[#allocation7 + $0x3c8] sm:$0xff] }
  0x68   :  { %873 = vmatprep.subr.bf16.mxu0 %v3357_v12  ;;  %914 = vmatprep.subr.bf16.mxu1 %v3362_v25  ;;  %v205_v25 = vld [vmem:[#allocation7 + $0x3e0] sm:$0xff]  ;;  %v3386_v12 = vcombine.high %v194_v62, %v198_v54  ;;  %v206_v3 = vld [vmem:[#allocation7 + $0x3e8] sm:$0xff]  ;;  %5041 = vst [vmem:[#allocation74_spill] sm:$0xff] %v3395_v26  ;;  %v91_v62 = vld [vmem:[#allocation7 + $0x50] sm:$0xff] }
  0x69   :  { %v3393_v18 = vcombine.high %v201_v2, %v205_v25  ;;  %v3401_v47 = vcombine.low %v201_v2, %v205_v25  ;;  %v3407_v54 = vcombine.low %v202_v13, %v206_v3 }
  0x6a   :  { %5038 = vst [vmem:[#allocation71_spill] sm:$0xff] %v3386_v12 }
  0x6b   :  { %874 = vmatpush1.bf16.msra.mxu0 %v3365_v33  ;;  %915 = vmatpush1.bf16.msra.mxu1 %v3371_v42  ;;  %5040 = vst [vmem:[#allocation73_spill] sm:$0xff] %v3393_v18  ;;  %v84_v42 = vld [vmem:[#allocation7 + $0x18] sm:$0xff]  ;;  %5043 = vst [vmem:[#allocation76_spill] sm:$0xff] %v3401_v47 }
  0x6c   :  { %875 = vmatprep.subr.bf16.mxu0 %v3369_v41  ;;  %916 = vmatprep.subr.bf16.mxu1 %v3374_v0  ;;  %v87_v0 = vld [vmem:[#allocation7 + $0x30] sm:$0xff]  ;;  %v3398_v41 = vcombine.high %v202_v13, %v206_v3  ;;  %v88_v33 = vld [vmem:[#allocation7 + $0x38] sm:$0xff]  ;;  %5045 = vst [vmem:[#allocation78_spill] sm:$0xff] %v3407_v54 }
  0x6d   :  { %v3405_v49 = vcombine.high %v83_v31, %v87_v0  ;;  %v3413_v25 = vcombine.low %v83_v31, %v87_v0  ;;  %v3419_v3 = vcombine.low %v84_v42, %v88_v33  ;;  %v99_v13 = vld [vmem:[#allocation7 + $0x90] sm:$0xff] }
  0x6e   :  { %5042 = vst [vmem:[#allocation75_spill] sm:$0xff] %v3398_v41  ;;  %v107_v31 = vld [vmem:[#allocation7 + $0xd0] sm:$0xff] }
  0x6f   :  { %876 = vmatpush1.bf16.msra.mxu0 %v3377_v57  ;;  %917 = vmatpush1.bf16.msra.mxu1 %v3383_v63  ;;  %5044 = vst [vmem:[#allocation77_spill] sm:$0xff] %v3405_v49  ;;  %v92_v63 = vld [vmem:[#allocation7 + $0x58] sm:$0xff]  ;;  %5047 = vst [vmem:[#allocation80_spill] sm:$0xff] %v3413_v25 }
  0x70   :  { %877 = vmatprep.subr.bf16.mxu0 %v3381_v58  ;;  %918 = vmatprep.subr.bf16.mxu1 %v3386_v12  ;;  %v95_v12 = vld [vmem:[#allocation7 + $0x70] sm:$0xff]  ;;  %v3410_v58 = vcombine.high %v84_v42, %v88_v33  ;;  %v96_v57 = vld [vmem:[#allocation7 + $0x78] sm:$0xff]  ;;  %5049 = vst [vmem:[#allocation82_spill] sm:$0xff] %v3419_v3 }
  0x71   :  { %v3417_v2 = vcombine.high %v91_v62, %v95_v12  ;;  %v3426_v0 = vcombine.low %v91_v62, %v95_v12  ;;  %v3433_v42 = vcombine.low %v92_v63, %v96_v57  ;;  %v108_v12 = vld [vmem:[#allocation7 + $0xd8] sm:$0xff] }
  0x72   :  { %5046 = vst [vmem:[#allocation79_spill] sm:$0xff] %v3410_v58  ;;  %v112_v62 = vld [vmem:[#allocation7 + $0xf8] sm:$0xff] }
  0x73   :  { %878 = vmatpush1.bf16.msra.mxu0 %v3389_v15  ;;  %919 = vmatpush1.bf16.msra.mxu1 %v3395_v26  ;;  %5048 = vst [vmem:[#allocation81_spill] sm:$0xff] %v3417_v2  ;;  %v5051_v26 = vmov 0.0|0.0   ;;  %v100_v15 = vld [vmem:[#allocation7 + $0x98] sm:$0xff]  ;;  %5052 = vst [vmem:[#allocation84_spill] sm:$0xff] %v3426_v0 }
  0x74   :  { %879 = vmatprep.subr.bf16.mxu0 %v3393_v18  ;;  %920 = vmatprep.subr.bf16.mxu1 %v3398_v41  ;;  %v103_v41 = vld [vmem:[#allocation7 + $0xb0] sm:$0xff]  ;;  %v3422_v18 = vcombine.high %v92_v63, %v96_v57  ;;  %5054 = vst [vmem:[#allocation86_spill] sm:$0xff] %v3433_v42 }
  0x75   :  { %v3431_v33 = vcombine.high %v99_v13, %v103_v41 }
  0x76   :  { %5050 = vst [vmem:[#allocation83_spill] sm:$0xff] %v3422_v18 }
  0x77   :  { %880 = vmatpush1.bf16.msra.mxu0 %v3401_v47  ;;  %921 = vmatpush1.bf16.msra.mxu1 %v3407_v54  ;;  %v104_v47 = vld [vmem:[#allocation7 + $0xb8] sm:$0xff]  ;;  %5053 = vst [vmem:[#allocation85_spill] sm:$0xff] %v3431_v33 }
  0x78   :  { %931 = vmatprep.subr.bf16.mxu0 %v3405_v49  ;;  %972 = vmatprep.subr.bf16.mxu1 %v3410_v58  ;;  %v111_v58 = vld [vmem:[#allocation7 + $0xf0] sm:$0xff]  ;;  %v3436_v49 = vcombine.high %v100_v15, %v104_v47  ;;  %v3447_v63 = vcombine.low %v100_v15, %v104_v47  ;;  %v116_v54 = vld [vmem:[#allocation7 + $0x118] sm:$0xff]  ;;  %v3459_v15 = vcombine.low %v108_v12, %v112_v62 }
  0x79   :  { %v3445_v57 = vcombine.high %v107_v31, %v111_v58  ;;  %v123_v47 = vld [vmem:[#allocation7 + $0x150] sm:$0xff] }
  0x7a   :  { %882 = vmatmul.mubr.bf16.vlgmr.msra.gmra.mrb[0].mxu0 %v5051_v26  ;;  %923 = vmatmul.mubr.bf16.vlgmr.msra.gmra.mrb[0].mxu1 %v5051_v26  ;;  %5055 = vst [vmem:[#allocation87_spill] sm:$0xff] %v3436_v49  ;;  %5058 = vst [vmem:[#allocation90_spill] sm:$0xff] %v3447_v63 }
  0x7b   :  { %932 = vmatpush1.bf16.msra.mxu0 %v3413_v25  ;;  %973 = vmatpush1.bf16.msra.mxu1 %v3419_v3  ;;  %5057 = vst [vmem:[#allocation89_spill] sm:$0xff] %v3445_v57  ;;  %v119_v3 = vld [vmem:[#allocation7 + $0x130] sm:$0xff]  ;;  %v3450_v25 = vcombine.high %v108_v12, %v112_v62  ;;  %5062 = vst [vmem:[#allocation94_spill] sm:$0xff] %v3459_v15  ;;  %v3471_v12 = vcombine.low %v116_v54, %v120_v55 }
  0x7c   :  { %933 = vmatprep.subr.bf16.mxu0 %v3417_v2  ;;  %974 = vmatprep.subr.bf16.mxu1 %v3422_v18  ;;  %v3441_v2 = vcombine.low %v99_v13, %v103_v41  ;;  %v115_v18 = vld [vmem:[#allocation7 + $0x110] sm:$0xff]  ;;  %v3453_v41 = vcombine.low %v107_v31, %v111_v58 }
  0x7d   :  { %963 = vmatprep.mubr.bf16.mxu0 %v5051_v26  ;;  %1004 = vmatprep.mubr.bf16.mxu1 %v5051_v26  ;;  %5059 = vst [vmem:[#allocation91_spill] sm:$0xff] %v3450_v25  ;;  %v3457_v13 = vcombine.high %v115_v18, %v119_v3  ;;  %v3465_v58 = vcombine.low %v115_v18, %v119_v3  ;;  %5066 = vst [vmem:[#allocation98_spill] sm:$0xff] %v3471_v12  ;;  %v131_v62 = vld [vmem:[#allocation7 + $0x190] sm:$0xff] }
  0x7e   :  { %5056 = vst [vmem:[#allocation88_spill] sm:$0xff] %v3441_v2  ;;  %5060 = vst [vmem:[#allocation92_spill] sm:$0xff] %v3453_v41 }
  0x7f   :  { %934 = vmatpush1.bf16.msra.mxu0 %v3426_v0  ;;  %975 = vmatpush1.bf16.msra.mxu1 %v3433_v42  ;;  %5061 = vst [vmem:[#allocation93_spill] sm:$0xff] %v3457_v13  ;;  %v124_v42 = vld [vmem:[#allocation7 + $0x158] sm:$0xff]  ;;  %5064 = vst [vmem:[#allocation96_spill] sm:$0xff] %v3465_v58 }
  0x80   :  { %935 = vmatprep.subr.bf16.mxu0 %v3431_v33  ;;  %976 = vmatprep.subr.bf16.mxu1 %v3436_v49  ;;  %v127_v49 = vld [vmem:[#allocation7 + $0x170] sm:$0xff]  ;;  %v3462_v33 = vcombine.high %v116_v54, %v120_v55  ;;  %v128_v0 = vld [vmem:[#allocation7 + $0x178] sm:$0xff] }
  0x81   :  { %v3469_v31 = vcombine.high %v123_v47, %v127_v49  ;;  %v3477_v18 = vcombine.low %v123_v47, %v127_v49  ;;  %v3483_v55 = vcombine.low %v124_v42, %v128_v0  ;;  %v139_v54 = vld [vmem:[#allocation7 + $0x1d0] sm:$0xff] }
  0x82   :  { %5063 = vst [vmem:[#allocation95_spill] sm:$0xff] %v3462_v33 }
  0x83   :  { %936 = vmatpush1.bf16.msra.mxu0 %v3441_v2  ;;  %977 = vmatpush1.bf16.msra.mxu1 %v3447_v63  ;;  %5065 = vst [vmem:[#allocation97_spill] sm:$0xff] %v3469_v31  ;;  %v132_v63 = vld [vmem:[#allocation7 + $0x198] sm:$0xff]  ;;  %5068 = vst [vmem:[#allocation100_spill] sm:$0xff] %v3477_v18 }
  0x84   :  { %937 = vmatprep.subr.bf16.mxu0 %v3445_v57  ;;  %978 = vmatprep.subr.bf16.mxu1 %v3450_v25  ;;  %v135_v25 = vld [vmem:[#allocation7 + $0x1b0] sm:$0xff]  ;;  %v3474_v57 = vcombine.high %v124_v42, %v128_v0  ;;  %v136_v2 = vld [vmem:[#allocation7 + $0x1b8] sm:$0xff]  ;;  %5070 = vst [vmem:[#allocation102_spill] sm:$0xff] %v3483_v55 }
  0x85   :  { %v3481_v3 = vcombine.high %v131_v62, %v135_v25  ;;  %v3489_v49 = vcombine.low %v131_v62, %v135_v25  ;;  %v3495_v0 = vcombine.low %v132_v63, %v136_v2  ;;  %v147_v42 = vld [vmem:[#allocation7 + $0x210] sm:$0xff] }
  0x86   :  { %5067 = vst [vmem:[#allocation99_spill] sm:$0xff] %v3474_v57 }
  0x87   :  { %938 = vmatpush1.bf16.msra.mxu0 %v3453_v41  ;;  %979 = vmatpush1.bf16.msra.mxu1 %v3459_v15  ;;  %5069 = vst [vmem:[#allocation101_spill] sm:$0xff] %v3481_v3  ;;  %v140_v15 = vld [vmem:[#allocation7 + $0x1d8] sm:$0xff]  ;;  %5072 = vst [vmem:[#allocation104_spill] sm:$0xff] %v3489_v49 }
  0x88   :  { %939 = vmatprep.subr.bf16.mxu0 %v3457_v13  ;;  %980 = vmatprep.subr.bf16.mxu1 %v3462_v33  ;;  %v143_v33 = vld [vmem:[#allocation7 + $0x1f0] sm:$0xff]  ;;  %v3486_v13 = vcombine.high %v132_v63, %v136_v2  ;;  %v144_v41 = vld [vmem:[#allocation7 + $0x1f8] sm:$0xff]  ;;  %5074 = vst [vmem:[#allocation106_spill] sm:$0xff] %v3495_v0 }
  0x89   :  { %v3493_v47 = vcombine.high %v139_v54, %v143_v33  ;;  %v3501_v25 = vcombine.low %v139_v54, %v143_v33  ;;  %v3507_v2 = vcombine.low %v140_v15, %v144_v41  ;;  %v155_v63 = vld [vmem:[#allocation7 + $0x250] sm:$0xff] }
  0x8a   :  { %5071 = vst [vmem:[#allocation103_spill] sm:$0xff] %v3486_v13 }
  0x8b   :  { %940 = vmatpush1.bf16.msra.mxu0 %v3465_v58  ;;  %981 = vmatpush1.bf16.msra.mxu1 %v3471_v12  ;;  %5073 = vst [vmem:[#allocation105_spill] sm:$0xff] %v3493_v47  ;;  %v148_v12 = vld [vmem:[#allocation7 + $0x218] sm:$0xff]  ;;  %5076 = vst [vmem:[#allocation108_spill] sm:$0xff] %v3501_v25 }
  0x8c   :  { %941 = vmatprep.subr.bf16.mxu0 %v3469_v31  ;;  %982 = vmatprep.subr.bf16.mxu1 %v3474_v57  ;;  %v151_v57 = vld [vmem:[#allocation7 + $0x230] sm:$0xff]  ;;  %v3498_v31 = vcombine.high %v140_v15, %v144_v41  ;;  %v152_v58 = vld [vmem:[#allocation7 + $0x238] sm:$0xff]  ;;  %5078 = vst [vmem:[#allocation110_spill] sm:$0xff] %v3507_v2 }
  0x8d   :  { %v3505_v62 = vcombine.high %v147_v42, %v151_v57  ;;  %v3513_v33 = vcombine.low %v147_v42, %v151_v57  ;;  %v3519_v41 = vcombine.low %v148_v12, %v152_v58  ;;  %v163_v15 = vld [vmem:[#allocation7 + $0x290] sm:$0xff] }
  0x8e   :  { %5075 = vst [vmem:[#allocation107_spill] sm:$0xff] %v3498_v31 }
  0x8f   :  { %942 = vmatpush1.bf16.msra.mxu0 %v3477_v18  ;;  %983 = vmatpush1.bf16.msra.mxu1 %v3483_v55  ;;  %5077 = vst [vmem:[#allocation109_spill] sm:$0xff] %v3505_v62  ;;  %v156_v55 = vld [vmem:[#allocation7 + $0x258] sm:$0xff]  ;;  %5080 = vst [vmem:[#allocation112_spill] sm:$0xff] %v3513_v33 }
  0x90   :  { %943 = vmatprep.subr.bf16.mxu0 %v3481_v3  ;;  %984 = vmatprep.subr.bf16.mxu1 %v3486_v13  ;;  %v159_v13 = vld [vmem:[#allocation7 + $0x270] sm:$0xff]  ;;  %v3510_v3 = vcombine.high %v148_v12, %v152_v58  ;;  %v160_v18 = vld [vmem:[#allocation7 + $0x278] sm:$0xff]  ;;  %5082 = vst [vmem:[#allocation114_spill] sm:$0xff] %v3519_v41 }
  0x91   :  { %v3517_v54 = vcombine.high %v155_v63, %v159_v13  ;;  %v3525_v57 = vcombine.low %v155_v63, %v159_v13  ;;  %v3531_v58 = vcombine.low %v156_v55, %v160_v18  ;;  %v171_v12 = vld [vmem:[#allocation7 + $0x2d0] sm:$0xff] }
  0x92   :  { %5079 = vst [vmem:[#allocation111_spill] sm:$0xff] %v3510_v3 }
  0x93   :  { %944 = vmatpush1.bf16.msra.mxu0 %v3489_v49  ;;  %985 = vmatpush1.bf16.msra.mxu1 %v3495_v0  ;;  %5081 = vst [vmem:[#allocation113_spill] sm:$0xff] %v3517_v54  ;;  %v164_v0 = vld [vmem:[#allocation7 + $0x298] sm:$0xff]  ;;  %5084 = vst [vmem:[#allocation116_spill] sm:$0xff] %v3525_v57 }
  0x94   :  { %945 = vmatprep.subr.bf16.mxu0 %v3493_v47  ;;  %986 = vmatprep.subr.bf16.mxu1 %v3498_v31  ;;  %v167_v31 = vld [vmem:[#allocation7 + $0x2b0] sm:$0xff]  ;;  %v3522_v47 = vcombine.high %v156_v55, %v160_v18  ;;  %v168_v49 = vld [vmem:[#allocation7 + $0x2b8] sm:$0xff]  ;;  %5086 = vst [vmem:[#allocation118_spill] sm:$0xff] %v3531_v58 }
  0x95   :  { %v3529_v42 = vcombine.high %v163_v15, %v167_v31  ;;  %v3537_v13 = vcombine.low %v163_v15, %v167_v31  ;;  %v3543_v18 = vcombine.low %v164_v0, %v168_v49  ;;  %v179_v55 = vld [vmem:[#allocation7 + $0x310] sm:$0xff] }
  0x96   :  { %5083 = vst [vmem:[#allocation115_spill] sm:$0xff] %v3522_v47 }
  0x97   :  { %946 = vmatpush1.bf16.msra.mxu0 %v3501_v25  ;;  %987 = vmatpush1.bf16.msra.mxu1 %v3507_v2  ;;  %5085 = vst [vmem:[#allocation117_spill] sm:$0xff] %v3529_v42  ;;  %v172_v2 = vld [vmem:[#allocation7 + $0x2d8] sm:$0xff]  ;;  %5088 = vst [vmem:[#allocation120_spill] sm:$0xff] %v3537_v13 }
  0x98   :  { %947 = vmatprep.subr.bf16.mxu0 %v3505_v62  ;;  %988 = vmatprep.subr.bf16.mxu1 %v3510_v3  ;;  %v175_v3 = vld [vmem:[#allocation7 + $0x2f0] sm:$0xff]  ;;  %v3534_v62 = vcombine.high %v164_v0, %v168_v49  ;;  %v176_v25 = vld [vmem:[#allocation7 + $0x2f8] sm:$0xff]  ;;  %5090 = vst [vmem:[#allocation122_spill] sm:$0xff] %v3543_v18 }
  0x99   :  { %v3541_v63 = vcombine.high %v171_v12, %v175_v3  ;;  %v3549_v31 = vcombine.low %v171_v12, %v175_v3  ;;  %v3555_v49 = vcombine.low %v172_v2, %v176_v25  ;;  %v187_v0 = vld [vmem:[#allocation7 + $0x350] sm:$0xff] }
  0x9a   :  { %5087 = vst [vmem:[#allocation119_spill] sm:$0xff] %v3534_v62 }
  0x9b   :  { %948 = vmatpush1.bf16.msra.mxu0 %v3513_v33  ;;  %989 = vmatpush1.bf16.msra.mxu1 %v3519_v41  ;;  %5089 = vst [vmem:[#allocation121_spill] sm:$0xff] %v3541_v63  ;;  %v180_v41 = vld [vmem:[#allocation7 + $0x318] sm:$0xff]  ;;  %5092 = vst [vmem:[#allocation124_spill] sm:$0xff] %v3549_v31 }
  0x9c   :  { %949 = vmatprep.subr.bf16.mxu0 %v3517_v54  ;;  %990 = vmatprep.subr.bf16.mxu1 %v3522_v47  ;;  %v183_v47 = vld [vmem:[#allocation7 + $0x330] sm:$0xff]  ;;  %v3546_v54 = vcombine.high %v172_v2, %v176_v25  ;;  %v184_v33 = vld [vmem:[#allocation7 + $0x338] sm:$0xff]  ;;  %5094 = vst [vmem:[#allocation126_spill] sm:$0xff] %v3555_v49 }
  0x9d   :  { %v3553_v15 = vcombine.high %v179_v55, %v183_v47  ;;  %v3561_v3 = vcombine.low %v179_v55, %v183_v47  ;;  %v3567_v25 = vcombine.low %v180_v41, %v184_v33  ;;  %v195_v2 = vld [vmem:[#allocation7 + $0x390] sm:$0xff] }
  0x9e   :  { %5091 = vst [vmem:[#allocation123_spill] sm:$0xff] %v3546_v54 }
  0x9f   :  { %950 = vmatpush1.bf16.msra.mxu0 %v3525_v57  ;;  %991 = vmatpush1.bf16.msra.mxu1 %v3531_v58  ;;  %5093 = vst [vmem:[#allocation125_spill] sm:$0xff] %v3553_v15  ;;  %v188_v58 = vld [vmem:[#allocation7 + $0x358] sm:$0xff]  ;;  %5096 = vst [vmem:[#allocation128_spill] sm:$0xff] %v3561_v3 }
  0xa0   :  { %951 = vmatprep.subr.bf16.mxu0 %v3529_v42  ;;  %992 = vmatprep.subr.bf16.mxu1 %v3534_v62  ;;  %v191_v62 = vld [vmem:[#allocation7 + $0x370] sm:$0xff]  ;;  %v3558_v42 = vcombine.high %v180_v41, %v184_v33  ;;  %v192_v57 = vld [vmem:[#allocation7 + $0x378] sm:$0xff]  ;;  %5098 = vst [vmem:[#allocation130_spill] sm:$0xff] %v3567_v25 }
  0xa1   :  { %v3565_v12 = vcombine.high %v187_v0, %v191_v62  ;;  %v3573_v47 = vcombine.low %v187_v0, %v191_v62  ;;  %v3579_v33 = vcombine.low %v188_v58, %v192_v57  ;;  %v203_v41 = vld [vmem:[#allocation7 + $0x3d0] sm:$0xff] }
  0xa2   :  { %5095 = vst [vmem:[#allocation127_spill] sm:$0xff] %v3558_v42 }
  0xa3   :  { %952 = vmatpush1.bf16.msra.mxu0 %v3537_v13  ;;  %993 = vmatpush1.bf16.msra.mxu1 %v3543_v18  ;;  %5097 = vst [vmem:[#allocation129_spill] sm:$0xff] %v3565_v12  ;;  %v196_v18 = vld [vmem:[#allocation7 + $0x398] sm:$0xff]  ;;  %5100 = vst [vmem:[#allocation132_spill] sm:$0xff] %v3573_v47 }
  0xa4   :  { %953 = vmatprep.subr.bf16.mxu0 %v3541_v63  ;;  %994 = vmatprep.subr.bf16.mxu1 %v3546_v54  ;;  %v199_v54 = vld [vmem:[#allocation7 + $0x3b0] sm:$0xff]  ;;  %v3570_v63 = vcombine.high %v188_v58, %v192_v57  ;;  %v200_v13 = vld [vmem:[#allocation7 + $0x3b8] sm:$0xff]  ;;  %5102 = vst [vmem:[#allocation134_spill] sm:$0xff] %v3579_v33 }
  0xa5   :  { %v3577_v55 = vcombine.high %v195_v2, %v199_v54  ;;  %v3585_v62 = vcombine.low %v195_v2, %v199_v54  ;;  %v3591_v57 = vcombine.low %v196_v18, %v200_v13  ;;  %v5116_v2 = vld [vmem:[#allocation63_spill] sm:$0xff] }
  0xa6   :  { %5099 = vst [vmem:[#allocation131_spill] sm:$0xff] %v3570_v63 }
  0xa7   :  { %954 = vmatpush1.bf16.msra.mxu0 %v3549_v31  ;;  %995 = vmatpush1.bf16.msra.mxu1 %v3555_v49  ;;  %5101 = vst [vmem:[#allocation133_spill] sm:$0xff] %v3577_v55  ;;  %v204_v49 = vld [vmem:[#allocation7 + $0x3d8] sm:$0xff]  ;;  %5104 = vst [vmem:[#allocation136_spill] sm:$0xff] %v3585_v62 }
  0xa8   :  { %955 = vmatprep.subr.bf16.mxu0 %v3553_v15  ;;  %996 = vmatprep.subr.bf16.mxu1 %v3558_v42  ;;  %v207_v42 = vld [vmem:[#allocation7 + $0x3f0] sm:$0xff]  ;;  %v3582_v15 = vcombine.high %v196_v18, %v200_v13  ;;  %v208_v31 = vld [vmem:[#allocation7 + $0x3f8] sm:$0xff]  ;;  %5106 = vst [vmem:[#allocation138_spill] sm:$0xff] %v3591_v57  ;;  %v5113_v18 = vld [vmem:[#allocation60_spill] sm:$0xff] }
  0xa9   :  { %v3589_v0 = vcombine.high %v203_v41, %v207_v42  ;;  %v3594_v58 = vcombine.high %v204_v49, %v208_v31  ;;  %v3601_v54 = vcombine.low %v204_v49, %v208_v31  ;;  %v5112_v13 = vld [vmem:[#allocation59_spill] sm:$0xff]  ;;  %v5114_v31 = vld [vmem:[#allocation62_spill] sm:$0xff]  ;;  %v5115_v49 = vld [vmem:[#allocation61_spill] sm:$0xff] }
  0xaa   :  { %5103 = vst [vmem:[#allocation135_spill] sm:$0xff] %v3582_v15 }
  0xab   :  { %956 = vmatpush1.bf16.msra.mxu0 %v3561_v3  ;;  %997 = vmatpush1.bf16.msra.mxu1 %v3567_v25  ;;  %5105 = vst [vmem:[#allocation137_spill] sm:$0xff] %v3589_v0  ;;  %5107 = vst [vmem:[#allocation139_spill] sm:$0xff] %v3594_v58 }
  0xac   :  { %957 = vmatprep.subr.bf16.mxu0 %v3565_v12  ;;  %998 = vmatprep.subr.bf16.mxu1 %v3570_v63  ;;  %v3597_v63 = vcombine.low %v203_v41, %v207_v42  ;;  %5109 = vst [vmem:[#allocation141_spill] sm:$0xff] %v3601_v54  ;;  %v5111_v42 = vld [vmem:[#allocation57_spill] sm:$0xff]  ;;  %v5117_v41 = vld [vmem:[#allocation64_spill] sm:$0xff] }
  0xae   :  { %5108 = vst [vmem:[#allocation140_spill] sm:$0xff] %v3597_v63 }
  0xaf   :  { %958 = vmatpush1.bf16.msra.mxu0 %v3573_v47  ;;  %999 = vmatpush1.bf16.msra.mxu1 %v3579_v33 }
  0xb0   :  { %959 = vmatprep.subr.bf16.mxu0 %v3577_v55  ;;  %1000 = vmatprep.subr.bf16.mxu1 %v3582_v15 }
  0xb3   :  { %960 = vmatpush1.bf16.msra.mxu0 %v3585_v62  ;;  %1001 = vmatpush1.bf16.msra.mxu1 %v3591_v57 }
  0xb4   :  { %961 = vmatprep.subr.bf16.mxu0 %v3589_v0  ;;  %1002 = vmatprep.subr.bf16.mxu1 %v3594_v58 }
  0xb7   :  { %962 = vmatpush1.bf16.msra.mxu0 %v3597_v63  ;;  %1003 = vmatpush1.bf16.msra.mxu1 %v3601_v54 }
  0xb8   :  { %1121 = vmatprep.subr.bf16.mxu0 %v3218_v4  ;;  %1162 = vmatprep.subr.bf16.mxu1 %v3224_v10 }
  0xba   :  { %964 = vmatmul.mubr.bf16.vlgmr.msra.gmra.mrb[4].mxu0 %v5051_v26  ;;  %1005 = vmatmul.mubr.bf16.vlgmr.msra.gmra.mrb[4].mxu1 %v5051_v26  ;;  %v5110_v26 = vld [vmem:[#allocation58_spill] sm:$0xff] }
  0xbb   :  { %1122 = vmatpush1.bf16.msra.mxu0 %v3220_v5  ;;  %1163 = vmatpush1.bf16.msra.mxu1 %v3226_v11 }
  0xbc   :  { %1123 = vmatprep.subr.bf16.mxu0 %v3222_v9  ;;  %1164 = vmatprep.subr.bf16.mxu1 %v3233_v17 }
  0xbf   :  { %1124 = vmatpush1.bf16.msra.mxu0 %v3230_v16  ;;  %1165 = vmatpush1.bf16.msra.mxu1 %v3239_v21 }
  0xc0   :  { %1125 = vmatprep.subr.bf16.mxu0 %v3237_v20  ;;  %1166 = vmatprep.subr.bf16.mxu1 %v3242_v24 }
  0xc3   :  { %1126 = vmatpush1.bf16.msra.mxu0 %v3245_v27  ;;  %1167 = vmatpush1.bf16.msra.mxu1 %v3251_v29 }
  0xc4   :  { %1127 = vmatprep.subr.bf16.mxu0 %v3249_v28  ;;  %1168 = vmatprep.subr.bf16.mxu1 %v3254_v32 }
  0xc7   :  { %1128 = vmatpush1.bf16.msra.mxu0 %v3257_v35  ;;  %1169 = vmatpush1.bf16.msra.mxu1 %v3263_v37 }
  0xc8   :  { %1129 = vmatprep.subr.bf16.mxu0 %v3261_v36  ;;  %1170 = vmatprep.subr.bf16.mxu1 %v3266_v40 }
  0xcb   :  { %1130 = vmatpush1.bf16.msra.mxu0 %v3269_v43  ;;  %1171 = vmatpush1.bf16.msra.mxu1 %v3275_v45 }
  0xcc   :  { %1131 = vmatprep.subr.bf16.mxu0 %v3273_v44  ;;  %1172 = vmatprep.subr.bf16.mxu1 %v3278_v48 }
  0xcf   :  { %1132 = vmatpush1.bf16.msra.mxu0 %v3281_v51  ;;  %1173 = vmatpush1.bf16.msra.mxu1 %v3287_v53 }
  0xd0   :  { %1133 = vmatprep.subr.bf16.mxu0 %v3285_v52  ;;  %1174 = vmatprep.subr.bf16.mxu1 %v3290_v56 }
  0xd3   :  { %1134 = vmatpush1.bf16.msra.mxu0 %v3293_v59  ;;  %1175 = vmatpush1.bf16.msra.mxu1 %v3299_v61 }
  0xd4   :  { %1135 = vmatprep.subr.bf16.mxu0 %v3297_v60  ;;  %1176 = vmatprep.subr.bf16.mxu1 %v3302_v1 }
  0xd7   :  { %1136 = vmatpush1.bf16.msra.mxu0 %v3305_v6  ;;  %1177 = vmatpush1.bf16.msra.mxu1 %v3311_v8  ;;  %v62_v8 = vld [vmem:[#allocation9] sm:$0xff] }
  0xd8   :  { %1137 = vmatprep.subr.bf16.mxu0 %v3309_v7  ;;  %1178 = vmatprep.subr.bf16.mxu1 %v3314_v14 }
  0xdb   :  { %1138 = vmatpush1.bf16.msra.mxu0 %v3317_v19  ;;  %1179 = vmatpush1.bf16.msra.mxu1 %v3323_v23 }
  0xdc   :  { %1139 = vmatprep.subr.bf16.mxu0 %v3321_v22  ;;  %1180 = vmatprep.subr.bf16.mxu1 %v3326_v30  ;;  %v1022_v22 = vlaneseq }
  0xde   :  { %v1023_v23 = vshrl.u32 %v1022_v22, 7 }
  0xdf   :  { %1140 = vmatpush1.bf16.msra.mxu0 %v3329_v34  ;;  %1181 = vmatpush1.bf16.msra.mxu1 %v3335_v39 }
  0xe0   :  { %1141 = vmatprep.subr.bf16.mxu0 %v3333_v38  ;;  %1182 = vmatprep.subr.bf16.mxu1 %v3338_v46  ;;  %v5118_v38 = vld [vmem:[#allocation66_spill] sm:$0xff]  ;;  %v5119_v46 = vld [vmem:[#allocation65_spill] sm:$0xff]  ;;  %v1028_v6 = vsub.s32 1, %v1023_v23 }
  0xe2   :  { %v3680_v61 = vrot.slane %v62_v8, %v1028_v6  ;;  %v1048_v6 = vsub.s32 6, %v1023_v23 }
  0xe3   :  { %1142 = vmatpush1.bf16.msra.mxu0 %v3341_v50  ;;  %1183 = vmatpush1.bf16.msra.mxu1 %v5110_v26  ;;  %v5120_v50 = vld [vmem:[#allocation67_spill] sm:$0xff]  ;;  %v5121_v26 = vld [vmem:[#allocation68_spill] sm:$0xff] }
  0xe4   :  { %1143 = vmatprep.subr.bf16.mxu0 %v5111_v42  ;;  %1184 = vmatprep.subr.bf16.mxu1 %v5112_v13  ;;  %v5122_v42 = vld [vmem:[#allocation70_spill] sm:$0xff]  ;;  %v5123_v13 = vld [vmem:[#allocation69_spill] sm:$0xff]  ;;  %5136 = vst [vmem:[#allocation145_spill] sm:$0xff] %v3680_v61 }
  0xe7   :  { %1144 = vmatpush1.bf16.msra.mxu0 %v5113_v18  ;;  %1185 = vmatpush1.bf16.msra.mxu1 %v5114_v31  ;;  %v5124_v18 = vld [vmem:[#allocation71_spill] sm:$0xff]  ;;  %v5125_v31 = vld [vmem:[#allocation72_spill] sm:$0xff] }
  0xe8   :  { %1145 = vmatprep.subr.bf16.mxu0 %v5115_v49  ;;  %1186 = vmatprep.subr.bf16.mxu1 %v5116_v2  ;;  %v5126_v49 = vld [vmem:[#allocation74_spill] sm:$0xff]  ;;  %v5127_v2 = vld [vmem:[#allocation73_spill] sm:$0xff] }
  0xeb   :  { %1146 = vmatpush1.bf16.msra.mxu0 %v5117_v41  ;;  %1187 = vmatpush1.bf16.msra.mxu1 %v5118_v38  ;;  %v5128_v41 = vld [vmem:[#allocation75_spill] sm:$0xff]  ;;  %v5129_v38 = vld [vmem:[#allocation76_spill] sm:$0xff] }
  0xec   :  { %1147 = vmatprep.subr.bf16.mxu0 %v5119_v46  ;;  %1188 = vmatprep.subr.bf16.mxu1 %v5120_v50  ;;  %v5130_v46 = vld [vmem:[#allocation78_spill] sm:$0xff]  ;;  %v5131_v50 = vld [vmem:[#allocation77_spill] sm:$0xff] }
  0xef   :  { %1148 = vmatpush1.bf16.msra.mxu0 %v5121_v26  ;;  %1189 = vmatpush1.bf16.msra.mxu1 %v5122_v42  ;;  %v5132_v26 = vld [vmem:[#allocation79_spill] sm:$0xff] }
  0xf0   :  { %1149 = vmatprep.subr.bf16.mxu0 %v5123_v13  ;;  %1190 = vmatprep.subr.bf16.mxu1 %v5124_v18 }
  0xf3   :  { %1150 = vmatpush1.bf16.msra.mxu0 %v5125_v31  ;;  %1191 = vmatpush1.bf16.msra.mxu1 %v5126_v49 }
  0xf4   :  { %1151 = vmatprep.subr.bf16.mxu0 %v5127_v2  ;;  %1192 = vmatprep.subr.bf16.mxu1 %v5128_v41  ;;  %v68_v2 = vld [vmem:[#allocation4 + $0x8] sm:$0xff]  ;;  %v67_v41 = vld [vmem:[#allocation4] sm:$0xff] }
  0xf5   :  { %v73_v19 = vunpack.c.l.bf16 %v68_v2  ;;  %v74_v14 = vunpack.c.h.bf16 %v68_v2  ;;  %v71_v7 = vunpack.c.l.bf16 %v67_v41 }
  0xf7   :  { %1152 = vmatpush1.bf16.msra.mxu0 %v5129_v38  ;;  %1193 = vmatpush1.bf16.msra.mxu1 %v5130_v46  ;;  %v1032_v38 = vsub.s32 2, %v1023_v23  ;;  %v1036_v46 = vsub.s32 3, %v1023_v23 }
  0xf8   :  { %1203 = vmatprep.subr.bf16.mxu0 %v5131_v50  ;;  %1244 = vmatprep.subr.bf16.mxu1 %v5132_v26  ;;  %v1024_v50 = vsub.s32 0, %v1023_v23  ;;  %v72_v26 = vunpack.c.h.bf16 %v67_v41 }
  0xf9   :  { %v3674_v60 = vrot.slane %v62_v8, %v1032_v38 }
  0xfb   :  { %5133 = vst [vmem:[#allocation142_spill] sm:$0xff] %v3674_v60 }
 0x14d   :  { %v883_v42 = vpop.f32.mrb[0].mxu0  ;;  %v924_v39 = vpop.f32.mrb[0].mxu1 }
 0x14e   :  { %v885_v13 = vpop.f32.mrb[1].mxu0  ;;  %v926_v34 = vpop.f32.mrb[1].mxu1  ;;  %v1015_v1 = vadd.f32 %v924_v39, %v73_v19 }
 0x14f   :  { %v887_v18 = vpop.f32.mrb[2].mxu0  ;;  %v928_v30 = vpop.f32.mrb[2].mxu1  ;;  %v1014_v22 = vadd.f32 %v885_v13, %v72_v26 }
 0x150   :  { %v888_v31 = vpop.f32.mrb[3].mxu0  ;;  %v929_v49 = vpop.f32.mrb[3].mxu1  ;;  %v1016_v18 = vadd.f32 %v926_v34, %v74_v14  ;;  %v1013_v30 = vadd.f32 %v883_v42, %v71_v7  ;;  %v1064_v2 = vadd.f32 %v3674_v60, %v1015_v1  ;;  %v69_v34 = vld [vmem:[#allocation4 + $0x10] sm:$0xff]  ;;  %v1040_v7 = vsub.s32 4, %v1023_v23 }
 0x151   :  { %v3676_v31 = vrot.slane %v62_v8, %v1036_v46  ;;  %v3678_v49 = vrot.slane %v62_v8, %v1024_v50  ;;  %v1063_v41 = vadd.f32 %v3680_v61, %v1014_v22  ;;  %v70_v46 = vld [vmem:[#allocation4 + $0x18] sm:$0xff]  ;;  %v1044_v50 = vsub.s32 5, %v1023_v23 }
 0x152   :  { %v1078_v19 = vmul.f32 0.5, %v1064_v2  ;;  %v75_v26 = vunpack.c.l.bf16 %v69_v34  ;;  %v1052_v1 = vsub.s32 7, %v1023_v23  ;;  %v76_v42 = vunpack.c.h.bf16 %v69_v34 }
 0x153   :  { %5134 = vst [vmem:[#allocation143_spill] sm:$0xff] %v3676_v31  ;;  %5135 = vst [vmem:[#allocation144_spill] sm:$0xff] %v3678_v49  ;;  %v1065_v59 = vadd.f32 %v3676_v31, %v1016_v18  ;;  %v1062_v56 = vadd.f32 %v3678_v49, %v1013_v30  ;;  %v1071_v14 = vmul.f32 0.5, %v1063_v41  ;;  %v77_v13 = vunpack.c.l.bf16 %v70_v46 }
 0x154   :  { %2892 = vtanh.f32 %v1078_v19  ;;  %v3686_v18 = vrot.slane %v62_v8, %v1040_v7  ;;  %v78_v30 = vunpack.c.h.bf16 %v70_v46 }
 0x155   :  { %v1079_v38 = vmul.f32 0.5, %v1065_v59  ;;  %v1070_v39 = vmul.f32 0.5, %v1062_v56  ;;  %v3688_v59 = vrot.slane %v62_v8, %v1044_v50  ;;  %v3690_v56 = vrot.slane %v62_v8, %v1048_v6 }
 0x157   :  { %2894 = vtanh.f32 %v1079_v38  ;;  %v3692_v38 = vrot.slane %v62_v8, %v1052_v1 }
 0x158   :  { %2896 = vtanh.f32 %v1070_v39 }
 0x159   :  { %2898 = vtanh.f32 %v1071_v14 }
 0x15e   :  { %v2893_v60 = vpop.eup %2892 }
 0x161   :  { %v2895_v8 = vpop.eup %2894 }
 0x18d   :  { %v965_v22 = vpop.f32.mrb[4].mxu0  ;;  %v1006_v19 = vpop.f32.mrb[4].mxu1 }
 0x18e   :  { %v1017_v2 = vadd.f32 %v965_v22, %v75_v26  ;;  %v967_v41 = vpop.f32.mrb[5].mxu0  ;;  %v1019_v49 = vadd.f32 %v1006_v19, %v77_v13  ;;  %v1008_v23 = vpop.f32.mrb[5].mxu1 }
 0x18f   :  { %v1018_v61 = vadd.f32 %v967_v41, %v76_v42  ;;  %v969_v39 = vpop.f32.mrb[6].mxu0  ;;  %v1020_v7 = vadd.f32 %v1008_v23, %v78_v30  ;;  %v1010_v31 = vpop.f32.mrb[6].mxu1  ;;  %v1082_v41 = vadd.f32 1.0, %v2893_v60 }
 0x190   :  { %v1066_v14 = vadd.f32 %v3686_v18, %v1017_v2  ;;  %v970_v34 = vpop.f32.mrb[7].mxu0  ;;  %v1068_v50 = vadd.f32 %v3690_v56, %v1019_v49  ;;  %v1011_v6 = vpop.f32.mrb[7].mxu1  ;;  %v1083_v2 = vadd.f32 1.0, %v2895_v8 }
 0x191   :  { %v1067_v46 = vadd.f32 %v3688_v59, %v1018_v61  ;;  %v1069_v26 = vadd.f32 %v3692_v38, %v1020_v7  ;;  %v2897_v42 = vpop.eup %2896  ;;  %v1084_v61 = vmul.f32 0.5, %v1082_v41 }
 0x192   :  { %2900 = vtanh.f32 %v1066_v14  ;;  %v1088_v1 = vmul.f32 0.5, %v1068_v50  ;;  %v2899_v22 = vpop.eup %2898  ;;  %v1074_v19 = vadd.f32 1.0, %v2897_v42  ;;  %v1085_v30 = vmul.f32 0.5, %v1083_v2 }
 0x193   :  { %2902 = vtanh.f32 %v1067_v46  ;;  %v1089_v13 = vmul.f32 0.5, %v1069_v26  ;;  %v1075_v31 = vadd.f32 1.0, %v2899_v22  ;;  %v1096_v34 = vmul.f32 0.0, %v1084_v61 }
 0x194   :  { %2904 = vtanh.f32 %v1088_v1  ;;  %v1076_v49 = vmul.f32 0.5, %v1074_v19  ;;  %v1097_v6 = vmul.f32 0.0, %v1085_v30 }
 0x195   :  { %2906 = vtanh.f32 %v1089_v13  ;;  %v1077_v23 = vmul.f32 0.5, %v1075_v31 }
 0x19c   :  { %v2901_v39 = vpop.eup %2900 }
 0x19d   :  { %v2903_v14 = vpop.eup %2902  ;;  %v1098_v7 = vmul.f32 %v2901_v39, %v1076_v49  ;;  %v5137_v49 = vld [vmem:[#allocation80_spill] sm:$0xff]  ;;  %v5138_v39 = vld [vmem:[#allocation82_spill] sm:$0xff] }
 0x19e   :  { %v1099_v46 = vmul.f32 %v2903_v14, %v1077_v23  ;;  %v2905_v60 = vpop.eup %2904  ;;  %v5139_v23 = vld [vmem:[#allocation81_spill] sm:$0xff]  ;;  %v5140_v14 = vld [vmem:[#allocation83_spill] sm:$0xff] }
 0x19f   :  { %v3698_v50 = vadd.f32 %v1098_v7, %v1096_v34  ;;  %v2907_v8 = vpop.eup %2906  ;;  %v1092_v1 = vadd.f32 1.0, %v2905_v60  ;;  %v5141_v34 = vld [vmem:[#allocation84_spill] sm:$0xff]  ;;  %v5142_v7 = vld [vmem:[#allocation86_spill] sm:$0xff] }
 0x1a0   :  { %v3700_v26 = vadd.f32 %v1099_v46, %v1097_v6  ;;  %v1093_v42 = vadd.f32 1.0, %v2907_v8  ;;  %v5143_v6 = vld [vmem:[#allocation85_spill] sm:$0xff]  ;;  %v5144_v46 = vld [vmem:[#allocation87_spill] sm:$0xff]  ;;  %v5145_v60 = vld [vmem:[#allocation88_spill] sm:$0xff] }
 0x1a1   :  { %2908 = vtanh.f32 %v3698_v50  ;;  %v1094_v13 = vmul.f32 0.5, %v1092_v1  ;;  %v5146_v8 = vld [vmem:[#allocation90_spill] sm:$0xff]  ;;  %v5147_v1 = vld [vmem:[#allocation89_spill] sm:$0xff] }
 0x1a2   :  { %2910 = vtanh.f32 %v3700_v26  ;;  %v1095_v22 = vmul.f32 0.5, %v1093_v42  ;;  %v5148_v42 = vld [vmem:[#allocation91_spill] sm:$0xff] }
 0x1ab   :  { %v2909_v41 = vpop.eup %2908 }
 0x1ac   :  { %v2911_v2 = vpop.eup %2910  ;;  %v1104_v19 = vmul.f32 %v2909_v41, %v1094_v13  ;;  %v5149_v13 = vld [vmem:[#allocation92_spill] sm:$0xff]  ;;  %v5151_v41 = vld [vmem:[#allocation93_spill] sm:$0xff] }
 0x1ad   :  { %v1105_v31 = vmul.f32 %v2911_v2, %v1095_v22  ;;  %v5150_v22 = vld [vmem:[#allocation94_spill] sm:$0xff]  ;;  %v5152_v2 = vld [vmem:[#allocation95_spill] sm:$0xff] }
 0x1ae   :  { %v3704_v30 = vpack.c.bf16 %v1104_v19, %v1104_v19  ;;  %v5153_v19 = vld [vmem:[#allocation96_spill] sm:$0xff] }
 0x1af   :  { %v1120_v61 = vpack.c.bf16 %v1105_v31, %v1105_v31  ;;  %v5154_v31 = vld [vmem:[#allocation98_spill] sm:$0xff] }
 0x1b1   :  { %1153 = vmatprep.mubr.bf16.mxu0 %v1120_v61  ;;  %1194 = vmatprep.mubr.bf16.mxu1 %v1120_v61 }
 0x1b2   :  { %1154 = vmatmul.mubr.bf16.vlgmr.msra.gmra.mrb[8].mxu0 %v3704_v30  ;;  %1195 = vmatmul.mubr.bf16.vlgmr.msra.gmra.mrb[8].mxu1 %v3704_v30 }
 0x1b3   :  { %1204 = vmatpush1.bf16.msra.mxu0 %v5137_v49  ;;  %1245 = vmatpush1.bf16.msra.mxu1 %v5138_v39 }
 0x1b4   :  { %1235 = vmatprep.mubr.bf16.mxu0 %v1120_v61  ;;  %1276 = vmatprep.mubr.bf16.mxu1 %v1120_v61  ;;  %v5155_v61 = vld [vmem:[#allocation97_spill] sm:$0xff] }
 0x1b5   :  { %1205 = vmatprep.subr.bf16.mxu0 %v5139_v23  ;;  %1246 = vmatprep.subr.bf16.mxu1 %v5140_v14 }
 0x1b7   :  { %1206 = vmatpush1.bf16.msra.mxu0 %v5141_v34  ;;  %1247 = vmatpush1.bf16.msra.mxu1 %v5142_v7 }
 0x1b8   :  { %1207 = vmatprep.subr.bf16.mxu0 %v5143_v6  ;;  %1248 = vmatprep.subr.bf16.mxu1 %v5144_v46 }
 0x1bb   :  { %1208 = vmatpush1.bf16.msra.mxu0 %v5145_v60  ;;  %1249 = vmatpush1.bf16.msra.mxu1 %v5146_v8  ;;  %v5156_v60 = vld [vmem:[#allocation99_spill] sm:$0xff]  ;;  %v5157_v8 = vld [vmem:[#allocation100_spill] sm:$0xff] }
 0x1bc   :  { %1209 = vmatprep.subr.bf16.mxu0 %v5147_v1  ;;  %1250 = vmatprep.subr.bf16.mxu1 %v5148_v42  ;;  %v5158_v1 = vld [vmem:[#allocation102_spill] sm:$0xff]  ;;  %v5159_v42 = vld [vmem:[#allocation101_spill] sm:$0xff] }
 0x1bf   :  { %1210 = vmatpush1.bf16.msra.mxu0 %v5149_v13  ;;  %1251 = vmatpush1.bf16.msra.mxu1 %v5150_v22  ;;  %v5160_v13 = vld [vmem:[#allocation103_spill] sm:$0xff]  ;;  %v5161_v22 = vld [vmem:[#allocation104_spill] sm:$0xff] }
 0x1c0   :  { %1211 = vmatprep.subr.bf16.mxu0 %v5151_v41  ;;  %1252 = vmatprep.subr.bf16.mxu1 %v5152_v2  ;;  %v5162_v41 = vld [vmem:[#allocation106_spill] sm:$0xff]  ;;  %v5163_v2 = vld [vmem:[#allocation105_spill] sm:$0xff] }
 0x1c3   :  { %1212 = vmatpush1.bf16.msra.mxu0 %v5153_v19  ;;  %1253 = vmatpush1.bf16.msra.mxu1 %v5154_v31  ;;  %v5164_v19 = vld [vmem:[#allocation107_spill] sm:$0xff]  ;;  %v5165_v31 = vld [vmem:[#allocation108_spill] sm:$0xff] }
 0x1c4   :  { %1213 = vmatprep.subr.bf16.mxu0 %v5155_v61  ;;  %1254 = vmatprep.subr.bf16.mxu1 %v5156_v60  ;;  %v5166_v61 = vld [vmem:[#allocation110_spill] sm:$0xff]  ;;  %v5167_v60 = vld [vmem:[#allocation109_spill] sm:$0xff] }
 0x1c7   :  { %1214 = vmatpush1.bf16.msra.mxu0 %v5157_v8  ;;  %1255 = vmatpush1.bf16.msra.mxu1 %v5158_v1  ;;  %v5168_v8 = vld [vmem:[#allocation111_spill] sm:$0xff]  ;;  %v5169_v1 = vld [vmem:[#allocation112_spill] sm:$0xff] }
 0x1c8   :  { %1215 = vmatprep.subr.bf16.mxu0 %v5159_v42  ;;  %1256 = vmatprep.subr.bf16.mxu1 %v5160_v13  ;;  %v5170_v42 = vld [vmem:[#allocation114_spill] sm:$0xff]  ;;  %v5171_v13 = vld [vmem:[#allocation113_spill] sm:$0xff] }
 0x1cb   :  { %1216 = vmatpush1.bf16.msra.mxu0 %v5161_v22  ;;  %1257 = vmatpush1.bf16.msra.mxu1 %v5162_v41  ;;  %v5172_v22 = vld [vmem:[#allocation115_spill] sm:$0xff]  ;;  %v5173_v41 = vld [vmem:[#allocation116_spill] sm:$0xff] }
 0x1cc   :  { %1217 = vmatprep.subr.bf16.mxu0 %v5163_v2  ;;  %1258 = vmatprep.subr.bf16.mxu1 %v5164_v19  ;;  %v5174_v2 = vld [vmem:[#allocation118_spill] sm:$0xff]  ;;  %v5175_v19 = vld [vmem:[#allocation117_spill] sm:$0xff] }
 0x1cf   :  { %1218 = vmatpush1.bf16.msra.mxu0 %v5165_v31  ;;  %1259 = vmatpush1.bf16.msra.mxu1 %v5166_v61  ;;  %v5176_v31 = vld [vmem:[#allocation119_spill] sm:$0xff]  ;;  %v5177_v61 = vld [vmem:[#allocation120_spill] sm:$0xff] }
 0x1d0   :  { %1219 = vmatprep.subr.bf16.mxu0 %v5167_v60  ;;  %1260 = vmatprep.subr.bf16.mxu1 %v5168_v8  ;;  %v5178_v60 = vld [vmem:[#allocation122_spill] sm:$0xff]  ;;  %v5179_v8 = vld [vmem:[#allocation121_spill] sm:$0xff] }
 0x1d3   :  { %1220 = vmatpush1.bf16.msra.mxu0 %v5169_v1  ;;  %1261 = vmatpush1.bf16.msra.mxu1 %v5170_v42  ;;  %v5180_v1 = vld [vmem:[#allocation123_spill] sm:$0xff]  ;;  %v5181_v42 = vld [vmem:[#allocation124_spill] sm:$0xff] }
 0x1d4   :  { %1221 = vmatprep.subr.bf16.mxu0 %v5171_v13  ;;  %1262 = vmatprep.subr.bf16.mxu1 %v5172_v22  ;;  %v5182_v13 = vld [vmem:[#allocation126_spill] sm:$0xff]  ;;  %v5183_v22 = vld [vmem:[#allocation125_spill] sm:$0xff] }
 0x1d7   :  { %1222 = vmatpush1.bf16.msra.mxu0 %v5173_v41  ;;  %1263 = vmatpush1.bf16.msra.mxu1 %v5174_v2  ;;  %v5184_v41 = vld [vmem:[#allocation127_spill] sm:$0xff] }
 0x1d8   :  { %1223 = vmatprep.subr.bf16.mxu0 %v5175_v19  ;;  %1264 = vmatprep.subr.bf16.mxu1 %v5176_v31 }
 0x1db   :  { %1224 = vmatpush1.bf16.msra.mxu0 %v5177_v61  ;;  %1265 = vmatpush1.bf16.msra.mxu1 %v5178_v60  ;;  %v5185_v61 = vld [vmem:[#allocation131_spill] sm:$0xff] }
 0x1dc   :  { %1225 = vmatprep.subr.bf16.mxu0 %v5179_v8  ;;  %1266 = vmatprep.subr.bf16.mxu1 %v5180_v1 }
 0x1df   :  { %1226 = vmatpush1.bf16.msra.mxu0 %v5181_v42  ;;  %1267 = vmatpush1.bf16.msra.mxu1 %v5182_v13 }
 0x1e0   :  { %1227 = vmatprep.subr.bf16.mxu0 %v5183_v22  ;;  %1268 = vmatprep.subr.bf16.mxu1 %v5184_v41 }
 0x1e3   :  { %1228 = vmatpush1.bf16.msra.mxu0 %v3561_v3  ;;  %1269 = vmatpush1.bf16.msra.mxu1 %v3567_v25 }
 0x1e4   :  { %1229 = vmatprep.subr.bf16.mxu0 %v3565_v12  ;;  %1270 = vmatprep.subr.bf16.mxu1 %v5185_v61 }
 0x1e7   :  { %1230 = vmatpush1.bf16.msra.mxu0 %v3573_v47  ;;  %1271 = vmatpush1.bf16.msra.mxu1 %v3579_v33 }
 0x1e8   :  { %1231 = vmatprep.subr.bf16.mxu0 %v3577_v55  ;;  %1272 = vmatprep.subr.bf16.mxu1 %v3582_v15 }
 0x1eb   :  { %1232 = vmatpush1.bf16.msra.mxu0 %v3585_v62  ;;  %1273 = vmatpush1.bf16.msra.mxu1 %v3591_v57 }
 0x1ec   :  { %1233 = vmatprep.subr.bf16.mxu0 %v3589_v0  ;;  %1274 = vmatprep.subr.bf16.mxu1 %v3594_v58 }
 0x1ef   :  { %1234 = vmatpush1.bf16.msra.mxu0 %v3597_v63  ;;  %1275 = vmatpush1.bf16.msra.mxu1 %v3601_v54  ;;  %v1109_v54 = vld [vmem:[#allocation4 + $0x30] sm:$0xff] }
 0x1f0   :  { %1352 = vmatprep.subr.bf16.mxu0 %v3218_v4  ;;  %1393 = vmatprep.subr.bf16.mxu1 %v3224_v10 }
 0x1f2   :  { %1236 = vmatmul.mubr.bf16.vlgmr.msra.gmra.mrb[12].mxu0 %v3704_v30  ;;  %1277 = vmatmul.mubr.bf16.vlgmr.msra.gmra.mrb[12].mxu1 %v3704_v30  ;;  %v5186_v30 = vld [vmem:[#allocation39_spill] sm:$0xff] }
 0x1f3   :  { %1353 = vmatpush1.bf16.msra.mxu0 %v3220_v5  ;;  %1394 = vmatpush1.bf16.msra.mxu1 %v3226_v11  ;;  %v5229_v11 = vld [vmem:[#allocation144_spill] sm:$0xff] }
 0x1f4   :  { %1354 = vmatprep.subr.bf16.mxu0 %v3222_v9  ;;  %1395 = vmatprep.subr.bf16.mxu1 %v3233_v17  ;;  %v5228_v17 = vld [vmem:[#allocation143_spill] sm:$0xff] }
 0x1f7   :  { %1355 = vmatpush1.bf16.msra.mxu0 %v3230_v16  ;;  %1396 = vmatpush1.bf16.msra.mxu1 %v3239_v21  ;;  %v5227_v16 = vld [vmem:[#allocation142_spill] sm:$0xff] }
 0x1f8   :  { %1356 = vmatprep.subr.bf16.mxu0 %v3237_v20  ;;  %1397 = vmatprep.subr.bf16.mxu1 %v3242_v24 }
 0x1fb   :  { %1357 = vmatpush1.bf16.msra.mxu0 %v3245_v27  ;;  %1398 = vmatpush1.bf16.msra.mxu1 %v3251_v29  ;;  %v1108_v29 = vld [vmem:[#allocation4 + $0x28] sm:$0xff] }
 0x1fc   :  { %1358 = vmatprep.subr.bf16.mxu0 %v3249_v28  ;;  %1399 = vmatprep.subr.bf16.mxu1 %v3254_v32  ;;  %v1113_v27 = vunpack.c.l.bf16 %v1108_v29 }
 0x1ff   :  { %1359 = vmatpush1.bf16.msra.mxu0 %v3257_v35  ;;  %1400 = vmatpush1.bf16.msra.mxu1 %v3263_v37  ;;  %v5187_v37 = vld [vmem:[#allocation40_spill] sm:$0xff] }
 0x200   :  { %1360 = vmatprep.subr.bf16.mxu0 %v3261_v36  ;;  %1401 = vmatprep.subr.bf16.mxu1 %v3266_v40  ;;  %v5188_v36 = vld [vmem:[#allocation42_spill] sm:$0xff]  ;;  %v5189_v40 = vld [vmem:[#allocation41_spill] sm:$0xff] }
 0x203   :  { %1361 = vmatpush1.bf16.msra.mxu0 %v3269_v43  ;;  %1402 = vmatpush1.bf16.msra.mxu1 %v3275_v45  ;;  %v5190_v43 = vld [vmem:[#allocation43_spill] sm:$0xff]  ;;  %v5191_v45 = vld [vmem:[#allocation44_spill] sm:$0xff] }
 0x204   :  { %1362 = vmatprep.subr.bf16.mxu0 %v3273_v44  ;;  %1403 = vmatprep.subr.bf16.mxu1 %v3278_v48  ;;  %v5192_v44 = vld [vmem:[#allocation46_spill] sm:$0xff]  ;;  %v5193_v48 = vld [vmem:[#allocation45_spill] sm:$0xff] }
 0x207   :  { %1363 = vmatpush1.bf16.msra.mxu0 %v3281_v51  ;;  %1404 = vmatpush1.bf16.msra.mxu1 %v3287_v53  ;;  %v5194_v51 = vld [vmem:[#allocation47_spill] sm:$0xff]  ;;  %v5195_v53 = vld [vmem:[#allocation48_spill] sm:$0xff] }
 0x208   :  { %1364 = vmatprep.subr.bf16.mxu0 %v3285_v52  ;;  %1405 = vmatprep.subr.bf16.mxu1 %v5186_v30  ;;  %v5196_v52 = vld [vmem:[#allocation50_spill] sm:$0xff]  ;;  %v5197_v30 = vld [vmem:[#allocation49_spill] sm:$0xff] }
 0x20b   :  { %1365 = vmatpush1.bf16.msra.mxu0 %v5187_v37  ;;  %1406 = vmatpush1.bf16.msra.mxu1 %v5188_v36  ;;  %v5198_v37 = vld [vmem:[#allocation51_spill] sm:$0xff]  ;;  %v5199_v36 = vld [vmem:[#allocation52_spill] sm:$0xff] }
 0x20c   :  { %1366 = vmatprep.subr.bf16.mxu0 %v5189_v40  ;;  %1407 = vmatprep.subr.bf16.mxu1 %v5190_v43  ;;  %v5200_v40 = vld [vmem:[#allocation54_spill] sm:$0xff]  ;;  %v5201_v43 = vld [vmem:[#allocation53_spill] sm:$0xff] }
 0x20f   :  { %1367 = vmatpush1.bf16.msra.mxu0 %v5191_v45  ;;  %1408 = vmatpush1.bf16.msra.mxu1 %v5192_v44  ;;  %v5202_v45 = vld [vmem:[#allocation55_spill] sm:$0xff]  ;;  %v5203_v44 = vld [vmem:[#allocation56_spill] sm:$0xff] }
 0x210   :  { %1368 = vmatprep.subr.bf16.mxu0 %v5193_v48  ;;  %1409 = vmatprep.subr.bf16.mxu1 %v5194_v51  ;;  %v5204_v48 = vld [vmem:[#allocation58_spill] sm:$0xff]  ;;  %v5205_v51 = vld [vmem:[#allocation57_spill] sm:$0xff] }
 0x213   :  { %1369 = vmatpush1.bf16.msra.mxu0 %v5195_v53  ;;  %1410 = vmatpush1.bf16.msra.mxu1 %v5196_v52  ;;  %v5206_v53 = vld [vmem:[#allocation59_spill] sm:$0xff]  ;;  %v5207_v52 = vld [vmem:[#allocation60_spill] sm:$0xff] }
 0x214   :  { %1370 = vmatprep.subr.bf16.mxu0 %v5197_v30  ;;  %1411 = vmatprep.subr.bf16.mxu1 %v5198_v37  ;;  %v5208_v30 = vld [vmem:[#allocation62_spill] sm:$0xff]  ;;  %v5209_v37 = vld [vmem:[#allocation61_spill] sm:$0xff] }
 0x217   :  { %1371 = vmatpush1.bf16.msra.mxu0 %v5199_v36  ;;  %1412 = vmatpush1.bf16.msra.mxu1 %v5200_v40  ;;  %v5210_v36 = vld [vmem:[#allocation63_spill] sm:$0xff]  ;;  %v5211_v40 = vld [vmem:[#allocation64_spill] sm:$0xff] }
 0x218   :  { %1372 = vmatprep.subr.bf16.mxu0 %v5201_v43  ;;  %1413 = vmatprep.subr.bf16.mxu1 %v5202_v45  ;;  %v5212_v43 = vld [vmem:[#allocation66_spill] sm:$0xff]  ;;  %v5213_v45 = vld [vmem:[#allocation65_spill] sm:$0xff] }
 0x21b   :  { %1373 = vmatpush1.bf16.msra.mxu0 %v5203_v44  ;;  %1414 = vmatpush1.bf16.msra.mxu1 %v5204_v48  ;;  %v5214_v44 = vld [vmem:[#allocation67_spill] sm:$0xff]  ;;  %v5215_v48 = vld [vmem:[#allocation68_spill] sm:$0xff] }
 0x21c   :  { %1374 = vmatprep.subr.bf16.mxu0 %v5205_v51  ;;  %1415 = vmatprep.subr.bf16.mxu1 %v5206_v53  ;;  %v5216_v51 = vld [vmem:[#allocation70_spill] sm:$0xff]  ;;  %v5217_v53 = vld [vmem:[#allocation69_spill] sm:$0xff] }
 0x21f   :  { %1375 = vmatpush1.bf16.msra.mxu0 %v5207_v52  ;;  %1416 = vmatpush1.bf16.msra.mxu1 %v5208_v30  ;;  %v5218_v52 = vld [vmem:[#allocation71_spill] sm:$0xff]  ;;  %v5219_v30 = vld [vmem:[#allocation72_spill] sm:$0xff] }
 0x220   :  { %1376 = vmatprep.subr.bf16.mxu0 %v5209_v37  ;;  %1417 = vmatprep.subr.bf16.mxu1 %v5210_v36  ;;  %v5220_v37 = vld [vmem:[#allocation74_spill] sm:$0xff]  ;;  %v5221_v36 = vld [vmem:[#allocation73_spill] sm:$0xff] }
 0x223   :  { %1377 = vmatpush1.bf16.msra.mxu0 %v5211_v40  ;;  %1418 = vmatpush1.bf16.msra.mxu1 %v5212_v43  ;;  %v5222_v40 = vld [vmem:[#allocation75_spill] sm:$0xff]  ;;  %v5223_v43 = vld [vmem:[#allocation76_spill] sm:$0xff] }
 0x224   :  { %1378 = vmatprep.subr.bf16.mxu0 %v5213_v45  ;;  %1419 = vmatprep.subr.bf16.mxu1 %v5214_v44  ;;  %v5224_v45 = vld [vmem:[#allocation78_spill] sm:$0xff]  ;;  %v5225_v44 = vld [vmem:[#allocation77_spill] sm:$0xff] }
 0x227   :  { %1379 = vmatpush1.bf16.msra.mxu0 %v5215_v48  ;;  %1420 = vmatpush1.bf16.msra.mxu1 %v5216_v51  ;;  %v5226_v48 = vld [vmem:[#allocation79_spill] sm:$0xff] }
 0x228   :  { %1380 = vmatprep.subr.bf16.mxu0 %v5217_v53  ;;  %1421 = vmatprep.subr.bf16.mxu1 %v5218_v52 }
 0x22b   :  { %1381 = vmatpush1.bf16.msra.mxu0 %v5219_v30  ;;  %1422 = vmatpush1.bf16.msra.mxu1 %v5220_v37 }
 0x22c   :  { %1382 = vmatprep.subr.bf16.mxu0 %v5221_v36  ;;  %1423 = vmatprep.subr.bf16.mxu1 %v5222_v40  ;;  %v1107_v36 = vld [vmem:[#allocation4 + $0x20] sm:$0xff]  ;;  %v1114_v40 = vunpack.c.h.bf16 %v1108_v29  ;;  %v1110_v29 = vld [vmem:[#allocation4 + $0x38] sm:$0xff] }
 0x22d   :  { %v1111_v24 = vunpack.c.l.bf16 %v1107_v36 }
 0x22f   :  { %1383 = vmatpush1.bf16.msra.mxu0 %v5223_v43  ;;  %1424 = vmatpush1.bf16.msra.mxu1 %v5224_v45  ;;  %v1112_v43 = vunpack.c.h.bf16 %v1107_v36 }
 0x230   :  { %1434 = vmatprep.subr.bf16.mxu0 %v5225_v44  ;;  %1475 = vmatprep.subr.bf16.mxu1 %v5226_v48 }
 0x285   :  { %v1155_v51 = vpop.f32.mrb[8].mxu0  ;;  %v1196_v53 = vpop.f32.mrb[8].mxu1 }
 0x286   :  { %v1157_v35 = vpop.f32.mrb[9].mxu0  ;;  %v1198_v52 = vpop.f32.mrb[9].mxu1  ;;  %v1287_v20 = vadd.f32 %v1196_v53, %v1113_v27  ;;  %v1285_v21 = vadd.f32 %v1155_v51, %v1111_v24  ;;  %v1115_v27 = vunpack.c.l.bf16 %v1109_v54  ;;  %v1117_v24 = vunpack.c.l.bf16 %v1110_v29 }
 0x287   :  { %v1159_v32 = vpop.f32.mrb[10].mxu0  ;;  %v1200_v30 = vpop.f32.mrb[10].mxu1  ;;  %v1288_v45 = vadd.f32 %v1198_v52, %v1114_v40  ;;  %v1286_v44 = vadd.f32 %v1157_v35, %v1112_v43  ;;  %v1116_v35 = vunpack.c.h.bf16 %v1109_v54 }
 0x288   :  { %v1160_v28 = vpop.f32.mrb[11].mxu0  ;;  %v1201_v37 = vpop.f32.mrb[11].mxu1  ;;  %v1295_v48 = vadd.f32 %v1287_v20, %v5227_v16  ;;  %v1293_v5 = vadd.f32 %v1285_v21, %v5229_v11  ;;  %v5230_v32 = vld [vmem:[#allocation145_spill] sm:$0xff]  ;;  %v1118_v20 = vunpack.c.h.bf16 %v1110_v29 }
 0x289   :  { %v1296_v9 = vadd.f32 %v1288_v45, %v5228_v17  ;;  %v1294_v30 = vadd.f32 %v1286_v44, %v5230_v32 }
 0x28a   :  { %v1309_v28 = vmul.f32 0.5, %v1295_v48  ;;  %v1301_v10 = vmul.f32 0.5, %v1293_v5 }
 0x28b   :  { %v1310_v37 = vmul.f32 0.5, %v1296_v9  ;;  %v1302_v4 = vmul.f32 0.5, %v1294_v30 }
 0x28c   :  { %2912 = vtanh.f32 %v1309_v28 }
 0x28d   :  { %2914 = vtanh.f32 %v1310_v37 }
 0x28e   :  { %2916 = vtanh.f32 %v1301_v10 }
 0x28f   :  { %2918 = vtanh.f32 %v1302_v4 }
 0x296   :  { %v2913_v54 = vpop.eup %2912 }
 0x297   :  { %v2915_v37 = vpop.eup %2914 }
 0x298   :  { %v2917_v29 = vpop.eup %2916 }
 0x2c5   :  { %v1237_v36 = vpop.f32.mrb[12].mxu0  ;;  %v1278_v40 = vpop.f32.mrb[12].mxu1 }
 0x2c6   :  { %v1289_v43 = vadd.f32 %v1237_v36, %v1115_v27  ;;  %v1291_v21 = vadd.f32 %v1278_v40, %v1117_v24  ;;  %v1239_v45 = vpop.f32.mrb[13].mxu0  ;;  %v1280_v44 = vpop.f32.mrb[13].mxu1  ;;  %v1313_v24 = vadd.f32 1.0, %v2913_v54  ;;  %v1305_v40 = vadd.f32 1.0, %v2917_v29 }
 0x2c7   :  { %v1290_v48 = vadd.f32 %v1239_v45, %v1116_v35  ;;  %v1292_v9 = vadd.f32 %v1280_v44, %v1118_v20  ;;  %v1241_v5 = vpop.f32.mrb[14].mxu0  ;;  %v1282_v51 = vpop.f32.mrb[14].mxu1  ;;  %v1314_v20 = vadd.f32 1.0, %v2915_v37 }
 0x2c8   :  { %v1297_v52 = vadd.f32 %v1289_v43, %v3686_v18  ;;  %v1242_v53 = vpop.f32.mrb[15].mxu0  ;;  %v1283_v30 = vpop.f32.mrb[15].mxu1  ;;  %v1299_v10 = vadd.f32 %v1291_v21, %v3690_v56  ;;  %v1315_v45 = vmul.f32 0.5, %v1313_v24  ;;  %v1307_v21 = vmul.f32 0.5, %v1305_v40 }
 0x2c9   :  { %v1298_v4 = vadd.f32 %v1290_v48, %v3688_v59  ;;  %v1300_v28 = vadd.f32 %v1292_v9, %v3692_v38  ;;  %v2919_v27 = vpop.eup %2918  ;;  %v1316_v44 = vmul.f32 0.5, %v1314_v20 }
 0x2ca   :  { %2920 = vtanh.f32 %v1297_v52  ;;  %v1319_v35 = vmul.f32 0.5, %v1299_v10  ;;  %v1306_v43 = vadd.f32 1.0, %v2919_v27  ;;  %v1327_v9 = vmul.f32 %v1315_v45, %v3698_v50  ;;  %v5232_v45 = vld [vmem:[#allocation90_spill] sm:$0xff] }
 0x2cb   :  { %2922 = vtanh.f32 %v1298_v4  ;;  %v1320_v36 = vmul.f32 0.5, %v1300_v28  ;;  %v1328_v53 = vmul.f32 %v1316_v44, %v3700_v26  ;;  %v5233_v44 = vld [vmem:[#allocation89_spill] sm:$0xff] }
 0x2cc   :  { %2924 = vtanh.f32 %v1319_v35  ;;  %v1308_v5 = vmul.f32 0.5, %v1306_v43  ;;  %v5231_v43 = vld [vmem:[#allocation88_spill] sm:$0xff] }
 0x2cd   :  { %2926 = vtanh.f32 %v1320_v36 }
 0x2d4   :  { %v2921_v48 = vpop.eup %2920 }
 0x2d5   :  { %v2923_v51 = vpop.eup %2922  ;;  %v1329_v52 = vmul.f32 %v2921_v48, %v1307_v21  ;;  %v5234_v21 = vld [vmem:[#allocation91_spill] sm:$0xff]  ;;  %v5235_v48 = vld [vmem:[#allocation92_spill] sm:$0xff] }
 0x2d6   :  { %v1330_v30 = vmul.f32 %v2923_v51, %v1308_v5  ;;  %v2925_v54 = vpop.eup %2924  ;;  %v5236_v5 = vld [vmem:[#allocation94_spill] sm:$0xff]  ;;  %v5237_v51 = vld [vmem:[#allocation93_spill] sm:$0xff] }
 0x2d7   :  { %v3848_v4 = vadd.f32 %v1329_v52, %v1327_v9  ;;  %v2927_v28 = vpop.eup %2926  ;;  %v1323_v37 = vadd.f32 1.0, %v2925_v54  ;;  %v5238_v9 = vld [vmem:[#allocation95_spill] sm:$0xff]  ;;  %v5239_v52 = vld [vmem:[#allocation96_spill] sm:$0xff] }
 0x2d8   :  { %v3850_v10 = vadd.f32 %v1330_v30, %v1328_v53  ;;  %v1324_v29 = vadd.f32 1.0, %v2927_v28  ;;  %v5240_v53 = vld [vmem:[#allocation98_spill] sm:$0xff]  ;;  %v5241_v30 = vld [vmem:[#allocation97_spill] sm:$0xff]  ;;  %v5242_v54 = vld [vmem:[#allocation99_spill] sm:$0xff] }
 0x2d9   :  { %2928 = vtanh.f32 %v3848_v4  ;;  %v1325_v27 = vmul.f32 0.5, %v1323_v37  ;;  %v5243_v28 = vld [vmem:[#allocation100_spill] sm:$0xff]  ;;  %v5244_v37 = vld [vmem:[#allocation102_spill] sm:$0xff] }
 0x2da   :  { %2930 = vtanh.f32 %v3850_v10  ;;  %v1326_v35 = vmul.f32 0.5, %v1324_v29  ;;  %v5245_v29 = vld [vmem:[#allocation101_spill] sm:$0xff] }
 0x2e3   :  { %v2929_v24 = vpop.eup %2928 }
 0x2e4   :  { %v2931_v50 = vpop.eup %2930  ;;  %v1335_v20 = vmul.f32 %v2929_v24, %v1325_v27  ;;  %v5246_v27 = vld [vmem:[#allocation103_spill] sm:$0xff]  ;;  %v5247_v24 = vld [vmem:[#allocation104_spill] sm:$0xff] }
 0x2e5   :  { %v1336_v36 = vmul.f32 %v2931_v50, %v1326_v35  ;;  %v5248_v35 = vld [vmem:[#allocation106_spill] sm:$0xff]  ;;  %v5249_v50 = vld [vmem:[#allocation105_spill] sm:$0xff] }
 0x2e6   :  { %v3854_v40 = vpack.c.bf16 %v1335_v20, %v1335_v20  ;;  %v5250_v20 = vld [vmem:[#allocation107_spill] sm:$0xff] }
 0x2e7   :  { %v1351_v26 = vpack.c.bf16 %v1336_v36, %v1336_v36  ;;  %v5251_v36 = vld [vmem:[#allocation108_spill] sm:$0xff] }
 0x2e9   :  { %1384 = vmatprep.mubr.bf16.mxu0 %v1351_v26  ;;  %1425 = vmatprep.mubr.bf16.mxu1 %v1351_v26 }
 0x2ea   :  { %1385 = vmatmul.mubr.bf16.vlgmr.msra.gmra.mrb[16].mxu0 %v3854_v40  ;;  %1426 = vmatmul.mubr.bf16.vlgmr.msra.gmra.mrb[16].mxu1 %v3854_v40 }
 0x2eb   :  { %1435 = vmatpush1.bf16.msra.mxu0 %v5137_v49  ;;  %1476 = vmatpush1.bf16.msra.mxu1 %v5138_v39 }
 0x2ec   :  { %1466 = vmatprep.mubr.bf16.mxu0 %v1351_v26  ;;  %1507 = vmatprep.mubr.bf16.mxu1 %v1351_v26  ;;  %v5252_v26 = vld [vmem:[#allocation110_spill] sm:$0xff] }
 0x2ed   :  { %1436 = vmatprep.subr.bf16.mxu0 %v5139_v23  ;;  %1477 = vmatprep.subr.bf16.mxu1 %v5140_v14 }
 0x2ef   :  { %1437 = vmatpush1.bf16.msra.mxu0 %v5141_v34  ;;  %1478 = vmatpush1.bf16.msra.mxu1 %v5142_v7 }
 0x2f0   :  { %1438 = vmatprep.subr.bf16.mxu0 %v5143_v6  ;;  %1479 = vmatprep.subr.bf16.mxu1 %v5144_v46 }
 0x2f3   :  { %1439 = vmatpush1.bf16.msra.mxu0 %v5231_v43  ;;  %1480 = vmatpush1.bf16.msra.mxu1 %v5232_v45 }
 0x2f4   :  { %1440 = vmatprep.subr.bf16.mxu0 %v5233_v44  ;;  %1481 = vmatprep.subr.bf16.mxu1 %v5234_v21 }
 0x2f7   :  { %1441 = vmatpush1.bf16.msra.mxu0 %v5235_v48  ;;  %1482 = vmatpush1.bf16.msra.mxu1 %v5236_v5 }
 0x2f8   :  { %1442 = vmatprep.subr.bf16.mxu0 %v5237_v51  ;;  %1483 = vmatprep.subr.bf16.mxu1 %v5238_v9 }
 0x2fb   :  { %1443 = vmatpush1.bf16.msra.mxu0 %v5239_v52  ;;  %1484 = vmatpush1.bf16.msra.mxu1 %v5240_v53 }
 0x2fc   :  { %1444 = vmatprep.subr.bf16.mxu0 %v5241_v30  ;;  %1485 = vmatprep.subr.bf16.mxu1 %v5242_v54  ;;  %v5253_v54 = vld [vmem:[#allocation109_spill] sm:$0xff] }
 0x2ff   :  { %1445 = vmatpush1.bf16.msra.mxu0 %v5243_v28  ;;  %1486 = vmatpush1.bf16.msra.mxu1 %v5244_v37  ;;  %v5254_v28 = vld [vmem:[#allocation111_spill] sm:$0xff]  ;;  %v5255_v37 = vld [vmem:[#allocation112_spill] sm:$0xff] }
 0x300   :  { %1446 = vmatprep.subr.bf16.mxu0 %v5245_v29  ;;  %1487 = vmatprep.subr.bf16.mxu1 %v5246_v27  ;;  %v5256_v29 = vld [vmem:[#allocation114_spill] sm:$0xff]  ;;  %v5257_v27 = vld [vmem:[#allocation113_spill] sm:$0xff] }
 0x303   :  { %1447 = vmatpush1.bf16.msra.mxu0 %v5247_v24  ;;  %1488 = vmatpush1.bf16.msra.mxu1 %v5248_v35  ;;  %v5258_v24 = vld [vmem:[#allocation115_spill] sm:$0xff]  ;;  %v5259_v35 = vld [vmem:[#allocation116_spill] sm:$0xff] }
 0x304   :  { %1448 = vmatprep.subr.bf16.mxu0 %v5249_v50  ;;  %1489 = vmatprep.subr.bf16.mxu1 %v5250_v20 }
 0x307   :  { %1449 = vmatpush1.bf16.msra.mxu0 %v5251_v36  ;;  %1490 = vmatpush1.bf16.msra.mxu1 %v5252_v26  ;;  %v5260_v26 = vld [vmem:[#allocation120_spill] sm:$0xff] }
 0x308   :  { %1450 = vmatprep.subr.bf16.mxu0 %v5253_v54  ;;  %1491 = vmatprep.subr.bf16.mxu1 %v5254_v28 }
 0x30b   :  { %1451 = vmatpush1.bf16.msra.mxu0 %v5255_v37  ;;  %1492 = vmatpush1.bf16.msra.mxu1 %v5256_v29 }
 0x30c   :  { %1452 = vmatprep.subr.bf16.mxu0 %v5257_v27  ;;  %1493 = vmatprep.subr.bf16.mxu1 %v5258_v24 }
 0x30f   :  { %1453 = vmatpush1.bf16.msra.mxu0 %v5259_v35  ;;  %1494 = vmatpush1.bf16.msra.mxu1 %v5174_v2 }
 0x310   :  { %1454 = vmatprep.subr.bf16.mxu0 %v5175_v19  ;;  %1495 = vmatprep.subr.bf16.mxu1 %v5176_v31  ;;  %v1340_v31 = vld [vmem:[#allocation4 + $0x50] sm:$0xff] }
 0x313   :  { %1455 = vmatpush1.bf16.msra.mxu0 %v5260_v26  ;;  %1496 = vmatpush1.bf16.msra.mxu1 %v5178_v60 }
 0x314   :  { %1456 = vmatprep.subr.bf16.mxu0 %v5179_v8  ;;  %1497 = vmatprep.subr.bf16.mxu1 %v5180_v1 }
 0x317   :  { %1457 = vmatpush1.bf16.msra.mxu0 %v5181_v42  ;;  %1498 = vmatpush1.bf16.msra.mxu1 %v5182_v13 }
 0x318   :  { %1458 = vmatprep.subr.bf16.mxu0 %v5183_v22  ;;  %1499 = vmatprep.subr.bf16.mxu1 %v5184_v41  ;;  %v1339_v41 = vld [vmem:[#allocation4 + $0x48] sm:$0xff] }
 0x319   :  { %v1344_v22 = vunpack.c.l.bf16 %v1339_v41 }
 0x31b   :  { %1459 = vmatpush1.bf16.msra.mxu0 %v3561_v3  ;;  %1500 = vmatpush1.bf16.msra.mxu1 %v3567_v25 }
 0x31c   :  { %1460 = vmatprep.subr.bf16.mxu0 %v3565_v12  ;;  %1501 = vmatprep.subr.bf16.mxu1 %v5185_v61  ;;  %v5261_v12 = vld [vmem:[#allocation141_spill] sm:$0xff]  ;;  %v5262_v61 = vld [vmem:[#allocation14_spill] sm:$0xff] }
 0x31f   :  { %1461 = vmatpush1.bf16.msra.mxu0 %v3573_v47  ;;  %1502 = vmatpush1.bf16.msra.mxu1 %v3579_v33  ;;  %v5263_v47 = vld [vmem:[#allocation17_spill] sm:$0xff] }
 0x320   :  { %1462 = vmatprep.subr.bf16.mxu0 %v3577_v55  ;;  %1503 = vmatprep.subr.bf16.mxu1 %v3582_v15  ;;  %v5264_v15 = vld [vmem:[#allocation15_spill] sm:$0xff]  ;;  %v5273_v55 = vld [vmem:[#allocation26_spill] sm:$0xff] }
 0x323   :  { %1463 = vmatpush1.bf16.msra.mxu0 %v3585_v62  ;;  %1504 = vmatpush1.bf16.msra.mxu1 %v3591_v57  ;;  %v5265_v62 = vld [vmem:[#allocation18_spill] sm:$0xff]  ;;  %v5266_v57 = vld [vmem:[#allocation16_spill] sm:$0xff] }
 0x324   :  { %1464 = vmatprep.subr.bf16.mxu0 %v3589_v0  ;;  %1505 = vmatprep.subr.bf16.mxu1 %v3594_v58  ;;  %v5267_v0 = vld [vmem:[#allocation20_spill] sm:$0xff]  ;;  %v5268_v58 = vld [vmem:[#allocation19_spill] sm:$0xff] }
 0x327   :  { %1465 = vmatpush1.bf16.msra.mxu0 %v3597_v63  ;;  %1506 = vmatpush1.bf16.msra.mxu1 %v5261_v12  ;;  %v5269_v63 = vld [vmem:[#allocation22_spill] sm:$0xff]  ;;  %v5270_v12 = vld [vmem:[#allocation21_spill] sm:$0xff] }
 0x328   :  { %1583 = vmatprep.subr.bf16.mxu0 %v5262_v61  ;;  %1624 = vmatprep.subr.bf16.mxu1 %v5263_v47  ;;  %v5271_v61 = vld [vmem:[#allocation23_spill] sm:$0xff]  ;;  %v5272_v47 = vld [vmem:[#allocation24_spill] sm:$0xff] }
 0x32a   :  { %1467 = vmatmul.mubr.bf16.vlgmr.msra.gmra.mrb[20].mxu0 %v3854_v40  ;;  %1508 = vmatmul.mubr.bf16.vlgmr.msra.gmra.mrb[20].mxu1 %v3854_v40  ;;  %v5274_v40 = vld [vmem:[#allocation25_spill] sm:$0xff] }
 0x32b   :  { %1584 = vmatpush1.bf16.msra.mxu0 %v5264_v15  ;;  %1625 = vmatpush1.bf16.msra.mxu1 %v5265_v62  ;;  %v5275_v15 = vld [vmem:[#allocation27_spill] sm:$0xff]  ;;  %v5276_v62 = vld [vmem:[#allocation28_spill] sm:$0xff] }
 0x32c   :  { %1585 = vmatprep.subr.bf16.mxu0 %v5266_v57  ;;  %1626 = vmatprep.subr.bf16.mxu1 %v5267_v0  ;;  %v5277_v57 = vld [vmem:[#allocation30_spill] sm:$0xff]  ;;  %v5278_v0 = vld [vmem:[#allocation29_spill] sm:$0xff] }
 0x32f   :  { %1586 = vmatpush1.bf16.msra.mxu0 %v5268_v58  ;;  %1627 = vmatpush1.bf16.msra.mxu1 %v5269_v63  ;;  %v5279_v58 = vld [vmem:[#allocation31_spill] sm:$0xff]  ;;  %v5280_v63 = vld [vmem:[#allocation32_spill] sm:$0xff] }
 0x330   :  { %1587 = vmatprep.subr.bf16.mxu0 %v5270_v12  ;;  %1628 = vmatprep.subr.bf16.mxu1 %v5271_v61  ;;  %v5281_v12 = vld [vmem:[#allocation34_spill] sm:$0xff]  ;;  %v5282_v61 = vld [vmem:[#allocation33_spill] sm:$0xff] }
 0x333   :  { %1588 = vmatpush1.bf16.msra.mxu0 %v5272_v47  ;;  %1629 = vmatpush1.bf16.msra.mxu1 %v5273_v55  ;;  %v5283_v47 = vld [vmem:[#allocation35_spill] sm:$0xff]  ;;  %v5284_v55 = vld [vmem:[#allocation36_spill] sm:$0xff] }
 0x334   :  { %1589 = vmatprep.subr.bf16.mxu0 %v5274_v40  ;;  %1630 = vmatprep.subr.bf16.mxu1 %v5275_v15  ;;  %v5285_v40 = vld [vmem:[#allocation38_spill] sm:$0xff]  ;;  %v5286_v15 = vld [vmem:[#allocation37_spill] sm:$0xff] }
 0x337   :  { %1590 = vmatpush1.bf16.msra.mxu0 %v5276_v62  ;;  %1631 = vmatpush1.bf16.msra.mxu1 %v5277_v57  ;;  %v5287_v62 = vld [vmem:[#allocation39_spill] sm:$0xff]  ;;  %v5288_v57 = vld [vmem:[#allocation40_spill] sm:$0xff] }
 0x338   :  { %1591 = vmatprep.subr.bf16.mxu0 %v5278_v0  ;;  %1632 = vmatprep.subr.bf16.mxu1 %v5279_v58  ;;  %v5289_v0 = vld [vmem:[#allocation42_spill] sm:$0xff]  ;;  %v5290_v58 = vld [vmem:[#allocation41_spill] sm:$0xff] }
 0x33b   :  { %1592 = vmatpush1.bf16.msra.mxu0 %v5280_v63  ;;  %1633 = vmatpush1.bf16.msra.mxu1 %v5281_v12  ;;  %v5291_v63 = vld [vmem:[#allocation43_spill] sm:$0xff]  ;;  %v5292_v12 = vld [vmem:[#allocation44_spill] sm:$0xff] }
 0x33c   :  { %1593 = vmatprep.subr.bf16.mxu0 %v5282_v61  ;;  %1634 = vmatprep.subr.bf16.mxu1 %v5283_v47  ;;  %v5293_v61 = vld [vmem:[#allocation46_spill] sm:$0xff]  ;;  %v5294_v47 = vld [vmem:[#allocation45_spill] sm:$0xff] }
 0x33f   :  { %1594 = vmatpush1.bf16.msra.mxu0 %v5284_v55  ;;  %1635 = vmatpush1.bf16.msra.mxu1 %v5285_v40  ;;  %v5295_v55 = vld [vmem:[#allocation47_spill] sm:$0xff]  ;;  %v5296_v40 = vld [vmem:[#allocation48_spill] sm:$0xff] }
 0x340   :  { %1595 = vmatprep.subr.bf16.mxu0 %v5286_v15  ;;  %1636 = vmatprep.subr.bf16.mxu1 %v5287_v62  ;;  %v5297_v15 = vld [vmem:[#allocation50_spill] sm:$0xff]  ;;  %v5298_v62 = vld [vmem:[#allocation49_spill] sm:$0xff] }
 0x343   :  { %1596 = vmatpush1.bf16.msra.mxu0 %v5288_v57  ;;  %1637 = vmatpush1.bf16.msra.mxu1 %v5289_v0  ;;  %v5299_v57 = vld [vmem:[#allocation51_spill] sm:$0xff]  ;;  %v5300_v0 = vld [vmem:[#allocation52_spill] sm:$0xff] }
 0x344   :  { %1597 = vmatprep.subr.bf16.mxu0 %v5290_v58  ;;  %1638 = vmatprep.subr.bf16.mxu1 %v5291_v63  ;;  %v5301_v58 = vld [vmem:[#allocation54_spill] sm:$0xff]  ;;  %v5302_v63 = vld [vmem:[#allocation53_spill] sm:$0xff] }
 0x347   :  { %1598 = vmatpush1.bf16.msra.mxu0 %v5292_v12  ;;  %1639 = vmatpush1.bf16.msra.mxu1 %v5293_v61  ;;  %v5303_v12 = vld [vmem:[#allocation55_spill] sm:$0xff]  ;;  %v5304_v61 = vld [vmem:[#allocation56_spill] sm:$0xff] }
 0x348   :  { %1599 = vmatprep.subr.bf16.mxu0 %v5294_v47  ;;  %1640 = vmatprep.subr.bf16.mxu1 %v5295_v55  ;;  %v5305_v47 = vld [vmem:[#allocation58_spill] sm:$0xff]  ;;  %v5306_v55 = vld [vmem:[#allocation57_spill] sm:$0xff] }
 0x34b   :  { %1600 = vmatpush1.bf16.msra.mxu0 %v5296_v40  ;;  %1641 = vmatpush1.bf16.msra.mxu1 %v5297_v15  ;;  %v5307_v40 = vld [vmem:[#allocation59_spill] sm:$0xff]  ;;  %v5308_v15 = vld [vmem:[#allocation60_spill] sm:$0xff] }
 0x34c   :  { %1601 = vmatprep.subr.bf16.mxu0 %v5298_v62  ;;  %1642 = vmatprep.subr.bf16.mxu1 %v5299_v57  ;;  %v5309_v62 = vld [vmem:[#allocation62_spill] sm:$0xff]  ;;  %v5310_v57 = vld [vmem:[#allocation61_spill] sm:$0xff] }
 0x34f   :  { %1602 = vmatpush1.bf16.msra.mxu0 %v5300_v0  ;;  %1643 = vmatpush1.bf16.msra.mxu1 %v5301_v58  ;;  %v5311_v0 = vld [vmem:[#allocation63_spill] sm:$0xff]  ;;  %v5312_v58 = vld [vmem:[#allocation64_spill] sm:$0xff] }
 0x350   :  { %1603 = vmatprep.subr.bf16.mxu0 %v5302_v63  ;;  %1644 = vmatprep.subr.bf16.mxu1 %v5303_v12  ;;  %v5313_v63 = vld [vmem:[#allocation66_spill] sm:$0xff]  ;;  %v5314_v12 = vld [vmem:[#allocation65_spill] sm:$0xff] }
 0x353   :  { %1604 = vmatpush1.bf16.msra.mxu0 %v5304_v61  ;;  %1645 = vmatpush1.bf16.msra.mxu1 %v5305_v47  ;;  %v5315_v61 = vld [vmem:[#allocation67_spill] sm:$0xff]  ;;  %v5316_v47 = vld [vmem:[#allocation68_spill] sm:$0xff] }
 0x354   :  { %1605 = vmatprep.subr.bf16.mxu0 %v5306_v55  ;;  %1646 = vmatprep.subr.bf16.mxu1 %v5307_v40  ;;  %v5317_v55 = vld [vmem:[#allocation70_spill] sm:$0xff]  ;;  %v5318_v40 = vld [vmem:[#allocation69_spill] sm:$0xff] }
 0x357   :  { %1606 = vmatpush1.bf16.msra.mxu0 %v5308_v15  ;;  %1647 = vmatpush1.bf16.msra.mxu1 %v5309_v62  ;;  %v5319_v15 = vld [vmem:[#allocation71_spill] sm:$0xff]  ;;  %v5320_v62 = vld [vmem:[#allocation72_spill] sm:$0xff] }
 0x358   :  { %1607 = vmatprep.subr.bf16.mxu0 %v5310_v57  ;;  %1648 = vmatprep.subr.bf16.mxu1 %v5311_v0  ;;  %v5321_v57 = vld [vmem:[#allocation74_spill] sm:$0xff]  ;;  %v5322_v0 = vld [vmem:[#allocation73_spill] sm:$0xff] }
 0x35b   :  { %1608 = vmatpush1.bf16.msra.mxu0 %v5312_v58  ;;  %1649 = vmatpush1.bf16.msra.mxu1 %v5313_v63  ;;  %v5323_v58 = vld [vmem:[#allocation75_spill] sm:$0xff]  ;;  %v5324_v63 = vld [vmem:[#allocation76_spill] sm:$0xff] }
 0x35c   :  { %1609 = vmatprep.subr.bf16.mxu0 %v5314_v12  ;;  %1650 = vmatprep.subr.bf16.mxu1 %v5315_v61  ;;  %v5325_v12 = vld [vmem:[#allocation78_spill] sm:$0xff]  ;;  %v5326_v61 = vld [vmem:[#allocation77_spill] sm:$0xff] }
 0x35f   :  { %1610 = vmatpush1.bf16.msra.mxu0 %v5316_v47  ;;  %1651 = vmatpush1.bf16.msra.mxu1 %v5317_v55  ;;  %v5327_v47 = vld [vmem:[#allocation79_spill] sm:$0xff] }
 0x360   :  { %1611 = vmatprep.subr.bf16.mxu0 %v5318_v40  ;;  %1652 = vmatprep.subr.bf16.mxu1 %v5319_v15 }
 0x363   :  { %1612 = vmatpush1.bf16.msra.mxu0 %v5320_v62  ;;  %1653 = vmatpush1.bf16.msra.mxu1 %v5321_v57 }
 0x364   :  { %1613 = vmatprep.subr.bf16.mxu0 %v5322_v0  ;;  %1654 = vmatprep.subr.bf16.mxu1 %v5323_v58  ;;  %v1338_v0 = vld [vmem:[#allocation4 + $0x40] sm:$0xff]  ;;  %v1345_v58 = vunpack.c.h.bf16 %v1339_v41  ;;  %v1341_v41 = vld [vmem:[#allocation4 + $0x58] sm:$0xff] }
 0x365   :  { %v1342_v13 = vunpack.c.l.bf16 %v1338_v0 }
 0x367   :  { %1614 = vmatpush1.bf16.msra.mxu0 %v5324_v63  ;;  %1655 = vmatpush1.bf16.msra.mxu1 %v5325_v12  ;;  %v1343_v63 = vunpack.c.h.bf16 %v1338_v0 }
 0x368   :  { %1665 = vmatprep.subr.bf16.mxu0 %v5326_v61  ;;  %1706 = vmatprep.subr.bf16.mxu1 %v5327_v47 }
 0x3bd   :  { %v1386_v55 = vpop.f32.mrb[16].mxu0  ;;  %v1427_v40 = vpop.f32.mrb[16].mxu1 }
 0x3be   :  { %v1388_v33 = vpop.f32.mrb[17].mxu0  ;;  %v1429_v15 = vpop.f32.mrb[17].mxu1  ;;  %v1518_v42 = vadd.f32 %v1427_v40, %v1344_v22  ;;  %v1516_v1 = vadd.f32 %v1386_v55, %v1342_v13  ;;  %v1348_v55 = vunpack.c.l.bf16 %v1341_v41 }
 0x3bf   :  { %v1390_v25 = vpop.f32.mrb[18].mxu0  ;;  %v1431_v62 = vpop.f32.mrb[18].mxu1  ;;  %v1519_v12 = vadd.f32 %v1429_v15, %v1345_v58  ;;  %v1517_v61 = vadd.f32 %v1388_v33, %v1343_v63  ;;  %v1346_v15 = vunpack.c.l.bf16 %v1340_v31  ;;  %v1347_v63 = vunpack.c.h.bf16 %v1340_v31 }
 0x3c0   :  { %v1391_v3 = vpop.f32.mrb[19].mxu0  ;;  %v1432_v57 = vpop.f32.mrb[19].mxu1  ;;  %v1526_v47 = vadd.f32 %v1518_v42, %v5227_v16  ;;  %v1524_v60 = vadd.f32 %v1516_v1, %v5229_v11  ;;  %v1349_v33 = vunpack.c.h.bf16 %v1341_v41 }
 0x3c1   :  { %v1527_v8 = vadd.f32 %v1519_v12, %v5228_v17  ;;  %v1525_v25 = vadd.f32 %v1517_v61, %v5230_v32 }
 0x3c2   :  { %v1540_v3 = vmul.f32 0.5, %v1526_v47  ;;  %v1532_v57 = vmul.f32 0.5, %v1524_v60 }
 0x3c3   :  { %v1541_v62 = vmul.f32 0.5, %v1527_v8  ;;  %v1533_v26 = vmul.f32 0.5, %v1525_v25 }
 0x3c4   :  { %2932 = vtanh.f32 %v1540_v3 }
 0x3c5   :  { %2934 = vtanh.f32 %v1541_v62 }
 0x3c6   :  { %2936 = vtanh.f32 %v1532_v57 }
 0x3c7   :  { %2938 = vtanh.f32 %v1533_v26 }
 0x3ce   :  { %v2933_v31 = vpop.eup %2932 }
 0x3cf   :  { %v2935_v57 = vpop.eup %2934 }
 0x3d0   :  { %v2937_v41 = vpop.eup %2936 }
 0x3fd   :  { %v1468_v0 = vpop.f32.mrb[20].mxu0  ;;  %v1509_v12 = vpop.f32.mrb[20].mxu1 }
 0x3fe   :  { %v1520_v58 = vadd.f32 %v1468_v0, %v1346_v15  ;;  %v1522_v1 = vadd.f32 %v1509_v12, %v1348_v55  ;;  %v1470_v42 = vpop.f32.mrb[21].mxu0  ;;  %v1511_v13 = vpop.f32.mrb[21].mxu1  ;;  %v1544_v55 = vadd.f32 1.0, %v2933_v31  ;;  %v1536_v12 = vadd.f32 1.0, %v2937_v41 }
 0x3ff   :  { %v1521_v47 = vadd.f32 %v1470_v42, %v1347_v63  ;;  %v1523_v8 = vadd.f32 %v1511_v13, %v1349_v33  ;;  %v1472_v60 = vpop.f32.mrb[22].mxu0  ;;  %v1513_v22 = vpop.f32.mrb[22].mxu1  ;;  %v1545_v33 = vadd.f32 1.0, %v2935_v57 }
 0x400   :  { %v1528_v61 = vadd.f32 %v1520_v58, %v3686_v18  ;;  %v1473_v40 = vpop.f32.mrb[23].mxu0  ;;  %v1514_v25 = vpop.f32.mrb[23].mxu1  ;;  %v1530_v3 = vadd.f32 %v1522_v1, %v3690_v56  ;;  %v1546_v42 = vmul.f32 0.5, %v1544_v55  ;;  %v1538_v1 = vmul.f32 0.5, %v1536_v12 }
 0x401   :  { %v1529_v26 = vadd.f32 %v1521_v47, %v3688_v59  ;;  %v1531_v62 = vadd.f32 %v1523_v8, %v3692_v38  ;;  %v2939_v15 = vpop.eup %2938  ;;  %v1547_v13 = vmul.f32 0.5, %v1545_v33 }
 0x402   :  { %2940 = vtanh.f32 %v1528_v61  ;;  %v1550_v63 = vmul.f32 0.5, %v1530_v3  ;;  %v1537_v58 = vadd.f32 1.0, %v2939_v15  ;;  %v1558_v8 = vmul.f32 %v1546_v42, %v3848_v4  ;;  %v5329_v42 = vld [vmem:[#allocation100_spill] sm:$0xff] }
 0x403   :  { %2942 = vtanh.f32 %v1529_v26  ;;  %v1551_v0 = vmul.f32 0.5, %v1531_v62  ;;  %v1559_v40 = vmul.f32 %v1547_v13, %v3850_v10  ;;  %v5330_v13 = vld [vmem:[#allocation102_spill] sm:$0xff] }
 0x404   :  { %2944 = vtanh.f32 %v1550_v63  ;;  %v1539_v60 = vmul.f32 0.5, %v1537_v58  ;;  %v5328_v58 = vld [vmem:[#allocation99_spill] sm:$0xff] }
 0x405   :  { %2946 = vtanh.f32 %v1551_v0 }
 0x40c   :  { %v2941_v47 = vpop.eup %2940 }
 0x40d   :  { %v2943_v22 = vpop.eup %2942  ;;  %v1560_v61 = vmul.f32 %v2941_v47, %v1538_v1  ;;  %v5331_v1 = vld [vmem:[#allocation101_spill] sm:$0xff]  ;;  %v5332_v47 = vld [vmem:[#allocation103_spill] sm:$0xff] }
 0x40e   :  { %v1561_v25 = vmul.f32 %v2943_v22, %v1539_v60  ;;  %v2945_v31 = vpop.eup %2944  ;;  %v5333_v60 = vld [vmem:[#allocation104_spill] sm:$0xff]  ;;  %v5334_v22 = vld [vmem:[#allocation106_spill] sm:$0xff] }
 0x40f   :  { %v3998_v26 = vadd.f32 %v1560_v61, %v1558_v8  ;;  %v2947_v62 = vpop.eup %2946  ;;  %v1554_v57 = vadd.f32 1.0, %v2945_v31  ;;  %v5335_v8 = vld [vmem:[#allocation110_spill] sm:$0xff]  ;;  %v5336_v61 = vld [vmem:[#allocation119_spill] sm:$0xff]  ;;  %v5339_v31 = vld [vmem:[#allocation121_spill] sm:$0xff] }
 0x410   :  { %v4000_v3 = vadd.f32 %v1561_v25, %v1559_v40  ;;  %v1555_v41 = vadd.f32 1.0, %v2947_v62  ;;  %v5337_v40 = vld [vmem:[#allocation120_spill] sm:$0xff]  ;;  %v5338_v25 = vld [vmem:[#allocation122_spill] sm:$0xff]  ;;  %v5340_v62 = vld [vmem:[#allocation123_spill] sm:$0xff] }
 0x411   :  { %2948 = vtanh.f32 %v3998_v26  ;;  %v1556_v15 = vmul.f32 0.5, %v1554_v57  ;;  %v5341_v57 = vld [vmem:[#allocation124_spill] sm:$0xff] }
 0x412   :  { %2950 = vtanh.f32 %v4000_v3  ;;  %v1557_v63 = vmul.f32 0.5, %v1555_v41  ;;  %v5342_v41 = vld [vmem:[#allocation126_spill] sm:$0xff] }
 0x41b   :  { %v2949_v55 = vpop.eup %2948 }
 0x41c   :  { %v2951_v4 = vpop.eup %2950  ;;  %v1566_v33 = vmul.f32 %v2949_v55, %v1556_v15  ;;  %v5343_v15 = vld [vmem:[#allocation125_spill] sm:$0xff]  ;;  %v5344_v55 = vld [vmem:[#allocation127_spill] sm:$0xff] }
 0x41d   :  { %v1567_v0 = vmul.f32 %v2951_v4, %v1557_v63  ;;  %v5345_v63 = vld [vmem:[#allocation128_spill] sm:$0xff]  ;;  %v5346_v4 = vld [vmem:[#allocation130_spill] sm:$0xff] }
 0x41e   :  { %v4004_v12 = vpack.c.bf16 %v1566_v33, %v1566_v33  ;;  %v5347_v33 = vld [vmem:[#allocation129_spill] sm:$0xff] }
 0x41f   :  { %v1582_v10 = vpack.c.bf16 %v1567_v0, %v1567_v0  ;;  %v5348_v0 = vld [vmem:[#allocation131_spill] sm:$0xff] }
 0x421   :  { %1615 = vmatprep.mubr.bf16.mxu0 %v1582_v10  ;;  %1656 = vmatprep.mubr.bf16.mxu1 %v1582_v10 }
 0x422   :  { %1616 = vmatmul.mubr.bf16.vlgmr.msra.gmra.mrb[24].mxu0 %v4004_v12  ;;  %1657 = vmatmul.mubr.bf16.vlgmr.msra.gmra.mrb[24].mxu1 %v4004_v12 }
 0x423   :  { %1666 = vmatpush1.bf16.msra.mxu0 %v5137_v49  ;;  %1707 = vmatpush1.bf16.msra.mxu1 %v5138_v39 }
 0x424   :  { %1697 = vmatprep.mubr.bf16.mxu0 %v1582_v10  ;;  %1738 = vmatprep.mubr.bf16.mxu1 %v1582_v10  ;;  %v5349_v10 = vld [vmem:[#allocation132_spill] sm:$0xff] }
 0x425   :  { %1667 = vmatprep.subr.bf16.mxu0 %v5139_v23  ;;  %1708 = vmatprep.subr.bf16.mxu1 %v5140_v14 }
 0x427   :  { %1668 = vmatpush1.bf16.msra.mxu0 %v5141_v34  ;;  %1709 = vmatpush1.bf16.msra.mxu1 %v5142_v7 }
 0x428   :  { %1669 = vmatprep.subr.bf16.mxu0 %v5143_v6  ;;  %1710 = vmatprep.subr.bf16.mxu1 %v5144_v46 }
 0x42b   :  { %1670 = vmatpush1.bf16.msra.mxu0 %v5231_v43  ;;  %1711 = vmatpush1.bf16.msra.mxu1 %v5232_v45 }
 0x42c   :  { %1671 = vmatprep.subr.bf16.mxu0 %v5233_v44  ;;  %1712 = vmatprep.subr.bf16.mxu1 %v5234_v21 }
 0x42f   :  { %1672 = vmatpush1.bf16.msra.mxu0 %v5235_v48  ;;  %1713 = vmatpush1.bf16.msra.mxu1 %v5236_v5 }
 0x430   :  { %1673 = vmatprep.subr.bf16.mxu0 %v5237_v51  ;;  %1714 = vmatprep.subr.bf16.mxu1 %v5238_v9 }
 0x433   :  { %1674 = vmatpush1.bf16.msra.mxu0 %v5239_v52  ;;  %1715 = vmatpush1.bf16.msra.mxu1 %v5240_v53 }
 0x434   :  { %1675 = vmatprep.subr.bf16.mxu0 %v5241_v30  ;;  %1716 = vmatprep.subr.bf16.mxu1 %v5328_v58 }
 0x437   :  { %1676 = vmatpush1.bf16.msra.mxu0 %v5329_v42  ;;  %1717 = vmatpush1.bf16.msra.mxu1 %v5330_v13 }
 0x438   :  { %1677 = vmatprep.subr.bf16.mxu0 %v5331_v1  ;;  %1718 = vmatprep.subr.bf16.mxu1 %v5332_v47 }
 0x43b   :  { %1678 = vmatpush1.bf16.msra.mxu0 %v5333_v60  ;;  %1719 = vmatpush1.bf16.msra.mxu1 %v5334_v22 }
 0x43c   :  { %1679 = vmatprep.subr.bf16.mxu0 %v5249_v50  ;;  %1720 = vmatprep.subr.bf16.mxu1 %v5250_v20 }
 0x43f   :  { %1680 = vmatpush1.bf16.msra.mxu0 %v5251_v36  ;;  %1721 = vmatpush1.bf16.msra.mxu1 %v5335_v8 }
 0x440   :  { %1681 = vmatprep.subr.bf16.mxu0 %v5253_v54  ;;  %1722 = vmatprep.subr.bf16.mxu1 %v5254_v28  ;;  %v1571_v28 = vld [vmem:[#allocation4 + $0x70] sm:$0xff] }
 0x443   :  { %1682 = vmatpush1.bf16.msra.mxu0 %v5255_v37  ;;  %1723 = vmatpush1.bf16.msra.mxu1 %v5256_v29 }
 0x444   :  { %1683 = vmatprep.subr.bf16.mxu0 %v5257_v27  ;;  %1724 = vmatprep.subr.bf16.mxu1 %v5258_v24 }
 0x447   :  { %1684 = vmatpush1.bf16.msra.mxu0 %v5259_v35  ;;  %1725 = vmatpush1.bf16.msra.mxu1 %v5174_v2 }
 0x448   :  { %1685 = vmatprep.subr.bf16.mxu0 %v5175_v19  ;;  %1726 = vmatprep.subr.bf16.mxu1 %v5336_v61  ;;  %v1570_v61 = vld [vmem:[#allocation4 + $0x68] sm:$0xff] }
 0x449   :  { %v1575_v19 = vunpack.c.l.bf16 %v1570_v61 }
 0x44b   :  { %1686 = vmatpush1.bf16.msra.mxu0 %v5337_v40  ;;  %1727 = vmatpush1.bf16.msra.mxu1 %v5338_v25 }
 0x44c   :  { %1687 = vmatprep.subr.bf16.mxu0 %v5339_v31  ;;  %1728 = vmatprep.subr.bf16.mxu1 %v5340_v62  ;;  %v5350_v31 = vld [vmem:[#allocation134_spill] sm:$0xff]  ;;  %v5351_v62 = vld [vmem:[#allocation133_spill] sm:$0xff] }
 0x44f   :  { %1688 = vmatpush1.bf16.msra.mxu0 %v5341_v57  ;;  %1729 = vmatpush1.bf16.msra.mxu1 %v5342_v41  ;;  %v5352_v57 = vld [vmem:[#allocation135_spill] sm:$0xff]  ;;  %v5353_v41 = vld [vmem:[#allocation136_spill] sm:$0xff] }
 0x450   :  { %1689 = vmatprep.subr.bf16.mxu0 %v5343_v15  ;;  %1730 = vmatprep.subr.bf16.mxu1 %v5344_v55  ;;  %v5354_v15 = vld [vmem:[#allocation138_spill] sm:$0xff]  ;;  %v5355_v55 = vld [vmem:[#allocation137_spill] sm:$0xff] }
 0x453   :  { %1690 = vmatpush1.bf16.msra.mxu0 %v5345_v63  ;;  %1731 = vmatpush1.bf16.msra.mxu1 %v5346_v4  ;;  %v5356_v63 = vld [vmem:[#allocation139_spill] sm:$0xff]  ;;  %v5357_v4 = vld [vmem:[#allocation140_spill] sm:$0xff] }
 0x454   :  { %1691 = vmatprep.subr.bf16.mxu0 %v5347_v33  ;;  %1732 = vmatprep.subr.bf16.mxu1 %v5348_v0  ;;  %v5358_v33 = vld [vmem:[#allocation141_spill] sm:$0xff]  ;;  %v5359_v0 = vld [vmem:[#allocation14_spill] sm:$0xff] }
 0x457   :  { %1692 = vmatpush1.bf16.msra.mxu0 %v5349_v10  ;;  %1733 = vmatpush1.bf16.msra.mxu1 %v5350_v31  ;;  %v5360_v10 = vld [vmem:[#allocation17_spill] sm:$0xff] }
 0x458   :  { %1693 = vmatprep.subr.bf16.mxu0 %v5351_v62  ;;  %1734 = vmatprep.subr.bf16.mxu1 %v5352_v57  ;;  %v5361_v57 = vld [vmem:[#allocation15_spill] sm:$0xff]  ;;  %v5370_v62 = vld [vmem:[#allocation26_spill] sm:$0xff] }
 0x45b   :  { %1694 = vmatpush1.bf16.msra.mxu0 %v5353_v41  ;;  %1735 = vmatpush1.bf16.msra.mxu1 %v5354_v15  ;;  %v5362_v41 = vld [vmem:[#allocation18_spill] sm:$0xff]  ;;  %v5363_v15 = vld [vmem:[#allocation16_spill] sm:$0xff] }
 0x45c   :  { %1695 = vmatprep.subr.bf16.mxu0 %v5355_v55  ;;  %1736 = vmatprep.subr.bf16.mxu1 %v5356_v63  ;;  %v5364_v55 = vld [vmem:[#allocation20_spill] sm:$0xff]  ;;  %v5365_v63 = vld [vmem:[#allocation19_spill] sm:$0xff] }
 0x45f   :  { %1696 = vmatpush1.bf16.msra.mxu0 %v5357_v4  ;;  %1737 = vmatpush1.bf16.msra.mxu1 %v5358_v33  ;;  %v5366_v4 = vld [vmem:[#allocation22_spill] sm:$0xff]  ;;  %v5367_v33 = vld [vmem:[#allocation21_spill] sm:$0xff] }
 0x460   :  { %1814 = vmatprep.subr.bf16.mxu0 %v5359_v0  ;;  %1855 = vmatprep.subr.bf16.mxu1 %v5360_v10  ;;  %v5368_v0 = vld [vmem:[#allocation23_spill] sm:$0xff]  ;;  %v5369_v10 = vld [vmem:[#allocation24_spill] sm:$0xff] }
 0x462   :  { %1698 = vmatmul.mubr.bf16.vlgmr.msra.gmra.mrb[28].mxu0 %v4004_v12  ;;  %1739 = vmatmul.mubr.bf16.vlgmr.msra.gmra.mrb[28].mxu1 %v4004_v12  ;;  %v5371_v12 = vld [vmem:[#allocation25_spill] sm:$0xff] }
 0x463   :  { %1815 = vmatpush1.bf16.msra.mxu0 %v5361_v57  ;;  %1856 = vmatpush1.bf16.msra.mxu1 %v5362_v41  ;;  %v5372_v57 = vld [vmem:[#allocation27_spill] sm:$0xff]  ;;  %v5373_v41 = vld [vmem:[#allocation28_spill] sm:$0xff] }
 0x464   :  { %1816 = vmatprep.subr.bf16.mxu0 %v5363_v15  ;;  %1857 = vmatprep.subr.bf16.mxu1 %v5364_v55  ;;  %v5374_v15 = vld [vmem:[#allocation30_spill] sm:$0xff]  ;;  %v5375_v55 = vld [vmem:[#allocation29_spill] sm:$0xff] }
 0x467   :  { %1817 = vmatpush1.bf16.msra.mxu0 %v5365_v63  ;;  %1858 = vmatpush1.bf16.msra.mxu1 %v5366_v4  ;;  %v5376_v63 = vld [vmem:[#allocation31_spill] sm:$0xff]  ;;  %v5377_v4 = vld [vmem:[#allocation32_spill] sm:$0xff] }
 0x468   :  { %1818 = vmatprep.subr.bf16.mxu0 %v5367_v33  ;;  %1859 = vmatprep.subr.bf16.mxu1 %v5368_v0  ;;  %v5378_v33 = vld [vmem:[#allocation34_spill] sm:$0xff]  ;;  %v5379_v0 = vld [vmem:[#allocation33_spill] sm:$0xff] }
 0x46b   :  { %1819 = vmatpush1.bf16.msra.mxu0 %v5369_v10  ;;  %1860 = vmatpush1.bf16.msra.mxu1 %v5370_v62  ;;  %v5380_v10 = vld [vmem:[#allocation35_spill] sm:$0xff]  ;;  %v5381_v62 = vld [vmem:[#allocation36_spill] sm:$0xff] }
 0x46c   :  { %1820 = vmatprep.subr.bf16.mxu0 %v5371_v12  ;;  %1861 = vmatprep.subr.bf16.mxu1 %v5372_v57  ;;  %v5382_v12 = vld [vmem:[#allocation38_spill] sm:$0xff]  ;;  %v5383_v57 = vld [vmem:[#allocation37_spill] sm:$0xff] }
 0x46f   :  { %1821 = vmatpush1.bf16.msra.mxu0 %v5373_v41  ;;  %1862 = vmatpush1.bf16.msra.mxu1 %v5374_v15  ;;  %v5384_v41 = vld [vmem:[#allocation39_spill] sm:$0xff]  ;;  %v5385_v15 = vld [vmem:[#allocation40_spill] sm:$0xff] }
 0x470   :  { %1822 = vmatprep.subr.bf16.mxu0 %v5375_v55  ;;  %1863 = vmatprep.subr.bf16.mxu1 %v5376_v63  ;;  %v5386_v55 = vld [vmem:[#allocation42_spill] sm:$0xff]  ;;  %v5387_v63 = vld [vmem:[#allocation41_spill] sm:$0xff] }
 0x473   :  { %1823 = vmatpush1.bf16.msra.mxu0 %v5377_v4  ;;  %1864 = vmatpush1.bf16.msra.mxu1 %v5378_v33  ;;  %v5388_v4 = vld [vmem:[#allocation43_spill] sm:$0xff]  ;;  %v5389_v33 = vld [vmem:[#allocation44_spill] sm:$0xff] }
 0x474   :  { %1824 = vmatprep.subr.bf16.mxu0 %v5379_v0  ;;  %1865 = vmatprep.subr.bf16.mxu1 %v5380_v10  ;;  %v5390_v0 = vld [vmem:[#allocation46_spill] sm:$0xff]  ;;  %v5391_v10 = vld [vmem:[#allocation45_spill] sm:$0xff] }
 0x477   :  { %1825 = vmatpush1.bf16.msra.mxu0 %v5381_v62  ;;  %1866 = vmatpush1.bf16.msra.mxu1 %v5382_v12  ;;  %v5392_v62 = vld [vmem:[#allocation47_spill] sm:$0xff]  ;;  %v5393_v12 = vld [vmem:[#allocation48_spill] sm:$0xff] }
 0x478   :  { %1826 = vmatprep.subr.bf16.mxu0 %v5383_v57  ;;  %1867 = vmatprep.subr.bf16.mxu1 %v5384_v41  ;;  %v5394_v57 = vld [vmem:[#allocation50_spill] sm:$0xff]  ;;  %v5395_v41 = vld [vmem:[#allocation49_spill] sm:$0xff] }
 0x47b   :  { %1827 = vmatpush1.bf16.msra.mxu0 %v5385_v15  ;;  %1868 = vmatpush1.bf16.msra.mxu1 %v5386_v55  ;;  %v5396_v15 = vld [vmem:[#allocation51_spill] sm:$0xff]  ;;  %v5397_v55 = vld [vmem:[#allocation52_spill] sm:$0xff] }
 0x47c   :  { %1828 = vmatprep.subr.bf16.mxu0 %v5387_v63  ;;  %1869 = vmatprep.subr.bf16.mxu1 %v5388_v4  ;;  %v5398_v63 = vld [vmem:[#allocation54_spill] sm:$0xff]  ;;  %v5399_v4 = vld [vmem:[#allocation53_spill] sm:$0xff] }
 0x47f   :  { %1829 = vmatpush1.bf16.msra.mxu0 %v5389_v33  ;;  %1870 = vmatpush1.bf16.msra.mxu1 %v5390_v0  ;;  %v5400_v33 = vld [vmem:[#allocation55_spill] sm:$0xff]  ;;  %v5401_v0 = vld [vmem:[#allocation56_spill] sm:$0xff] }
 0x480   :  { %1830 = vmatprep.subr.bf16.mxu0 %v5391_v10  ;;  %1871 = vmatprep.subr.bf16.mxu1 %v5392_v62  ;;  %v5402_v10 = vld [vmem:[#allocation58_spill] sm:$0xff]  ;;  %v5403_v62 = vld [vmem:[#allocation57_spill] sm:$0xff] }
 0x483   :  { %1831 = vmatpush1.bf16.msra.mxu0 %v5393_v12  ;;  %1872 = vmatpush1.bf16.msra.mxu1 %v5394_v57  ;;  %v5404_v12 = vld [vmem:[#allocation59_spill] sm:$0xff]  ;;  %v5405_v57 = vld [vmem:[#allocation60_spill] sm:$0xff] }
 0x484   :  { %1832 = vmatprep.subr.bf16.mxu0 %v5395_v41  ;;  %1873 = vmatprep.subr.bf16.mxu1 %v5396_v15  ;;  %v5406_v41 = vld [vmem:[#allocation62_spill] sm:$0xff]  ;;  %v5407_v15 = vld [vmem:[#allocation61_spill] sm:$0xff] }
 0x487   :  { %1833 = vmatpush1.bf16.msra.mxu0 %v5397_v55  ;;  %1874 = vmatpush1.bf16.msra.mxu1 %v5398_v63  ;;  %v5408_v55 = vld [vmem:[#allocation63_spill] sm:$0xff]  ;;  %v5409_v63 = vld [vmem:[#allocation64_spill] sm:$0xff] }
 0x488   :  { %1834 = vmatprep.subr.bf16.mxu0 %v5399_v4  ;;  %1875 = vmatprep.subr.bf16.mxu1 %v5400_v33  ;;  %v5410_v4 = vld [vmem:[#allocation66_spill] sm:$0xff]  ;;  %v5411_v33 = vld [vmem:[#allocation65_spill] sm:$0xff] }
 0x48b   :  { %1835 = vmatpush1.bf16.msra.mxu0 %v5401_v0  ;;  %1876 = vmatpush1.bf16.msra.mxu1 %v5402_v10  ;;  %v5412_v0 = vld [vmem:[#allocation67_spill] sm:$0xff]  ;;  %v5413_v10 = vld [vmem:[#allocation68_spill] sm:$0xff] }
 0x48c   :  { %1836 = vmatprep.subr.bf16.mxu0 %v5403_v62  ;;  %1877 = vmatprep.subr.bf16.mxu1 %v5404_v12  ;;  %v5414_v62 = vld [vmem:[#allocation70_spill] sm:$0xff]  ;;  %v5415_v12 = vld [vmem:[#allocation69_spill] sm:$0xff] }
 0x48f   :  { %1837 = vmatpush1.bf16.msra.mxu0 %v5405_v57  ;;  %1878 = vmatpush1.bf16.msra.mxu1 %v5406_v41  ;;  %v5416_v57 = vld [vmem:[#allocation71_spill] sm:$0xff]  ;;  %v5417_v41 = vld [vmem:[#allocation72_spill] sm:$0xff] }
 0x490   :  { %1838 = vmatprep.subr.bf16.mxu0 %v5407_v15  ;;  %1879 = vmatprep.subr.bf16.mxu1 %v5408_v55  ;;  %v5418_v15 = vld [vmem:[#allocation74_spill] sm:$0xff]  ;;  %v5419_v55 = vld [vmem:[#allocation73_spill] sm:$0xff] }
 0x493   :  { %1839 = vmatpush1.bf16.msra.mxu0 %v5409_v63  ;;  %1880 = vmatpush1.bf16.msra.mxu1 %v5410_v4  ;;  %v5420_v63 = vld [vmem:[#allocation75_spill] sm:$0xff]  ;;  %v5421_v4 = vld [vmem:[#allocation76_spill] sm:$0xff] }
 0x494   :  { %1840 = vmatprep.subr.bf16.mxu0 %v5411_v33  ;;  %1881 = vmatprep.subr.bf16.mxu1 %v5412_v0  ;;  %v5422_v33 = vld [vmem:[#allocation78_spill] sm:$0xff]  ;;  %v5423_v0 = vld [vmem:[#allocation77_spill] sm:$0xff] }
 0x497   :  { %1841 = vmatpush1.bf16.msra.mxu0 %v5413_v10  ;;  %1882 = vmatpush1.bf16.msra.mxu1 %v5414_v62  ;;  %v5424_v10 = vld [vmem:[#allocation79_spill] sm:$0xff] }
 0x498   :  { %1842 = vmatprep.subr.bf16.mxu0 %v5415_v12  ;;  %1883 = vmatprep.subr.bf16.mxu1 %v5416_v57 }
 0x49b   :  { %1843 = vmatpush1.bf16.msra.mxu0 %v5417_v41  ;;  %1884 = vmatpush1.bf16.msra.mxu1 %v5418_v15 }
 0x49c   :  { %1844 = vmatprep.subr.bf16.mxu0 %v5419_v55  ;;  %1885 = vmatprep.subr.bf16.mxu1 %v5420_v63  ;;  %v1569_v55 = vld [vmem:[#allocation4 + $0x60] sm:$0xff]  ;;  %v1576_v63 = vunpack.c.h.bf16 %v1570_v61  ;;  %v1572_v61 = vld [vmem:[#allocation4 + $0x78] sm:$0xff] }
 0x49d   :  { %v1573_v2 = vunpack.c.l.bf16 %v1569_v55 }
 0x49f   :  { %1845 = vmatpush1.bf16.msra.mxu0 %v5421_v4  ;;  %1886 = vmatpush1.bf16.msra.mxu1 %v5422_v33  ;;  %v1574_v4 = vunpack.c.h.bf16 %v1569_v55 }
 0x4a0   :  { %1896 = vmatprep.subr.bf16.mxu0 %v5423_v0  ;;  %1937 = vmatprep.subr.bf16.mxu1 %v5424_v10 }
 0x4f5   :  { %v1617_v62 = vpop.f32.mrb[24].mxu0  ;;  %v1658_v12 = vpop.f32.mrb[24].mxu1 }
 0x4f6   :  { %v1619_v31 = vpop.f32.mrb[25].mxu0  ;;  %v1660_v57 = vpop.f32.mrb[25].mxu1  ;;  %v1749_v35 = vadd.f32 %v1658_v12, %v1575_v19  ;;  %v1747_v24 = vadd.f32 %v1617_v62, %v1573_v2  ;;  %v1577_v19 = vunpack.c.l.bf16 %v1571_v28  ;;  %v1579_v2 = vunpack.c.l.bf16 %v1572_v61 }
 0x4f7   :  { %v1621_v25 = vpop.f32.mrb[26].mxu0  ;;  %v1662_v41 = vpop.f32.mrb[26].mxu1  ;;  %v1750_v33 = vadd.f32 %v1660_v57, %v1576_v63  ;;  %v1748_v0 = vadd.f32 %v1619_v31, %v1574_v4  ;;  %v1578_v31 = vunpack.c.h.bf16 %v1571_v28 }
 0x4f8   :  { %v1622_v40 = vpop.f32.mrb[27].mxu0  ;;  %v1663_v15 = vpop.f32.mrb[27].mxu1  ;;  %v1757_v10 = vadd.f32 %v1749_v35, %v5227_v16  ;;  %v1755_v29 = vadd.f32 %v1747_v24, %v5229_v11  ;;  %v1580_v35 = vunpack.c.h.bf16 %v1572_v61 }
 0x4f9   :  { %v1758_v27 = vadd.f32 %v1750_v33, %v5228_v17  ;;  %v1756_v25 = vadd.f32 %v1748_v0, %v5230_v32 }
 0x4fa   :  { %v1771_v40 = vmul.f32 0.5, %v1757_v10  ;;  %v1763_v15 = vmul.f32 0.5, %v1755_v29 }
 0x4fb   :  { %v1772_v41 = vmul.f32 0.5, %v1758_v27  ;;  %v1764_v37 = vmul.f32 0.5, %v1756_v25 }
 0x4fc   :  { %2952 = vtanh.f32 %v1771_v40 }
 0x4fd   :  { %2954 = vtanh.f32 %v1772_v41 }
 0x4fe   :  { %2956 = vtanh.f32 %v1763_v15 }
 0x4ff   :  { %2958 = vtanh.f32 %v1764_v37 }
 0x506   :  { %v2953_v28 = vpop.eup %2952 }
 0x507   :  { %v2955_v15 = vpop.eup %2954 }
 0x508   :  { %v2957_v61 = vpop.eup %2956 }
 0x535   :  { %v1699_v62 = vpop.f32.mrb[28].mxu0  ;;  %v1740_v57 = vpop.f32.mrb[28].mxu1 }
 0x536   :  { %v1751_v55 = vadd.f32 %v1699_v62, %v1577_v19  ;;  %v1753_v24 = vadd.f32 %v1740_v57, %v1579_v2  ;;  %v1701_v63 = vpop.f32.mrb[29].mxu0  ;;  %v1742_v4 = vpop.f32.mrb[29].mxu1  ;;  %v1775_v2 = vadd.f32 1.0, %v2953_v28  ;;  %v1767_v57 = vadd.f32 1.0, %v2957_v61 }
 0x537   :  { %v1752_v33 = vadd.f32 %v1701_v63, %v1578_v31  ;;  %v1754_v27 = vadd.f32 %v1742_v4, %v1580_v35  ;;  %v1703_v29 = vpop.f32.mrb[30].mxu0  ;;  %v1744_v0 = vpop.f32.mrb[30].mxu1  ;;  %v1776_v35 = vadd.f32 1.0, %v2955_v15 }
 0x538   :  { %v1759_v10 = vadd.f32 %v1751_v55, %v3686_v18  ;;  %v1704_v12 = vpop.f32.mrb[31].mxu0  ;;  %v1745_v25 = vpop.f32.mrb[31].mxu1  ;;  %v1761_v40 = vadd.f32 %v1753_v24, %v3690_v56  ;;  %v1777_v63 = vmul.f32 0.5, %v1775_v2  ;;  %v1769_v24 = vmul.f32 0.5, %v1767_v57 }
 0x539   :  { %v1760_v37 = vadd.f32 %v1752_v33, %v3688_v59  ;;  %v1762_v41 = vadd.f32 %v1754_v27, %v3692_v38  ;;  %v2959_v19 = vpop.eup %2958  ;;  %v1778_v4 = vmul.f32 0.5, %v1776_v35 }
 0x53a   :  { %2960 = vtanh.f32 %v1759_v10  ;;  %v1781_v31 = vmul.f32 0.5, %v1761_v40  ;;  %v1768_v55 = vadd.f32 1.0, %v2959_v19  ;;  %v1789_v27 = vmul.f32 %v1777_v63, %v3998_v26  ;;  %v5426_v63 = vld [vmem:[#allocation112_spill] sm:$0xff] }
 0x53b   :  { %2962 = vtanh.f32 %v1760_v37  ;;  %v1782_v62 = vmul.f32 0.5, %v1762_v41  ;;  %v1790_v12 = vmul.f32 %v1778_v4, %v4000_v3  ;;  %v5427_v4 = vld [vmem:[#allocation114_spill] sm:$0xff] }
 0x53c   :  { %2964 = vtanh.f32 %v1781_v31  ;;  %v1770_v29 = vmul.f32 0.5, %v1768_v55  ;;  %v5425_v55 = vld [vmem:[#allocation111_spill] sm:$0xff] }
 0x53d   :  { %2966 = vtanh.f32 %v1782_v62 }
 0x544   :  { %v2961_v33 = vpop.eup %2960 }
 0x545   :  { %v2963_v0 = vpop.eup %2962  ;;  %v1791_v10 = vmul.f32 %v2961_v33, %v1769_v24  ;;  %v5428_v24 = vld [vmem:[#allocation113_spill] sm:$0xff]  ;;  %v5429_v33 = vld [vmem:[#allocation115_spill] sm:$0xff] }
 0x546   :  { %v1792_v25 = vmul.f32 %v2963_v0, %v1770_v29  ;;  %v2965_v28 = vpop.eup %2964  ;;  %v5430_v29 = vld [vmem:[#allocation116_spill] sm:$0xff]  ;;  %v5431_v0 = vld [vmem:[#allocation118_spill] sm:$0xff] }
 0x547   :  { %v4148_v37 = vadd.f32 %v1791_v10, %v1789_v27  ;;  %v2967_v41 = vpop.eup %2966  ;;  %v1785_v15 = vadd.f32 1.0, %v2965_v28  ;;  %v5432_v27 = vld [vmem:[#allocation117_spill] sm:$0xff]  ;;  %v5433_v10 = vld [vmem:[#allocation119_spill] sm:$0xff] }
 0x548   :  { %v4150_v40 = vadd.f32 %v1792_v25, %v1790_v12  ;;  %v1786_v61 = vadd.f32 1.0, %v2967_v41  ;;  %v5434_v12 = vld [vmem:[#allocation120_spill] sm:$0xff]  ;;  %v5435_v25 = vld [vmem:[#allocation122_spill] sm:$0xff]  ;;  %v5436_v28 = vld [vmem:[#allocation121_spill] sm:$0xff] }
 0x549   :  { %2968 = vtanh.f32 %v4148_v37  ;;  %v1787_v19 = vmul.f32 0.5, %v1785_v15  ;;  %v5437_v41 = vld [vmem:[#allocation123_spill] sm:$0xff]  ;;  %v5438_v15 = vld [vmem:[#allocation124_spill] sm:$0xff] }
 0x54a   :  { %2970 = vtanh.f32 %v4150_v40  ;;  %v1788_v31 = vmul.f32 0.5, %v1786_v61  ;;  %v5439_v61 = vld [vmem:[#allocation126_spill] sm:$0xff] }
 0x553   :  { %v2969_v2 = vpop.eup %2968 }
 0x554   :  { %v2971_v26 = vpop.eup %2970  ;;  %v1797_v35 = vmul.f32 %v2969_v2, %v1787_v19  ;;  %v5440_v19 = vld [vmem:[#allocation125_spill] sm:$0xff]  ;;  %v5441_v2 = vld [vmem:[#allocation127_spill] sm:$0xff] }
 0x555   :  { %v1798_v62 = vmul.f32 %v2971_v26, %v1788_v31  ;;  %v5442_v31 = vld [vmem:[#allocation128_spill] sm:$0xff]  ;;  %v5443_v26 = vld [vmem:[#allocation130_spill] sm:$0xff] }
 0x556   :  { %v4154_v57 = vpack.c.bf16 %v1797_v35, %v1797_v35  ;;  %v5444_v35 = vld [vmem:[#allocation129_spill] sm:$0xff] }
 0x557   :  { %v1813_v3 = vpack.c.bf16 %v1798_v62, %v1798_v62  ;;  %v5445_v62 = vld [vmem:[#allocation131_spill] sm:$0xff] }
 0x559   :  { %1846 = vmatprep.mubr.bf16.mxu0 %v1813_v3  ;;  %1887 = vmatprep.mubr.bf16.mxu1 %v1813_v3 }
 0x55a   :  { %1847 = vmatmul.mubr.bf16.vlgmr.msra.gmra.mrb[32].mxu0 %v4154_v57  ;;  %1888 = vmatmul.mubr.bf16.vlgmr.msra.gmra.mrb[32].mxu1 %v4154_v57 }
 0x55b   :  { %1897 = vmatpush1.bf16.msra.mxu0 %v5137_v49  ;;  %1938 = vmatpush1.bf16.msra.mxu1 %v5138_v39 }
 0x55c   :  { %1928 = vmatprep.mubr.bf16.mxu0 %v1813_v3  ;;  %1969 = vmatprep.mubr.bf16.mxu1 %v1813_v3  ;;  %v5446_v3 = vld [vmem:[#allocation132_spill] sm:$0xff] }
 0x55d   :  { %1898 = vmatprep.subr.bf16.mxu0 %v5139_v23  ;;  %1939 = vmatprep.subr.bf16.mxu1 %v5140_v14 }
 0x55f   :  { %1899 = vmatpush1.bf16.msra.mxu0 %v5141_v34  ;;  %1940 = vmatpush1.bf16.msra.mxu1 %v5142_v7 }
 0x560   :  { %1900 = vmatprep.subr.bf16.mxu0 %v5143_v6  ;;  %1941 = vmatprep.subr.bf16.mxu1 %v5144_v46 }
 0x563   :  { %1901 = vmatpush1.bf16.msra.mxu0 %v5231_v43  ;;  %1942 = vmatpush1.bf16.msra.mxu1 %v5232_v45 }
 0x564   :  { %1902 = vmatprep.subr.bf16.mxu0 %v5233_v44  ;;  %1943 = vmatprep.subr.bf16.mxu1 %v5234_v21 }
 0x567   :  { %1903 = vmatpush1.bf16.msra.mxu0 %v5235_v48  ;;  %1944 = vmatpush1.bf16.msra.mxu1 %v5236_v5 }
 0x568   :  { %1904 = vmatprep.subr.bf16.mxu0 %v5237_v51  ;;  %1945 = vmatprep.subr.bf16.mxu1 %v5238_v9 }
 0x56b   :  { %1905 = vmatpush1.bf16.msra.mxu0 %v5239_v52  ;;  %1946 = vmatpush1.bf16.msra.mxu1 %v5240_v53 }
 0x56c   :  { %1906 = vmatprep.subr.bf16.mxu0 %v5241_v30  ;;  %1947 = vmatprep.subr.bf16.mxu1 %v5328_v58 }
 0x56f   :  { %1907 = vmatpush1.bf16.msra.mxu0 %v5329_v42  ;;  %1948 = vmatpush1.bf16.msra.mxu1 %v5330_v13 }
 0x570   :  { %1908 = vmatprep.subr.bf16.mxu0 %v5331_v1  ;;  %1949 = vmatprep.subr.bf16.mxu1 %v5332_v47 }
 0x573   :  { %1909 = vmatpush1.bf16.msra.mxu0 %v5333_v60  ;;  %1950 = vmatpush1.bf16.msra.mxu1 %v5334_v22 }
 0x574   :  { %1910 = vmatprep.subr.bf16.mxu0 %v5249_v50  ;;  %1951 = vmatprep.subr.bf16.mxu1 %v5250_v20 }
 0x577   :  { %1911 = vmatpush1.bf16.msra.mxu0 %v5251_v36  ;;  %1952 = vmatpush1.bf16.msra.mxu1 %v5335_v8 }
 0x578   :  { %1912 = vmatprep.subr.bf16.mxu0 %v5253_v54  ;;  %1953 = vmatprep.subr.bf16.mxu1 %v5425_v55  ;;  %v1802_v55 = vld [vmem:[#allocation4 + $0x90] sm:$0xff] }
 0x57b   :  { %1913 = vmatpush1.bf16.msra.mxu0 %v5426_v63  ;;  %1954 = vmatpush1.bf16.msra.mxu1 %v5427_v4 }
 0x57c   :  { %1914 = vmatprep.subr.bf16.mxu0 %v5428_v24  ;;  %1955 = vmatprep.subr.bf16.mxu1 %v5429_v33 }
 0x57f   :  { %1915 = vmatpush1.bf16.msra.mxu0 %v5430_v29  ;;  %1956 = vmatpush1.bf16.msra.mxu1 %v5431_v0 }
 0x580   :  { %1916 = vmatprep.subr.bf16.mxu0 %v5432_v27  ;;  %1957 = vmatprep.subr.bf16.mxu1 %v5433_v10  ;;  %v1801_v10 = vld [vmem:[#allocation4 + $0x88] sm:$0xff] }
 0x581   :  { %v1806_v27 = vunpack.c.l.bf16 %v1801_v10 }
 0x583   :  { %1917 = vmatpush1.bf16.msra.mxu0 %v5434_v12  ;;  %1958 = vmatpush1.bf16.msra.mxu1 %v5435_v25 }
 0x584   :  { %1918 = vmatprep.subr.bf16.mxu0 %v5436_v28  ;;  %1959 = vmatprep.subr.bf16.mxu1 %v5437_v41  ;;  %v5447_v28 = vld [vmem:[#allocation134_spill] sm:$0xff]  ;;  %v5448_v41 = vld [vmem:[#allocation133_spill] sm:$0xff] }
 0x587   :  { %1919 = vmatpush1.bf16.msra.mxu0 %v5438_v15  ;;  %1960 = vmatpush1.bf16.msra.mxu1 %v5439_v61  ;;  %v5449_v15 = vld [vmem:[#allocation135_spill] sm:$0xff]  ;;  %v5450_v61 = vld [vmem:[#allocation136_spill] sm:$0xff] }
 0x588   :  { %1920 = vmatprep.subr.bf16.mxu0 %v5440_v19  ;;  %1961 = vmatprep.subr.bf16.mxu1 %v5441_v2  ;;  %v5451_v19 = vld [vmem:[#allocation138_spill] sm:$0xff]  ;;  %v5452_v2 = vld [vmem:[#allocation137_spill] sm:$0xff] }
 0x58b   :  { %1921 = vmatpush1.bf16.msra.mxu0 %v5442_v31  ;;  %1962 = vmatpush1.bf16.msra.mxu1 %v5443_v26  ;;  %v5453_v31 = vld [vmem:[#allocation139_spill] sm:$0xff]  ;;  %v5454_v26 = vld [vmem:[#allocation140_spill] sm:$0xff] }
 0x58c   :  { %1922 = vmatprep.subr.bf16.mxu0 %v5444_v35  ;;  %1963 = vmatprep.subr.bf16.mxu1 %v5445_v62  ;;  %v5455_v35 = vld [vmem:[#allocation141_spill] sm:$0xff]  ;;  %v5456_v62 = vld [vmem:[#allocation14_spill] sm:$0xff] }
 0x58f   :  { %1923 = vmatpush1.bf16.msra.mxu0 %v5446_v3  ;;  %1964 = vmatpush1.bf16.msra.mxu1 %v5447_v28  ;;  %v5457_v3 = vld [vmem:[#allocation17_spill] sm:$0xff] }
 0x590   :  { %1924 = vmatprep.subr.bf16.mxu0 %v5448_v41  ;;  %1965 = vmatprep.subr.bf16.mxu1 %v5449_v15  ;;  %v5458_v15 = vld [vmem:[#allocation15_spill] sm:$0xff]  ;;  %v5467_v41 = vld [vmem:[#allocation26_spill] sm:$0xff] }
 0x593   :  { %1925 = vmatpush1.bf16.msra.mxu0 %v5450_v61  ;;  %1966 = vmatpush1.bf16.msra.mxu1 %v5451_v19  ;;  %v5459_v61 = vld [vmem:[#allocation18_spill] sm:$0xff]  ;;  %v5460_v19 = vld [vmem:[#allocation16_spill] sm:$0xff] }
 0x594   :  { %1926 = vmatprep.subr.bf16.mxu0 %v5452_v2  ;;  %1967 = vmatprep.subr.bf16.mxu1 %v5453_v31  ;;  %v5461_v2 = vld [vmem:[#allocation20_spill] sm:$0xff]  ;;  %v5462_v31 = vld [vmem:[#allocation19_spill] sm:$0xff] }
 0x597   :  { %1927 = vmatpush1.bf16.msra.mxu0 %v5454_v26  ;;  %1968 = vmatpush1.bf16.msra.mxu1 %v5455_v35  ;;  %v5463_v26 = vld [vmem:[#allocation22_spill] sm:$0xff]  ;;  %v5464_v35 = vld [vmem:[#allocation21_spill] sm:$0xff] }
 0x598   :  { %2045 = vmatprep.subr.bf16.mxu0 %v5456_v62  ;;  %2086 = vmatprep.subr.bf16.mxu1 %v5457_v3  ;;  %v5465_v62 = vld [vmem:[#allocation23_spill] sm:$0xff]  ;;  %v5466_v3 = vld [vmem:[#allocation24_spill] sm:$0xff] }
 0x59a   :  { %1929 = vmatmul.mubr.bf16.vlgmr.msra.gmra.mrb[36].mxu0 %v4154_v57  ;;  %1970 = vmatmul.mubr.bf16.vlgmr.msra.gmra.mrb[36].mxu1 %v4154_v57  ;;  %v5468_v57 = vld [vmem:[#allocation25_spill] sm:$0xff] }
 0x59b   :  { %2046 = vmatpush1.bf16.msra.mxu0 %v5458_v15  ;;  %2087 = vmatpush1.bf16.msra.mxu1 %v5459_v61  ;;  %v5469_v15 = vld [vmem:[#allocation27_spill] sm:$0xff]  ;;  %v5470_v61 = vld [vmem:[#allocation28_spill] sm:$0xff] }
 0x59c   :  { %2047 = vmatprep.subr.bf16.mxu0 %v5460_v19  ;;  %2088 = vmatprep.subr.bf16.mxu1 %v5461_v2  ;;  %v5471_v19 = vld [vmem:[#allocation30_spill] sm:$0xff]  ;;  %v5472_v2 = vld [vmem:[#allocation29_spill] sm:$0xff] }
 0x59f   :  { %2048 = vmatpush1.bf16.msra.mxu0 %v5462_v31  ;;  %2089 = vmatpush1.bf16.msra.mxu1 %v5463_v26  ;;  %v5473_v31 = vld [vmem:[#allocation31_spill] sm:$0xff]  ;;  %v5474_v26 = vld [vmem:[#allocation32_spill] sm:$0xff] }
 0x5a0   :  { %2049 = vmatprep.subr.bf16.mxu0 %v5464_v35  ;;  %2090 = vmatprep.subr.bf16.mxu1 %v5465_v62  ;;  %v5475_v35 = vld [vmem:[#allocation34_spill] sm:$0xff]  ;;  %v5476_v62 = vld [vmem:[#allocation33_spill] sm:$0xff] }
 0x5a3   :  { %2050 = vmatpush1.bf16.msra.mxu0 %v5466_v3  ;;  %2091 = vmatpush1.bf16.msra.mxu1 %v5467_v41  ;;  %v5477_v3 = vld [vmem:[#allocation35_spill] sm:$0xff]  ;;  %v5478_v41 = vld [vmem:[#allocation36_spill] sm:$0xff] }
 0x5a4   :  { %2051 = vmatprep.subr.bf16.mxu0 %v5468_v57  ;;  %2092 = vmatprep.subr.bf16.mxu1 %v5469_v15  ;;  %v5479_v57 = vld [vmem:[#allocation38_spill] sm:$0xff]  ;;  %v5480_v15 = vld [vmem:[#allocation37_spill] sm:$0xff] }
 0x5a7   :  { %2052 = vmatpush1.bf16.msra.mxu0 %v5470_v61  ;;  %2093 = vmatpush1.bf16.msra.mxu1 %v5471_v19  ;;  %v5481_v61 = vld [vmem:[#allocation39_spill] sm:$0xff]  ;;  %v5482_v19 = vld [vmem:[#allocation40_spill] sm:$0xff] }
 0x5a8   :  { %2053 = vmatprep.subr.bf16.mxu0 %v5472_v2  ;;  %2094 = vmatprep.subr.bf16.mxu1 %v5473_v31  ;;  %v5483_v2 = vld [vmem:[#allocation42_spill] sm:$0xff]  ;;  %v5484_v31 = vld [vmem:[#allocation41_spill] sm:$0xff] }
 0x5ab   :  { %2054 = vmatpush1.bf16.msra.mxu0 %v5474_v26  ;;  %2095 = vmatpush1.bf16.msra.mxu1 %v5475_v35  ;;  %v5485_v26 = vld [vmem:[#allocation43_spill] sm:$0xff]  ;;  %v5486_v35 = vld [vmem:[#allocation44_spill] sm:$0xff] }
 0x5ac   :  { %2055 = vmatprep.subr.bf16.mxu0 %v5476_v62  ;;  %2096 = vmatprep.subr.bf16.mxu1 %v5477_v3  ;;  %v5487_v62 = vld [vmem:[#allocation46_spill] sm:$0xff]  ;;  %v5488_v3 = vld [vmem:[#allocation45_spill] sm:$0xff] }
 0x5af   :  { %2056 = vmatpush1.bf16.msra.mxu0 %v5478_v41  ;;  %2097 = vmatpush1.bf16.msra.mxu1 %v5479_v57  ;;  %v5489_v41 = vld [vmem:[#allocation47_spill] sm:$0xff]  ;;  %v5490_v57 = vld [vmem:[#allocation48_spill] sm:$0xff] }
 0x5b0   :  { %2057 = vmatprep.subr.bf16.mxu0 %v5480_v15  ;;  %2098 = vmatprep.subr.bf16.mxu1 %v5481_v61  ;;  %v5491_v15 = vld [vmem:[#allocation50_spill] sm:$0xff]  ;;  %v5492_v61 = vld [vmem:[#allocation49_spill] sm:$0xff] }
 0x5b3   :  { %2058 = vmatpush1.bf16.msra.mxu0 %v5482_v19  ;;  %2099 = vmatpush1.bf16.msra.mxu1 %v5483_v2  ;;  %v5493_v19 = vld [vmem:[#allocation51_spill] sm:$0xff]  ;;  %v5494_v2 = vld [vmem:[#allocation52_spill] sm:$0xff] }
 0x5b4   :  { %2059 = vmatprep.subr.bf16.mxu0 %v5484_v31  ;;  %2100 = vmatprep.subr.bf16.mxu1 %v5485_v26  ;;  %v5495_v31 = vld [vmem:[#allocation54_spill] sm:$0xff]  ;;  %v5496_v26 = vld [vmem:[#allocation53_spill] sm:$0xff] }
 0x5b7   :  { %2060 = vmatpush1.bf16.msra.mxu0 %v5486_v35  ;;  %2101 = vmatpush1.bf16.msra.mxu1 %v5487_v62  ;;  %v5497_v35 = vld [vmem:[#allocation55_spill] sm:$0xff]  ;;  %v5498_v62 = vld [vmem:[#allocation56_spill] sm:$0xff] }
 0x5b8   :  { %2061 = vmatprep.subr.bf16.mxu0 %v5488_v3  ;;  %2102 = vmatprep.subr.bf16.mxu1 %v5489_v41  ;;  %v5499_v3 = vld [vmem:[#allocation58_spill] sm:$0xff]  ;;  %v5500_v41 = vld [vmem:[#allocation57_spill] sm:$0xff] }
 0x5bb   :  { %2062 = vmatpush1.bf16.msra.mxu0 %v5490_v57  ;;  %2103 = vmatpush1.bf16.msra.mxu1 %v5491_v15  ;;  %v5501_v57 = vld [vmem:[#allocation59_spill] sm:$0xff]  ;;  %v5502_v15 = vld [vmem:[#allocation60_spill] sm:$0xff] }
 0x5bc   :  { %2063 = vmatprep.subr.bf16.mxu0 %v5492_v61  ;;  %2104 = vmatprep.subr.bf16.mxu1 %v5493_v19  ;;  %v5503_v61 = vld [vmem:[#allocation62_spill] sm:$0xff]  ;;  %v5504_v19 = vld [vmem:[#allocation61_spill] sm:$0xff] }
 0x5bf   :  { %2064 = vmatpush1.bf16.msra.mxu0 %v5494_v2  ;;  %2105 = vmatpush1.bf16.msra.mxu1 %v5495_v31  ;;  %v5505_v2 = vld [vmem:[#allocation63_spill] sm:$0xff]  ;;  %v5506_v31 = vld [vmem:[#allocation64_spill] sm:$0xff] }
 0x5c0   :  { %2065 = vmatprep.subr.bf16.mxu0 %v5496_v26  ;;  %2106 = vmatprep.subr.bf16.mxu1 %v5497_v35  ;;  %v5507_v26 = vld [vmem:[#allocation66_spill] sm:$0xff]  ;;  %v5508_v35 = vld [vmem:[#allocation65_spill] sm:$0xff] }
 0x5c3   :  { %2066 = vmatpush1.bf16.msra.mxu0 %v5498_v62  ;;  %2107 = vmatpush1.bf16.msra.mxu1 %v5499_v3  ;;  %v5509_v62 = vld [vmem:[#allocation67_spill] sm:$0xff]  ;;  %v5510_v3 = vld [vmem:[#allocation68_spill] sm:$0xff] }
 0x5c4   :  { %2067 = vmatprep.subr.bf16.mxu0 %v5500_v41  ;;  %2108 = vmatprep.subr.bf16.mxu1 %v5501_v57  ;;  %v5511_v41 = vld [vmem:[#allocation70_spill] sm:$0xff]  ;;  %v5512_v57 = vld [vmem:[#allocation69_spill] sm:$0xff] }
 0x5c7   :  { %2068 = vmatpush1.bf16.msra.mxu0 %v5502_v15  ;;  %2109 = vmatpush1.bf16.msra.mxu1 %v5503_v61  ;;  %v5513_v15 = vld [vmem:[#allocation71_spill] sm:$0xff]  ;;  %v5514_v61 = vld [vmem:[#allocation72_spill] sm:$0xff] }
 0x5c8   :  { %2069 = vmatprep.subr.bf16.mxu0 %v5504_v19  ;;  %2110 = vmatprep.subr.bf16.mxu1 %v5505_v2  ;;  %v5515_v19 = vld [vmem:[#allocation74_spill] sm:$0xff]  ;;  %v5516_v2 = vld [vmem:[#allocation73_spill] sm:$0xff] }
 0x5cb   :  { %2070 = vmatpush1.bf16.msra.mxu0 %v5506_v31  ;;  %2111 = vmatpush1.bf16.msra.mxu1 %v5507_v26  ;;  %v5517_v31 = vld [vmem:[#allocation75_spill] sm:$0xff]  ;;  %v5518_v26 = vld [vmem:[#allocation76_spill] sm:$0xff] }
 0x5cc   :  { %2071 = vmatprep.subr.bf16.mxu0 %v5508_v35  ;;  %2112 = vmatprep.subr.bf16.mxu1 %v5509_v62  ;;  %v5519_v35 = vld [vmem:[#allocation78_spill] sm:$0xff]  ;;  %v5520_v62 = vld [vmem:[#allocation77_spill] sm:$0xff] }
 0x5cf   :  { %2072 = vmatpush1.bf16.msra.mxu0 %v5510_v3  ;;  %2113 = vmatpush1.bf16.msra.mxu1 %v5511_v41  ;;  %v5521_v3 = vld [vmem:[#allocation79_spill] sm:$0xff] }
 0x5d0   :  { %2073 = vmatprep.subr.bf16.mxu0 %v5512_v57  ;;  %2114 = vmatprep.subr.bf16.mxu1 %v5513_v15 }
 0x5d3   :  { %2074 = vmatpush1.bf16.msra.mxu0 %v5514_v61  ;;  %2115 = vmatpush1.bf16.msra.mxu1 %v5515_v19 }
 0x5d4   :  { %2075 = vmatprep.subr.bf16.mxu0 %v5516_v2  ;;  %2116 = vmatprep.subr.bf16.mxu1 %v5517_v31  ;;  %v1800_v2 = vld [vmem:[#allocation4 + $0x80] sm:$0xff]  ;;  %v1807_v31 = vunpack.c.h.bf16 %v1801_v10  ;;  %v1803_v10 = vld [vmem:[#allocation4 + $0x98] sm:$0xff] }
 0x5d5   :  { %v1804_v0 = vunpack.c.l.bf16 %v1800_v2 }
 0x5d7   :  { %2076 = vmatpush1.bf16.msra.mxu0 %v5518_v26  ;;  %2117 = vmatpush1.bf16.msra.mxu1 %v5519_v35  ;;  %v1805_v26 = vunpack.c.h.bf16 %v1800_v2 }
 0x5d8   :  { %2127 = vmatprep.subr.bf16.mxu0 %v5520_v62  ;;  %2168 = vmatprep.subr.bf16.mxu1 %v5521_v3 }
 0x62d   :  { %v1848_v41 = vpop.f32.mrb[32].mxu0  ;;  %v1889_v57 = vpop.f32.mrb[32].mxu1 }
 0x62e   :  { %v1850_v28 = vpop.f32.mrb[33].mxu0  ;;  %v1891_v15 = vpop.f32.mrb[33].mxu1  ;;  %v1980_v29 = vadd.f32 %v1889_v57, %v1806_v27  ;;  %v1978_v33 = vadd.f32 %v1848_v41, %v1804_v0  ;;  %v1808_v27 = vunpack.c.l.bf16 %v1802_v55  ;;  %v1810_v0 = vunpack.c.l.bf16 %v1803_v10 }
 0x62f   :  { %v1852_v25 = vpop.f32.mrb[34].mxu0  ;;  %v1893_v61 = vpop.f32.mrb[34].mxu1  ;;  %v1981_v35 = vadd.f32 %v1891_v15, %v1807_v31  ;;  %v1979_v62 = vadd.f32 %v1850_v28, %v1805_v26  ;;  %v1809_v28 = vunpack.c.h.bf16 %v1802_v55 }
 0x630   :  { %v1853_v12 = vpop.f32.mrb[35].mxu0  ;;  %v1894_v19 = vpop.f32.mrb[35].mxu1  ;;  %v1988_v3 = vadd.f32 %v1980_v29, %v5227_v16  ;;  %v1986_v4 = vadd.f32 %v1978_v33, %v5229_v11  ;;  %v1811_v29 = vunpack.c.h.bf16 %v1803_v10 }
 0x631   :  { %v1989_v24 = vadd.f32 %v1981_v35, %v5228_v17  ;;  %v1987_v25 = vadd.f32 %v1979_v62, %v5230_v32 }
 0x632   :  { %v2002_v12 = vmul.f32 0.5, %v1988_v3  ;;  %v1994_v19 = vmul.f32 0.5, %v1986_v4 }
 0x633   :  { %v2003_v61 = vmul.f32 0.5, %v1989_v24  ;;  %v1995_v63 = vmul.f32 0.5, %v1987_v25 }
 0x634   :  { %2972 = vtanh.f32 %v2002_v12 }
 0x635   :  { %2974 = vtanh.f32 %v2003_v61 }
 0x636   :  { %2976 = vtanh.f32 %v1994_v19 }
 0x637   :  { %2978 = vtanh.f32 %v1995_v63 }
 0x63e   :  { %v2973_v55 = vpop.eup %2972 }
 0x63f   :  { %v2975_v19 = vpop.eup %2974 }
 0x640   :  { %v2977_v10 = vpop.eup %2976 }
 0x66d   :  { %v1930_v41 = vpop.f32.mrb[36].mxu0  ;;  %v1971_v15 = vpop.f32.mrb[36].mxu1 }
 0x66e   :  { %v1982_v2 = vadd.f32 %v1930_v41, %v1808_v27  ;;  %v1984_v33 = vadd.f32 %v1971_v15, %v1810_v0  ;;  %v1932_v31 = vpop.f32.mrb[37].mxu0  ;;  %v1973_v26 = vpop.f32.mrb[37].mxu1  ;;  %v2006_v0 = vadd.f32 1.0, %v2973_v55  ;;  %v1998_v15 = vadd.f32 1.0, %v2977_v10 }
 0x66f   :  { %v1983_v35 = vadd.f32 %v1932_v31, %v1809_v28  ;;  %v1985_v24 = vadd.f32 %v1973_v26, %v1811_v29  ;;  %v1934_v4 = vpop.f32.mrb[38].mxu0  ;;  %v1975_v62 = vpop.f32.mrb[38].mxu1  ;;  %v2007_v29 = vadd.f32 1.0, %v2975_v19 }
 0x670   :  { %v1990_v3 = vadd.f32 %v1982_v2, %v3686_v18  ;;  %v1935_v57 = vpop.f32.mrb[39].mxu0  ;;  %v1976_v25 = vpop.f32.mrb[39].mxu1  ;;  %v1992_v12 = vadd.f32 %v1984_v33, %v3690_v56  ;;  %v2008_v31 = vmul.f32 0.5, %v2006_v0  ;;  %v2000_v33 = vmul.f32 0.5, %v1998_v15 }
 0x671   :  { %v1991_v63 = vadd.f32 %v1983_v35, %v3688_v59  ;;  %v1993_v61 = vadd.f32 %v1985_v24, %v3692_v38  ;;  %v2979_v27 = vpop.eup %2978  ;;  %v2009_v26 = vmul.f32 0.5, %v2007_v29 }
 0x672   :  { %2980 = vtanh.f32 %v1990_v3  ;;  %v2012_v28 = vmul.f32 0.5, %v1992_v12  ;;  %v1999_v2 = vadd.f32 1.0, %v2979_v27  ;;  %v2020_v24 = vmul.f32 %v2008_v31, %v4148_v37  ;;  %v5523_v31 = vld [vmem:[#allocation112_spill] sm:$0xff] }
 0x673   :  { %2982 = vtanh.f32 %v1991_v63  ;;  %v2013_v41 = vmul.f32 0.5, %v1993_v61  ;;  %v2021_v57 = vmul.f32 %v2009_v26, %v4150_v40  ;;  %v5524_v26 = vld [vmem:[#allocation114_spill] sm:$0xff] }
 0x674   :  { %2984 = vtanh.f32 %v2012_v28  ;;  %v2001_v4 = vmul.f32 0.5, %v1999_v2  ;;  %v5522_v2 = vld [vmem:[#allocation111_spill] sm:$0xff] }
 0x675   :  { %2986 = vtanh.f32 %v2013_v41 }
 0x67c   :  { %v2981_v35 = vpop.eup %2980 }
 0x67d   :  { %v2983_v62 = vpop.eup %2982  ;;  %v2022_v3 = vmul.f32 %v2981_v35, %v2000_v33  ;;  %v5525_v33 = vld [vmem:[#allocation113_spill] sm:$0xff]  ;;  %v5526_v35 = vld [vmem:[#allocation115_spill] sm:$0xff] }
 0x67e   :  { %v2023_v25 = vmul.f32 %v2983_v62, %v2001_v4  ;;  %v2985_v55 = vpop.eup %2984  ;;  %v5527_v4 = vld [vmem:[#allocation116_spill] sm:$0xff]  ;;  %v5528_v62 = vld [vmem:[#allocation118_spill] sm:$0xff] }
 0x67f   :  { %v4298_v63 = vadd.f32 %v2022_v3, %v2020_v24  ;;  %v2987_v61 = vpop.eup %2986  ;;  %v2016_v19 = vadd.f32 1.0, %v2985_v55  ;;  %v5529_v24 = vld [vmem:[#allocation117_spill] sm:$0xff]  ;;  %v5530_v3 = vld [vmem:[#allocation119_spill] sm:$0xff] }
 0x680   :  { %v4300_v12 = vadd.f32 %v2023_v25, %v2021_v57  ;;  %v2017_v10 = vadd.f32 1.0, %v2987_v61  ;;  %v5531_v57 = vld [vmem:[#allocation120_spill] sm:$0xff]  ;;  %v5532_v25 = vld [vmem:[#allocation122_spill] sm:$0xff]  ;;  %v5533_v55 = vld [vmem:[#allocation121_spill] sm:$0xff] }
 0x681   :  { %2988 = vtanh.f32 %v4298_v63  ;;  %v2018_v27 = vmul.f32 0.5, %v2016_v19  ;;  %v5534_v61 = vld [vmem:[#allocation123_spill] sm:$0xff]  ;;  %v5535_v19 = vld [vmem:[#allocation124_spill] sm:$0xff] }
 0x682   :  { %2990 = vtanh.f32 %v4300_v12  ;;  %v2019_v28 = vmul.f32 0.5, %v2017_v10  ;;  %v5536_v10 = vld [vmem:[#allocation126_spill] sm:$0xff] }
 0x68b   :  { %v2989_v0 = vpop.eup %2988 }
 0x68c   :  { %v2991_v37 = vpop.eup %2990  ;;  %v2028_v29 = vmul.f32 %v2989_v0, %v2018_v27  ;;  %v5537_v27 = vld [vmem:[#allocation125_spill] sm:$0xff]  ;;  %v5538_v0 = vld [vmem:[#allocation127_spill] sm:$0xff] }
 0x68d   :  { %v2029_v41 = vmul.f32 %v2991_v37, %v2019_v28  ;;  %v5539_v28 = vld [vmem:[#allocation128_spill] sm:$0xff]  ;;  %v5540_v37 = vld [vmem:[#allocation130_spill] sm:$0xff] }
 0x68e   :  { %v4304_v15 = vpack.c.bf16 %v2028_v29, %v2028_v29  ;;  %v5541_v29 = vld [vmem:[#allocation129_spill] sm:$0xff] }
 0x68f   :  { %v2044_v40 = vpack.c.bf16 %v2029_v41, %v2029_v41  ;;  %v5542_v41 = vld [vmem:[#allocation131_spill] sm:$0xff] }
 0x691   :  { %2077 = vmatprep.mubr.bf16.mxu0 %v2044_v40  ;;  %2118 = vmatprep.mubr.bf16.mxu1 %v2044_v40 }
 0x692   :  { %2078 = vmatmul.mubr.bf16.vlgmr.msra.gmra.mrb[40].mxu0 %v4304_v15  ;;  %2119 = vmatmul.mubr.bf16.vlgmr.msra.gmra.mrb[40].mxu1 %v4304_v15 }
 0x693   :  { %2128 = vmatpush1.bf16.msra.mxu0 %v5137_v49  ;;  %2169 = vmatpush1.bf16.msra.mxu1 %v5138_v39 }
 0x694   :  { %2159 = vmatprep.mubr.bf16.mxu0 %v2044_v40  ;;  %2200 = vmatprep.mubr.bf16.mxu1 %v2044_v40  ;;  %v5543_v40 = vld [vmem:[#allocation132_spill] sm:$0xff] }
 0x695   :  { %2129 = vmatprep.subr.bf16.mxu0 %v5139_v23  ;;  %2170 = vmatprep.subr.bf16.mxu1 %v5140_v14 }
 0x697   :  { %2130 = vmatpush1.bf16.msra.mxu0 %v5141_v34  ;;  %2171 = vmatpush1.bf16.msra.mxu1 %v5142_v7 }
 0x698   :  { %2131 = vmatprep.subr.bf16.mxu0 %v5143_v6  ;;  %2172 = vmatprep.subr.bf16.mxu1 %v5144_v46 }
 0x69b   :  { %2132 = vmatpush1.bf16.msra.mxu0 %v5231_v43  ;;  %2173 = vmatpush1.bf16.msra.mxu1 %v5232_v45 }
 0x69c   :  { %2133 = vmatprep.subr.bf16.mxu0 %v5233_v44  ;;  %2174 = vmatprep.subr.bf16.mxu1 %v5234_v21 }
 0x69f   :  { %2134 = vmatpush1.bf16.msra.mxu0 %v5235_v48  ;;  %2175 = vmatpush1.bf16.msra.mxu1 %v5236_v5 }
 0x6a0   :  { %2135 = vmatprep.subr.bf16.mxu0 %v5237_v51  ;;  %2176 = vmatprep.subr.bf16.mxu1 %v5238_v9 }
 0x6a3   :  { %2136 = vmatpush1.bf16.msra.mxu0 %v5239_v52  ;;  %2177 = vmatpush1.bf16.msra.mxu1 %v5240_v53 }
 0x6a4   :  { %2137 = vmatprep.subr.bf16.mxu0 %v5241_v30  ;;  %2178 = vmatprep.subr.bf16.mxu1 %v5328_v58 }
 0x6a7   :  { %2138 = vmatpush1.bf16.msra.mxu0 %v5329_v42  ;;  %2179 = vmatpush1.bf16.msra.mxu1 %v5330_v13 }
 0x6a8   :  { %2139 = vmatprep.subr.bf16.mxu0 %v5331_v1  ;;  %2180 = vmatprep.subr.bf16.mxu1 %v5332_v47 }
 0x6ab   :  { %2140 = vmatpush1.bf16.msra.mxu0 %v5333_v60  ;;  %2181 = vmatpush1.bf16.msra.mxu1 %v5334_v22 }
 0x6ac   :  { %2141 = vmatprep.subr.bf16.mxu0 %v5249_v50  ;;  %2182 = vmatprep.subr.bf16.mxu1 %v5250_v20 }
 0x6af   :  { %2142 = vmatpush1.bf16.msra.mxu0 %v5251_v36  ;;  %2183 = vmatpush1.bf16.msra.mxu1 %v5335_v8 }
 0x6b0   :  { %2143 = vmatprep.subr.bf16.mxu0 %v5253_v54  ;;  %2184 = vmatprep.subr.bf16.mxu1 %v5522_v2  ;;  %v2033_v2 = vld [vmem:[#allocation4 + $0xb0] sm:$0xff] }
 0x6b3   :  { %2144 = vmatpush1.bf16.msra.mxu0 %v5523_v31  ;;  %2185 = vmatpush1.bf16.msra.mxu1 %v5524_v26 }
 0x6b4   :  { %2145 = vmatprep.subr.bf16.mxu0 %v5525_v33  ;;  %2186 = vmatprep.subr.bf16.mxu1 %v5526_v35 }
 0x6b7   :  { %2146 = vmatpush1.bf16.msra.mxu0 %v5527_v4  ;;  %2187 = vmatpush1.bf16.msra.mxu1 %v5528_v62 }
 0x6b8   :  { %2147 = vmatprep.subr.bf16.mxu0 %v5529_v24  ;;  %2188 = vmatprep.subr.bf16.mxu1 %v5530_v3  ;;  %v2032_v3 = vld [vmem:[#allocation4 + $0xa8] sm:$0xff] }
 0x6b9   :  { %v2037_v24 = vunpack.c.l.bf16 %v2032_v3 }
 0x6bb   :  { %2148 = vmatpush1.bf16.msra.mxu0 %v5531_v57  ;;  %2189 = vmatpush1.bf16.msra.mxu1 %v5532_v25 }
 0x6bc   :  { %2149 = vmatprep.subr.bf16.mxu0 %v5533_v55  ;;  %2190 = vmatprep.subr.bf16.mxu1 %v5534_v61  ;;  %v5544_v55 = vld [vmem:[#allocation134_spill] sm:$0xff]  ;;  %v5545_v61 = vld [vmem:[#allocation133_spill] sm:$0xff] }
 0x6bf   :  { %2150 = vmatpush1.bf16.msra.mxu0 %v5535_v19  ;;  %2191 = vmatpush1.bf16.msra.mxu1 %v5536_v10  ;;  %v5546_v19 = vld [vmem:[#allocation135_spill] sm:$0xff]  ;;  %v5547_v10 = vld [vmem:[#allocation136_spill] sm:$0xff] }
 0x6c0   :  { %2151 = vmatprep.subr.bf16.mxu0 %v5537_v27  ;;  %2192 = vmatprep.subr.bf16.mxu1 %v5538_v0  ;;  %v5548_v27 = vld [vmem:[#allocation138_spill] sm:$0xff]  ;;  %v5549_v0 = vld [vmem:[#allocation137_spill] sm:$0xff] }
 0x6c3   :  { %2152 = vmatpush1.bf16.msra.mxu0 %v5539_v28  ;;  %2193 = vmatpush1.bf16.msra.mxu1 %v5540_v37  ;;  %v5550_v28 = vld [vmem:[#allocation139_spill] sm:$0xff]  ;;  %v5551_v37 = vld [vmem:[#allocation140_spill] sm:$0xff] }
 0x6c4   :  { %2153 = vmatprep.subr.bf16.mxu0 %v5541_v29  ;;  %2194 = vmatprep.subr.bf16.mxu1 %v5542_v41  ;;  %v5552_v29 = vld [vmem:[#allocation141_spill] sm:$0xff]  ;;  %v5553_v41 = vld [vmem:[#allocation14_spill] sm:$0xff] }
 0x6c7   :  { %2154 = vmatpush1.bf16.msra.mxu0 %v5543_v40  ;;  %2195 = vmatpush1.bf16.msra.mxu1 %v5544_v55  ;;  %v5554_v40 = vld [vmem:[#allocation17_spill] sm:$0xff] }
 0x6c8   :  { %2155 = vmatprep.subr.bf16.mxu0 %v5545_v61  ;;  %2196 = vmatprep.subr.bf16.mxu1 %v5546_v19  ;;  %v5555_v19 = vld [vmem:[#allocation15_spill] sm:$0xff]  ;;  %v5564_v61 = vld [vmem:[#allocation26_spill] sm:$0xff] }
 0x6cb   :  { %2156 = vmatpush1.bf16.msra.mxu0 %v5547_v10  ;;  %2197 = vmatpush1.bf16.msra.mxu1 %v5548_v27  ;;  %v5556_v10 = vld [vmem:[#allocation18_spill] sm:$0xff]  ;;  %v5557_v27 = vld [vmem:[#allocation16_spill] sm:$0xff] }
 0x6cc   :  { %2157 = vmatprep.subr.bf16.mxu0 %v5549_v0  ;;  %2198 = vmatprep.subr.bf16.mxu1 %v5550_v28  ;;  %v5558_v0 = vld [vmem:[#allocation20_spill] sm:$0xff]  ;;  %v5559_v28 = vld [vmem:[#allocation19_spill] sm:$0xff] }
 0x6cf   :  { %2158 = vmatpush1.bf16.msra.mxu0 %v5551_v37  ;;  %2199 = vmatpush1.bf16.msra.mxu1 %v5552_v29  ;;  %v5560_v37 = vld [vmem:[#allocation22_spill] sm:$0xff]  ;;  %v5561_v29 = vld [vmem:[#allocation21_spill] sm:$0xff] }
 0x6d0   :  { %2276 = vmatprep.subr.bf16.mxu0 %v5553_v41  ;;  %2317 = vmatprep.subr.bf16.mxu1 %v5554_v40  ;;  %v5562_v41 = vld [vmem:[#allocation23_spill] sm:$0xff]  ;;  %v5563_v40 = vld [vmem:[#allocation24_spill] sm:$0xff] }
 0x6d2   :  { %2160 = vmatmul.mubr.bf16.vlgmr.msra.gmra.mrb[44].mxu0 %v4304_v15  ;;  %2201 = vmatmul.mubr.bf16.vlgmr.msra.gmra.mrb[44].mxu1 %v4304_v15  ;;  %v5565_v15 = vld [vmem:[#allocation25_spill] sm:$0xff] }
 0x6d3   :  { %2277 = vmatpush1.bf16.msra.mxu0 %v5555_v19  ;;  %2318 = vmatpush1.bf16.msra.mxu1 %v5556_v10  ;;  %v5566_v19 = vld [vmem:[#allocation27_spill] sm:$0xff]  ;;  %v5567_v10 = vld [vmem:[#allocation28_spill] sm:$0xff] }
 0x6d4   :  { %2278 = vmatprep.subr.bf16.mxu0 %v5557_v27  ;;  %2319 = vmatprep.subr.bf16.mxu1 %v5558_v0  ;;  %v5568_v27 = vld [vmem:[#allocation30_spill] sm:$0xff]  ;;  %v5569_v0 = vld [vmem:[#allocation29_spill] sm:$0xff] }
 0x6d7   :  { %2279 = vmatpush1.bf16.msra.mxu0 %v5559_v28  ;;  %2320 = vmatpush1.bf16.msra.mxu1 %v5560_v37  ;;  %v5570_v28 = vld [vmem:[#allocation31_spill] sm:$0xff]  ;;  %v5571_v37 = vld [vmem:[#allocation32_spill] sm:$0xff] }
 0x6d8   :  { %2280 = vmatprep.subr.bf16.mxu0 %v5561_v29  ;;  %2321 = vmatprep.subr.bf16.mxu1 %v5562_v41  ;;  %v5572_v29 = vld [vmem:[#allocation34_spill] sm:$0xff]  ;;  %v5573_v41 = vld [vmem:[#allocation33_spill] sm:$0xff] }
 0x6db   :  { %2281 = vmatpush1.bf16.msra.mxu0 %v5563_v40  ;;  %2322 = vmatpush1.bf16.msra.mxu1 %v5564_v61  ;;  %v5574_v40 = vld [vmem:[#allocation35_spill] sm:$0xff]  ;;  %v5575_v61 = vld [vmem:[#allocation36_spill] sm:$0xff] }
 0x6dc   :  { %2282 = vmatprep.subr.bf16.mxu0 %v5565_v15  ;;  %2323 = vmatprep.subr.bf16.mxu1 %v5566_v19  ;;  %v5576_v15 = vld [vmem:[#allocation38_spill] sm:$0xff]  ;;  %v5577_v19 = vld [vmem:[#allocation37_spill] sm:$0xff] }
 0x6df   :  { %2283 = vmatpush1.bf16.msra.mxu0 %v5567_v10  ;;  %2324 = vmatpush1.bf16.msra.mxu1 %v5568_v27  ;;  %v5578_v10 = vld [vmem:[#allocation39_spill] sm:$0xff]  ;;  %v5579_v27 = vld [vmem:[#allocation40_spill] sm:$0xff] }
 0x6e0   :  { %2284 = vmatprep.subr.bf16.mxu0 %v5569_v0  ;;  %2325 = vmatprep.subr.bf16.mxu1 %v5570_v28  ;;  %v5580_v0 = vld [vmem:[#allocation42_spill] sm:$0xff]  ;;  %v5581_v28 = vld [vmem:[#allocation41_spill] sm:$0xff] }
 0x6e3   :  { %2285 = vmatpush1.bf16.msra.mxu0 %v5571_v37  ;;  %2326 = vmatpush1.bf16.msra.mxu1 %v5572_v29  ;;  %v5582_v37 = vld [vmem:[#allocation43_spill] sm:$0xff]  ;;  %v5583_v29 = vld [vmem:[#allocation44_spill] sm:$0xff] }
 0x6e4   :  { %2286 = vmatprep.subr.bf16.mxu0 %v5573_v41  ;;  %2327 = vmatprep.subr.bf16.mxu1 %v5574_v40  ;;  %v5584_v41 = vld [vmem:[#allocation46_spill] sm:$0xff]  ;;  %v5585_v40 = vld [vmem:[#allocation45_spill] sm:$0xff] }
 0x6e7   :  { %2287 = vmatpush1.bf16.msra.mxu0 %v5575_v61  ;;  %2328 = vmatpush1.bf16.msra.mxu1 %v5576_v15  ;;  %v5586_v61 = vld [vmem:[#allocation47_spill] sm:$0xff]  ;;  %v5587_v15 = vld [vmem:[#allocation48_spill] sm:$0xff] }
 0x6e8   :  { %2288 = vmatprep.subr.bf16.mxu0 %v5577_v19  ;;  %2329 = vmatprep.subr.bf16.mxu1 %v5578_v10  ;;  %v5588_v19 = vld [vmem:[#allocation50_spill] sm:$0xff]  ;;  %v5589_v10 = vld [vmem:[#allocation49_spill] sm:$0xff] }
 0x6eb   :  { %2289 = vmatpush1.bf16.msra.mxu0 %v5579_v27  ;;  %2330 = vmatpush1.bf16.msra.mxu1 %v5580_v0  ;;  %v5590_v27 = vld [vmem:[#allocation51_spill] sm:$0xff]  ;;  %v5591_v0 = vld [vmem:[#allocation52_spill] sm:$0xff] }
 0x6ec   :  { %2290 = vmatprep.subr.bf16.mxu0 %v5581_v28  ;;  %2331 = vmatprep.subr.bf16.mxu1 %v5582_v37  ;;  %v5592_v28 = vld [vmem:[#allocation54_spill] sm:$0xff]  ;;  %v5593_v37 = vld [vmem:[#allocation53_spill] sm:$0xff] }
 0x6ef   :  { %2291 = vmatpush1.bf16.msra.mxu0 %v5583_v29  ;;  %2332 = vmatpush1.bf16.msra.mxu1 %v5584_v41  ;;  %v5594_v29 = vld [vmem:[#allocation55_spill] sm:$0xff]  ;;  %v5595_v41 = vld [vmem:[#allocation56_spill] sm:$0xff] }
 0x6f0   :  { %2292 = vmatprep.subr.bf16.mxu0 %v5585_v40  ;;  %2333 = vmatprep.subr.bf16.mxu1 %v5586_v61  ;;  %v5596_v40 = vld [vmem:[#allocation58_spill] sm:$0xff]  ;;  %v5597_v61 = vld [vmem:[#allocation57_spill] sm:$0xff] }
 0x6f3   :  { %2293 = vmatpush1.bf16.msra.mxu0 %v5587_v15  ;;  %2334 = vmatpush1.bf16.msra.mxu1 %v5588_v19  ;;  %v5598_v15 = vld [vmem:[#allocation59_spill] sm:$0xff]  ;;  %v5599_v19 = vld [vmem:[#allocation60_spill] sm:$0xff] }
 0x6f4   :  { %2294 = vmatprep.subr.bf16.mxu0 %v5589_v10  ;;  %2335 = vmatprep.subr.bf16.mxu1 %v5590_v27  ;;  %v5600_v10 = vld [vmem:[#allocation62_spill] sm:$0xff]  ;;  %v5601_v27 = vld [vmem:[#allocation61_spill] sm:$0xff] }
 0x6f7   :  { %2295 = vmatpush1.bf16.msra.mxu0 %v5591_v0  ;;  %2336 = vmatpush1.bf16.msra.mxu1 %v5592_v28  ;;  %v5602_v0 = vld [vmem:[#allocation63_spill] sm:$0xff]  ;;  %v5603_v28 = vld [vmem:[#allocation64_spill] sm:$0xff] }
 0x6f8   :  { %2296 = vmatprep.subr.bf16.mxu0 %v5593_v37  ;;  %2337 = vmatprep.subr.bf16.mxu1 %v5594_v29  ;;  %v5604_v37 = vld [vmem:[#allocation66_spill] sm:$0xff]  ;;  %v5605_v29 = vld [vmem:[#allocation65_spill] sm:$0xff] }
 0x6fb   :  { %2297 = vmatpush1.bf16.msra.mxu0 %v5595_v41  ;;  %2338 = vmatpush1.bf16.msra.mxu1 %v5596_v40  ;;  %v5606_v41 = vld [vmem:[#allocation67_spill] sm:$0xff]  ;;  %v5607_v40 = vld [vmem:[#allocation68_spill] sm:$0xff] }
 0x6fc   :  { %2298 = vmatprep.subr.bf16.mxu0 %v5597_v61  ;;  %2339 = vmatprep.subr.bf16.mxu1 %v5598_v15  ;;  %v5608_v61 = vld [vmem:[#allocation70_spill] sm:$0xff]  ;;  %v5609_v15 = vld [vmem:[#allocation69_spill] sm:$0xff] }
 0x6ff   :  { %2299 = vmatpush1.bf16.msra.mxu0 %v5599_v19  ;;  %2340 = vmatpush1.bf16.msra.mxu1 %v5600_v10  ;;  %v5610_v19 = vld [vmem:[#allocation71_spill] sm:$0xff]  ;;  %v5611_v10 = vld [vmem:[#allocation72_spill] sm:$0xff] }
 0x700   :  { %2300 = vmatprep.subr.bf16.mxu0 %v5601_v27  ;;  %2341 = vmatprep.subr.bf16.mxu1 %v5602_v0  ;;  %v5612_v27 = vld [vmem:[#allocation74_spill] sm:$0xff]  ;;  %v5613_v0 = vld [vmem:[#allocation73_spill] sm:$0xff] }
 0x703   :  { %2301 = vmatpush1.bf16.msra.mxu0 %v5603_v28  ;;  %2342 = vmatpush1.bf16.msra.mxu1 %v5604_v37  ;;  %v5614_v28 = vld [vmem:[#allocation75_spill] sm:$0xff]  ;;  %v5615_v37 = vld [vmem:[#allocation76_spill] sm:$0xff] }
 0x704   :  { %2302 = vmatprep.subr.bf16.mxu0 %v5605_v29  ;;  %2343 = vmatprep.subr.bf16.mxu1 %v5606_v41  ;;  %v5616_v29 = vld [vmem:[#allocation78_spill] sm:$0xff]  ;;  %v5617_v41 = vld [vmem:[#allocation77_spill] sm:$0xff] }
 0x707   :  { %2303 = vmatpush1.bf16.msra.mxu0 %v5607_v40  ;;  %2344 = vmatpush1.bf16.msra.mxu1 %v5608_v61  ;;  %v5618_v40 = vld [vmem:[#allocation79_spill] sm:$0xff] }
 0x708   :  { %2304 = vmatprep.subr.bf16.mxu0 %v5609_v15  ;;  %2345 = vmatprep.subr.bf16.mxu1 %v5610_v19 }
 0x70b   :  { %2305 = vmatpush1.bf16.msra.mxu0 %v5611_v10  ;;  %2346 = vmatpush1.bf16.msra.mxu1 %v5612_v27 }
 0x70c   :  { %2306 = vmatprep.subr.bf16.mxu0 %v5613_v0  ;;  %2347 = vmatprep.subr.bf16.mxu1 %v5614_v28  ;;  %v2031_v0 = vld [vmem:[#allocation4 + $0xa0] sm:$0xff]  ;;  %v2038_v28 = vunpack.c.h.bf16 %v2032_v3  ;;  %v2034_v3 = vld [vmem:[#allocation4 + $0xb8] sm:$0xff] }
 0x70d   :  { %v2035_v62 = vunpack.c.l.bf16 %v2031_v0 }
 0x70f   :  { %2307 = vmatpush1.bf16.msra.mxu0 %v5615_v37  ;;  %2348 = vmatpush1.bf16.msra.mxu1 %v5616_v29  ;;  %v2036_v37 = vunpack.c.h.bf16 %v2031_v0 }
 0x710   :  { %2358 = vmatprep.subr.bf16.mxu0 %v5617_v41  ;;  %2399 = vmatprep.subr.bf16.mxu1 %v5618_v40 }
 0x765   :  { %v2079_v61 = vpop.f32.mrb[40].mxu0  ;;  %v2120_v15 = vpop.f32.mrb[40].mxu1 }
 0x766   :  { %v2081_v55 = vpop.f32.mrb[41].mxu0  ;;  %v2122_v19 = vpop.f32.mrb[41].mxu1  ;;  %v2211_v4 = vadd.f32 %v2120_v15, %v2037_v24  ;;  %v2209_v35 = vadd.f32 %v2079_v61, %v2035_v62  ;;  %v2039_v24 = vunpack.c.l.bf16 %v2033_v2  ;;  %v2041_v62 = vunpack.c.l.bf16 %v2034_v3 }
 0x767   :  { %v2083_v25 = vpop.f32.mrb[42].mxu0  ;;  %v2124_v10 = vpop.f32.mrb[42].mxu1  ;;  %v2212_v29 = vadd.f32 %v2122_v19, %v2038_v28  ;;  %v2210_v41 = vadd.f32 %v2081_v55, %v2036_v37  ;;  %v2040_v55 = vunpack.c.h.bf16 %v2033_v2 }
 0x768   :  { %v2084_v57 = vpop.f32.mrb[43].mxu0  ;;  %v2125_v27 = vpop.f32.mrb[43].mxu1  ;;  %v2219_v40 = vadd.f32 %v2211_v4, %v5227_v16  ;;  %v2217_v26 = vadd.f32 %v2209_v35, %v5229_v11  ;;  %v2042_v4 = vunpack.c.h.bf16 %v2034_v3 }
 0x769   :  { %v2220_v33 = vadd.f32 %v2212_v29, %v5228_v17  ;;  %v2218_v25 = vadd.f32 %v2210_v41, %v5230_v32 }
 0x76a   :  { %v2233_v57 = vmul.f32 0.5, %v2219_v40  ;;  %v2225_v27 = vmul.f32 0.5, %v2217_v26 }
 0x76b   :  { %v2234_v10 = vmul.f32 0.5, %v2220_v33  ;;  %v2226_v31 = vmul.f32 0.5, %v2218_v25 }
 0x76c   :  { %2992 = vtanh.f32 %v2233_v57 }
 0x76d   :  { %2994 = vtanh.f32 %v2234_v10 }
 0x76e   :  { %2996 = vtanh.f32 %v2225_v27 }
 0x76f   :  { %2998 = vtanh.f32 %v2226_v31 }
 0x776   :  { %v2993_v2 = vpop.eup %2992 }
 0x777   :  { %v2995_v27 = vpop.eup %2994 }
 0x778   :  { %v2997_v3 = vpop.eup %2996 }
 0x7a5   :  { %v2161_v61 = vpop.f32.mrb[44].mxu0  ;;  %v2202_v19 = vpop.f32.mrb[44].mxu1 }
 0x7a6   :  { %v2213_v0 = vadd.f32 %v2161_v61, %v2039_v24  ;;  %v2215_v35 = vadd.f32 %v2202_v19, %v2041_v62  ;;  %v2163_v28 = vpop.f32.mrb[45].mxu0  ;;  %v2204_v37 = vpop.f32.mrb[45].mxu1  ;;  %v2237_v62 = vadd.f32 1.0, %v2993_v2  ;;  %v2229_v19 = vadd.f32 1.0, %v2997_v3 }
 0x7a7   :  { %v2214_v29 = vadd.f32 %v2163_v28, %v2040_v55  ;;  %v2216_v33 = vadd.f32 %v2204_v37, %v2042_v4  ;;  %v2165_v26 = vpop.f32.mrb[46].mxu0  ;;  %v2206_v41 = vpop.f32.mrb[46].mxu1  ;;  %v2238_v4 = vadd.f32 1.0, %v2995_v27 }
 0x7a8   :  { %v2221_v40 = vadd.f32 %v2213_v0, %v3686_v18  ;;  %v2166_v15 = vpop.f32.mrb[47].mxu0  ;;  %v2207_v25 = vpop.f32.mrb[47].mxu1  ;;  %v2223_v57 = vadd.f32 %v2215_v35, %v3690_v56  ;;  %v2239_v28 = vmul.f32 0.5, %v2237_v62  ;;  %v2231_v35 = vmul.f32 0.5, %v2229_v19 }
 0x7a9   :  { %v2222_v31 = vadd.f32 %v2214_v29, %v3688_v59  ;;  %v2224_v10 = vadd.f32 %v2216_v33, %v3692_v38  ;;  %v2999_v24 = vpop.eup %2998  ;;  %v2240_v37 = vmul.f32 0.5, %v2238_v4 }
 0x7aa   :  { %3000 = vtanh.f32 %v2221_v40  ;;  %v2243_v55 = vmul.f32 0.5, %v2223_v57  ;;  %v2230_v0 = vadd.f32 1.0, %v2999_v24  ;;  %v2251_v33 = vmul.f32 %v2239_v28, %v4298_v63  ;;  %v5620_v28 = vld [vmem:[#allocation112_spill] sm:$0xff] }
 0x7ab   :  { %3002 = vtanh.f32 %v2222_v31  ;;  %v2244_v61 = vmul.f32 0.5, %v2224_v10  ;;  %v2252_v15 = vmul.f32 %v2240_v37, %v4300_v12  ;;  %v5621_v37 = vld [vmem:[#allocation114_spill] sm:$0xff] }
 0x7ac   :  { %3004 = vtanh.f32 %v2243_v55  ;;  %v2232_v26 = vmul.f32 0.5, %v2230_v0  ;;  %v5619_v0 = vld [vmem:[#allocation111_spill] sm:$0xff] }
 0x7ad   :  { %3006 = vtanh.f32 %v2244_v61 }
 0x7b4   :  { %v3001_v29 = vpop.eup %3000 }
 0x7b5   :  { %v3003_v41 = vpop.eup %3002  ;;  %v2253_v40 = vmul.f32 %v3001_v29, %v2231_v35  ;;  %v5622_v35 = vld [vmem:[#allocation113_spill] sm:$0xff]  ;;  %v5623_v29 = vld [vmem:[#allocation115_spill] sm:$0xff] }
 0x7b6   :  { %v2254_v25 = vmul.f32 %v3003_v41, %v2232_v26  ;;  %v3005_v2 = vpop.eup %3004  ;;  %v5624_v26 = vld [vmem:[#allocation116_spill] sm:$0xff]  ;;  %v5625_v41 = vld [vmem:[#allocation118_spill] sm:$0xff] }
 0x7b7   :  { %v4448_v31 = vadd.f32 %v2253_v40, %v2251_v33  ;;  %v3007_v10 = vpop.eup %3006  ;;  %v2247_v27 = vadd.f32 1.0, %v3005_v2  ;;  %v5626_v33 = vld [vmem:[#allocation117_spill] sm:$0xff]  ;;  %v5627_v40 = vld [vmem:[#allocation119_spill] sm:$0xff] }
 0x7b8   :  { %v4450_v57 = vadd.f32 %v2254_v25, %v2252_v15  ;;  %v2248_v3 = vadd.f32 1.0, %v3007_v10  ;;  %v5628_v15 = vld [vmem:[#allocation120_spill] sm:$0xff]  ;;  %v5629_v25 = vld [vmem:[#allocation122_spill] sm:$0xff]  ;;  %v5630_v2 = vld [vmem:[#allocation121_spill] sm:$0xff] }
 0x7b9   :  { %3008 = vtanh.f32 %v4448_v31  ;;  %v2249_v24 = vmul.f32 0.5, %v2247_v27  ;;  %v5631_v10 = vld [vmem:[#allocation123_spill] sm:$0xff]  ;;  %v5632_v27 = vld [vmem:[#allocation124_spill] sm:$0xff] }
 0x7ba   :  { %3010 = vtanh.f32 %v4450_v57  ;;  %v2250_v55 = vmul.f32 0.5, %v2248_v3  ;;  %v5633_v3 = vld [vmem:[#allocation126_spill] sm:$0xff] }
 0x7c3   :  { %v3009_v62 = vpop.eup %3008 }
 0x7c4   :  { %v3011_v63 = vpop.eup %3010  ;;  %v2259_v4 = vmul.f32 %v3009_v62, %v2249_v24  ;;  %v5634_v24 = vld [vmem:[#allocation125_spill] sm:$0xff]  ;;  %v5635_v62 = vld [vmem:[#allocation127_spill] sm:$0xff] }
 0x7c5   :  { %v2260_v61 = vmul.f32 %v3011_v63, %v2250_v55  ;;  %v5636_v55 = vld [vmem:[#allocation128_spill] sm:$0xff]  ;;  %v5637_v63 = vld [vmem:[#allocation130_spill] sm:$0xff] }
 0x7c6   :  { %v4454_v19 = vpack.c.bf16 %v2259_v4, %v2259_v4  ;;  %v5638_v4 = vld [vmem:[#allocation129_spill] sm:$0xff] }
 0x7c7   :  { %v2275_v12 = vpack.c.bf16 %v2260_v61, %v2260_v61  ;;  %v5639_v61 = vld [vmem:[#allocation131_spill] sm:$0xff] }
 0x7c9   :  { %2308 = vmatprep.mubr.bf16.mxu0 %v2275_v12  ;;  %2349 = vmatprep.mubr.bf16.mxu1 %v2275_v12 }
 0x7ca   :  { %2309 = vmatmul.mubr.bf16.vlgmr.msra.gmra.mrb[48].mxu0 %v4454_v19  ;;  %2350 = vmatmul.mubr.bf16.vlgmr.msra.gmra.mrb[48].mxu1 %v4454_v19 }
 0x7cb   :  { %2359 = vmatpush1.bf16.msra.mxu0 %v5137_v49  ;;  %2400 = vmatpush1.bf16.msra.mxu1 %v5138_v39 }
 0x7cc   :  { %2390 = vmatprep.mubr.bf16.mxu0 %v2275_v12  ;;  %2431 = vmatprep.mubr.bf16.mxu1 %v2275_v12  ;;  %v5640_v12 = vld [vmem:[#allocation132_spill] sm:$0xff] }
 0x7cd   :  { %2360 = vmatprep.subr.bf16.mxu0 %v5139_v23  ;;  %2401 = vmatprep.subr.bf16.mxu1 %v5140_v14 }
 0x7cf   :  { %2361 = vmatpush1.bf16.msra.mxu0 %v5141_v34  ;;  %2402 = vmatpush1.bf16.msra.mxu1 %v5142_v7 }
 0x7d0   :  { %2362 = vmatprep.subr.bf16.mxu0 %v5143_v6  ;;  %2403 = vmatprep.subr.bf16.mxu1 %v5144_v46 }
 0x7d3   :  { %2363 = vmatpush1.bf16.msra.mxu0 %v5231_v43  ;;  %2404 = vmatpush1.bf16.msra.mxu1 %v5232_v45 }
 0x7d4   :  { %2364 = vmatprep.subr.bf16.mxu0 %v5233_v44  ;;  %2405 = vmatprep.subr.bf16.mxu1 %v5234_v21 }
 0x7d7   :  { %2365 = vmatpush1.bf16.msra.mxu0 %v5235_v48  ;;  %2406 = vmatpush1.bf16.msra.mxu1 %v5236_v5 }
 0x7d8   :  { %2366 = vmatprep.subr.bf16.mxu0 %v5237_v51  ;;  %2407 = vmatprep.subr.bf16.mxu1 %v5238_v9 }
 0x7db   :  { %2367 = vmatpush1.bf16.msra.mxu0 %v5239_v52  ;;  %2408 = vmatpush1.bf16.msra.mxu1 %v5240_v53 }
 0x7dc   :  { %2368 = vmatprep.subr.bf16.mxu0 %v5241_v30  ;;  %2409 = vmatprep.subr.bf16.mxu1 %v5328_v58 }
 0x7df   :  { %2369 = vmatpush1.bf16.msra.mxu0 %v5329_v42  ;;  %2410 = vmatpush1.bf16.msra.mxu1 %v5330_v13 }
 0x7e0   :  { %2370 = vmatprep.subr.bf16.mxu0 %v5331_v1  ;;  %2411 = vmatprep.subr.bf16.mxu1 %v5332_v47 }
 0x7e3   :  { %2371 = vmatpush1.bf16.msra.mxu0 %v5333_v60  ;;  %2412 = vmatpush1.bf16.msra.mxu1 %v5334_v22 }
 0x7e4   :  { %2372 = vmatprep.subr.bf16.mxu0 %v5249_v50  ;;  %2413 = vmatprep.subr.bf16.mxu1 %v5250_v20 }
 0x7e7   :  { %2373 = vmatpush1.bf16.msra.mxu0 %v5251_v36  ;;  %2414 = vmatpush1.bf16.msra.mxu1 %v5335_v8 }
 0x7e8   :  { %2374 = vmatprep.subr.bf16.mxu0 %v5253_v54  ;;  %2415 = vmatprep.subr.bf16.mxu1 %v5619_v0  ;;  %v2264_v0 = vld [vmem:[#allocation4 + $0xd0] sm:$0xff] }
 0x7eb   :  { %2375 = vmatpush1.bf16.msra.mxu0 %v5620_v28  ;;  %2416 = vmatpush1.bf16.msra.mxu1 %v5621_v37 }
 0x7ec   :  { %2376 = vmatprep.subr.bf16.mxu0 %v5622_v35  ;;  %2417 = vmatprep.subr.bf16.mxu1 %v5623_v29 }
 0x7ef   :  { %2377 = vmatpush1.bf16.msra.mxu0 %v5624_v26  ;;  %2418 = vmatpush1.bf16.msra.mxu1 %v5625_v41 }
 0x7f0   :  { %2378 = vmatprep.subr.bf16.mxu0 %v5626_v33  ;;  %2419 = vmatprep.subr.bf16.mxu1 %v5627_v40  ;;  %v2263_v40 = vld [vmem:[#allocation4 + $0xc8] sm:$0xff] }
 0x7f1   :  { %v2268_v33 = vunpack.c.l.bf16 %v2263_v40 }
 0x7f3   :  { %2379 = vmatpush1.bf16.msra.mxu0 %v5628_v15  ;;  %2420 = vmatpush1.bf16.msra.mxu1 %v5629_v25 }
 0x7f4   :  { %2380 = vmatprep.subr.bf16.mxu0 %v5630_v2  ;;  %2421 = vmatprep.subr.bf16.mxu1 %v5631_v10  ;;  %v5641_v2 = vld [vmem:[#allocation134_spill] sm:$0xff]  ;;  %v5642_v10 = vld [vmem:[#allocation133_spill] sm:$0xff] }
 0x7f7   :  { %2381 = vmatpush1.bf16.msra.mxu0 %v5632_v27  ;;  %2422 = vmatpush1.bf16.msra.mxu1 %v5633_v3  ;;  %v5643_v27 = vld [vmem:[#allocation135_spill] sm:$0xff]  ;;  %v5644_v3 = vld [vmem:[#allocation136_spill] sm:$0xff] }
 0x7f8   :  { %2382 = vmatprep.subr.bf16.mxu0 %v5634_v24  ;;  %2423 = vmatprep.subr.bf16.mxu1 %v5635_v62  ;;  %v5645_v24 = vld [vmem:[#allocation138_spill] sm:$0xff]  ;;  %v5646_v62 = vld [vmem:[#allocation137_spill] sm:$0xff] }
 0x7fb   :  { %2383 = vmatpush1.bf16.msra.mxu0 %v5636_v55  ;;  %2424 = vmatpush1.bf16.msra.mxu1 %v5637_v63  ;;  %v5647_v55 = vld [vmem:[#allocation139_spill] sm:$0xff]  ;;  %v5648_v63 = vld [vmem:[#allocation140_spill] sm:$0xff] }
 0x7fc   :  { %2384 = vmatprep.subr.bf16.mxu0 %v5638_v4  ;;  %2425 = vmatprep.subr.bf16.mxu1 %v5639_v61  ;;  %v5649_v4 = vld [vmem:[#allocation141_spill] sm:$0xff]  ;;  %v5650_v61 = vld [vmem:[#allocation14_spill] sm:$0xff] }
 0x7ff   :  { %2385 = vmatpush1.bf16.msra.mxu0 %v5640_v12  ;;  %2426 = vmatpush1.bf16.msra.mxu1 %v5641_v2  ;;  %v5651_v12 = vld [vmem:[#allocation17_spill] sm:$0xff] }
 0x800   :  { %2386 = vmatprep.subr.bf16.mxu0 %v5642_v10  ;;  %2427 = vmatprep.subr.bf16.mxu1 %v5643_v27  ;;  %v5652_v27 = vld [vmem:[#allocation15_spill] sm:$0xff]  ;;  %v5661_v10 = vld [vmem:[#allocation26_spill] sm:$0xff] }
 0x803   :  { %2387 = vmatpush1.bf16.msra.mxu0 %v5644_v3  ;;  %2428 = vmatpush1.bf16.msra.mxu1 %v5645_v24  ;;  %v5653_v3 = vld [vmem:[#allocation18_spill] sm:$0xff]  ;;  %v5654_v24 = vld [vmem:[#allocation16_spill] sm:$0xff] }
 0x804   :  { %2388 = vmatprep.subr.bf16.mxu0 %v5646_v62  ;;  %2429 = vmatprep.subr.bf16.mxu1 %v5647_v55  ;;  %v5655_v62 = vld [vmem:[#allocation20_spill] sm:$0xff]  ;;  %v5656_v55 = vld [vmem:[#allocation19_spill] sm:$0xff] }
 0x807   :  { %2389 = vmatpush1.bf16.msra.mxu0 %v5648_v63  ;;  %2430 = vmatpush1.bf16.msra.mxu1 %v5649_v4  ;;  %v5657_v63 = vld [vmem:[#allocation22_spill] sm:$0xff]  ;;  %v5658_v4 = vld [vmem:[#allocation21_spill] sm:$0xff] }
 0x808   :  { %2507 = vmatprep.subr.bf16.mxu0 %v5650_v61  ;;  %2548 = vmatprep.subr.bf16.mxu1 %v5651_v12  ;;  %v5659_v61 = vld [vmem:[#allocation23_spill] sm:$0xff]  ;;  %v5660_v12 = vld [vmem:[#allocation24_spill] sm:$0xff] }
 0x80a   :  { %2391 = vmatmul.mubr.bf16.vlgmr.msra.gmra.mrb[52].mxu0 %v4454_v19  ;;  %2432 = vmatmul.mubr.bf16.vlgmr.msra.gmra.mrb[52].mxu1 %v4454_v19  ;;  %v5662_v19 = vld [vmem:[#allocation25_spill] sm:$0xff] }
 0x80b   :  { %2508 = vmatpush1.bf16.msra.mxu0 %v5652_v27  ;;  %2549 = vmatpush1.bf16.msra.mxu1 %v5653_v3  ;;  %v5663_v27 = vld [vmem:[#allocation27_spill] sm:$0xff]  ;;  %v5664_v3 = vld [vmem:[#allocation28_spill] sm:$0xff] }
 0x80c   :  { %2509 = vmatprep.subr.bf16.mxu0 %v5654_v24  ;;  %2550 = vmatprep.subr.bf16.mxu1 %v5655_v62  ;;  %v5665_v24 = vld [vmem:[#allocation30_spill] sm:$0xff]  ;;  %v5666_v62 = vld [vmem:[#allocation29_spill] sm:$0xff] }
 0x80f   :  { %2510 = vmatpush1.bf16.msra.mxu0 %v5656_v55  ;;  %2551 = vmatpush1.bf16.msra.mxu1 %v5657_v63  ;;  %v5667_v55 = vld [vmem:[#allocation31_spill] sm:$0xff]  ;;  %v5668_v63 = vld [vmem:[#allocation32_spill] sm:$0xff] }
 0x810   :  { %2511 = vmatprep.subr.bf16.mxu0 %v5658_v4  ;;  %2552 = vmatprep.subr.bf16.mxu1 %v5659_v61  ;;  %v5669_v4 = vld [vmem:[#allocation34_spill] sm:$0xff]  ;;  %v5670_v61 = vld [vmem:[#allocation33_spill] sm:$0xff] }
 0x813   :  { %2512 = vmatpush1.bf16.msra.mxu0 %v5660_v12  ;;  %2553 = vmatpush1.bf16.msra.mxu1 %v5661_v10  ;;  %v5671_v12 = vld [vmem:[#allocation35_spill] sm:$0xff]  ;;  %v5672_v10 = vld [vmem:[#allocation36_spill] sm:$0xff] }
 0x814   :  { %2513 = vmatprep.subr.bf16.mxu0 %v5662_v19  ;;  %2554 = vmatprep.subr.bf16.mxu1 %v5663_v27  ;;  %v5673_v19 = vld [vmem:[#allocation38_spill] sm:$0xff]  ;;  %v5674_v27 = vld [vmem:[#allocation37_spill] sm:$0xff] }
 0x817   :  { %2514 = vmatpush1.bf16.msra.mxu0 %v5664_v3  ;;  %2555 = vmatpush1.bf16.msra.mxu1 %v5665_v24  ;;  %v5675_v3 = vld [vmem:[#allocation39_spill] sm:$0xff]  ;;  %v5676_v24 = vld [vmem:[#allocation40_spill] sm:$0xff] }
 0x818   :  { %2515 = vmatprep.subr.bf16.mxu0 %v5666_v62  ;;  %2556 = vmatprep.subr.bf16.mxu1 %v5667_v55  ;;  %v5677_v62 = vld [vmem:[#allocation42_spill] sm:$0xff]  ;;  %v5678_v55 = vld [vmem:[#allocation41_spill] sm:$0xff] }
 0x81b   :  { %2516 = vmatpush1.bf16.msra.mxu0 %v5668_v63  ;;  %2557 = vmatpush1.bf16.msra.mxu1 %v5669_v4  ;;  %v5679_v63 = vld [vmem:[#allocation43_spill] sm:$0xff]  ;;  %v5680_v4 = vld [vmem:[#allocation44_spill] sm:$0xff] }
 0x81c   :  { %2517 = vmatprep.subr.bf16.mxu0 %v5670_v61  ;;  %2558 = vmatprep.subr.bf16.mxu1 %v5671_v12  ;;  %v5681_v61 = vld [vmem:[#allocation46_spill] sm:$0xff]  ;;  %v5682_v12 = vld [vmem:[#allocation45_spill] sm:$0xff] }
 0x81f   :  { %2518 = vmatpush1.bf16.msra.mxu0 %v5672_v10  ;;  %2559 = vmatpush1.bf16.msra.mxu1 %v5673_v19  ;;  %v5683_v10 = vld [vmem:[#allocation47_spill] sm:$0xff]  ;;  %v5684_v19 = vld [vmem:[#allocation48_spill] sm:$0xff] }
 0x820   :  { %2519 = vmatprep.subr.bf16.mxu0 %v5674_v27  ;;  %2560 = vmatprep.subr.bf16.mxu1 %v5675_v3  ;;  %v5685_v27 = vld [vmem:[#allocation50_spill] sm:$0xff]  ;;  %v5686_v3 = vld [vmem:[#allocation49_spill] sm:$0xff] }
 0x823   :  { %2520 = vmatpush1.bf16.msra.mxu0 %v5676_v24  ;;  %2561 = vmatpush1.bf16.msra.mxu1 %v5677_v62  ;;  %v5687_v24 = vld [vmem:[#allocation51_spill] sm:$0xff]  ;;  %v5688_v62 = vld [vmem:[#allocation52_spill] sm:$0xff] }
 0x824   :  { %2521 = vmatprep.subr.bf16.mxu0 %v5678_v55  ;;  %2562 = vmatprep.subr.bf16.mxu1 %v5679_v63  ;;  %v5689_v55 = vld [vmem:[#allocation54_spill] sm:$0xff]  ;;  %v5690_v63 = vld [vmem:[#allocation53_spill] sm:$0xff] }
 0x827   :  { %2522 = vmatpush1.bf16.msra.mxu0 %v5680_v4  ;;  %2563 = vmatpush1.bf16.msra.mxu1 %v5681_v61  ;;  %v5691_v4 = vld [vmem:[#allocation55_spill] sm:$0xff]  ;;  %v5692_v61 = vld [vmem:[#allocation56_spill] sm:$0xff] }
 0x828   :  { %2523 = vmatprep.subr.bf16.mxu0 %v5682_v12  ;;  %2564 = vmatprep.subr.bf16.mxu1 %v5683_v10  ;;  %v5693_v12 = vld [vmem:[#allocation58_spill] sm:$0xff]  ;;  %v5694_v10 = vld [vmem:[#allocation57_spill] sm:$0xff] }
 0x82b   :  { %2524 = vmatpush1.bf16.msra.mxu0 %v5684_v19  ;;  %2565 = vmatpush1.bf16.msra.mxu1 %v5685_v27  ;;  %v5695_v19 = vld [vmem:[#allocation59_spill] sm:$0xff]  ;;  %v5696_v27 = vld [vmem:[#allocation60_spill] sm:$0xff] }
 0x82c   :  { %2525 = vmatprep.subr.bf16.mxu0 %v5686_v3  ;;  %2566 = vmatprep.subr.bf16.mxu1 %v5687_v24  ;;  %v5697_v3 = vld [vmem:[#allocation62_spill] sm:$0xff]  ;;  %v5698_v24 = vld [vmem:[#allocation61_spill] sm:$0xff] }
 0x82f   :  { %2526 = vmatpush1.bf16.msra.mxu0 %v5688_v62  ;;  %2567 = vmatpush1.bf16.msra.mxu1 %v5689_v55  ;;  %v5699_v62 = vld [vmem:[#allocation63_spill] sm:$0xff]  ;;  %v5700_v55 = vld [vmem:[#allocation64_spill] sm:$0xff] }
 0x830   :  { %2527 = vmatprep.subr.bf16.mxu0 %v5690_v63  ;;  %2568 = vmatprep.subr.bf16.mxu1 %v5691_v4  ;;  %v5701_v63 = vld [vmem:[#allocation66_spill] sm:$0xff]  ;;  %v5702_v4 = vld [vmem:[#allocation65_spill] sm:$0xff] }
 0x833   :  { %2528 = vmatpush1.bf16.msra.mxu0 %v5692_v61  ;;  %2569 = vmatpush1.bf16.msra.mxu1 %v5693_v12  ;;  %v5703_v61 = vld [vmem:[#allocation67_spill] sm:$0xff]  ;;  %v5704_v12 = vld [vmem:[#allocation68_spill] sm:$0xff] }
 0x834   :  { %2529 = vmatprep.subr.bf16.mxu0 %v5694_v10  ;;  %2570 = vmatprep.subr.bf16.mxu1 %v5695_v19  ;;  %v5705_v10 = vld [vmem:[#allocation70_spill] sm:$0xff]  ;;  %v5706_v19 = vld [vmem:[#allocation69_spill] sm:$0xff] }
 0x837   :  { %2530 = vmatpush1.bf16.msra.mxu0 %v5696_v27  ;;  %2571 = vmatpush1.bf16.msra.mxu1 %v5697_v3  ;;  %v5707_v27 = vld [vmem:[#allocation71_spill] sm:$0xff]  ;;  %v5708_v3 = vld [vmem:[#allocation72_spill] sm:$0xff] }
 0x838   :  { %2531 = vmatprep.subr.bf16.mxu0 %v5698_v24  ;;  %2572 = vmatprep.subr.bf16.mxu1 %v5699_v62  ;;  %v5709_v24 = vld [vmem:[#allocation74_spill] sm:$0xff]  ;;  %v5710_v62 = vld [vmem:[#allocation73_spill] sm:$0xff] }
 0x83b   :  { %2532 = vmatpush1.bf16.msra.mxu0 %v5700_v55  ;;  %2573 = vmatpush1.bf16.msra.mxu1 %v5701_v63  ;;  %v5711_v55 = vld [vmem:[#allocation75_spill] sm:$0xff]  ;;  %v5712_v63 = vld [vmem:[#allocation76_spill] sm:$0xff] }
 0x83c   :  { %2533 = vmatprep.subr.bf16.mxu0 %v5702_v4  ;;  %2574 = vmatprep.subr.bf16.mxu1 %v5703_v61  ;;  %v5713_v4 = vld [vmem:[#allocation78_spill] sm:$0xff]  ;;  %v5714_v61 = vld [vmem:[#allocation77_spill] sm:$0xff] }
 0x83f   :  { %2534 = vmatpush1.bf16.msra.mxu0 %v5704_v12  ;;  %2575 = vmatpush1.bf16.msra.mxu1 %v5705_v10  ;;  %v5715_v12 = vld [vmem:[#allocation79_spill] sm:$0xff] }
 0x840   :  { %2535 = vmatprep.subr.bf16.mxu0 %v5706_v19  ;;  %2576 = vmatprep.subr.bf16.mxu1 %v5707_v27 }
 0x843   :  { %2536 = vmatpush1.bf16.msra.mxu0 %v5708_v3  ;;  %2577 = vmatpush1.bf16.msra.mxu1 %v5709_v24 }
 0x844   :  { %2537 = vmatprep.subr.bf16.mxu0 %v5710_v62  ;;  %2578 = vmatprep.subr.bf16.mxu1 %v5711_v55  ;;  %v2262_v62 = vld [vmem:[#allocation4 + $0xc0] sm:$0xff]  ;;  %v2269_v55 = vunpack.c.h.bf16 %v2263_v40  ;;  %v2265_v40 = vld [vmem:[#allocation4 + $0xd8] sm:$0xff] }
 0x845   :  { %v2266_v41 = vunpack.c.l.bf16 %v2262_v62 }
 0x847   :  { %2538 = vmatpush1.bf16.msra.mxu0 %v5712_v63  ;;  %2579 = vmatpush1.bf16.msra.mxu1 %v5713_v4  ;;  %v2267_v63 = vunpack.c.h.bf16 %v2262_v62 }
 0x848   :  { %2589 = vmatprep.subr.bf16.mxu0 %v5714_v61  ;;  %2630 = vmatprep.subr.bf16.mxu1 %v5715_v12 }
 0x89d   :  { %v2310_v10 = vpop.f32.mrb[48].mxu0  ;;  %v2351_v19 = vpop.f32.mrb[48].mxu1 }
 0x89e   :  { %v2312_v2 = vpop.f32.mrb[49].mxu0  ;;  %v2353_v27 = vpop.f32.mrb[49].mxu1  ;;  %v2442_v26 = vadd.f32 %v2351_v19, %v2268_v33  ;;  %v2440_v29 = vadd.f32 %v2310_v10, %v2266_v41  ;;  %v2270_v33 = vunpack.c.l.bf16 %v2264_v0  ;;  %v2272_v41 = vunpack.c.l.bf16 %v2265_v40 }
 0x89f   :  { %v2314_v25 = vpop.f32.mrb[50].mxu0  ;;  %v2355_v3 = vpop.f32.mrb[50].mxu1  ;;  %v2443_v4 = vadd.f32 %v2353_v27, %v2269_v55  ;;  %v2441_v61 = vadd.f32 %v2312_v2, %v2267_v63  ;;  %v2271_v2 = vunpack.c.h.bf16 %v2264_v0 }
 0x8a0   :  { %v2315_v15 = vpop.f32.mrb[51].mxu0  ;;  %v2356_v24 = vpop.f32.mrb[51].mxu1  ;;  %v2450_v12 = vadd.f32 %v2442_v26, %v5227_v16  ;;  %v2448_v37 = vadd.f32 %v2440_v29, %v5229_v11  ;;  %v2273_v26 = vunpack.c.h.bf16 %v2265_v40 }
 0x8a1   :  { %v2451_v35 = vadd.f32 %v2443_v4, %v5228_v17  ;;  %v2449_v25 = vadd.f32 %v2441_v61, %v5230_v32 }
 0x8a2   :  { %v2464_v15 = vmul.f32 0.5, %v2450_v12  ;;  %v2456_v24 = vmul.f32 0.5, %v2448_v37 }
 0x8a3   :  { %v2465_v3 = vmul.f32 0.5, %v2451_v35  ;;  %v2457_v28 = vmul.f32 0.5, %v2449_v25 }
 0x8a4   :  { %3012 = vtanh.f32 %v2464_v15 }
 0x8a5   :  { %3014 = vtanh.f32 %v2465_v3 }
 0x8a6   :  { %3016 = vtanh.f32 %v2456_v24 }
 0x8a7   :  { %3018 = vtanh.f32 %v2457_v28 }
 0x8ae   :  { %v3013_v0 = vpop.eup %3012 }
 0x8af   :  { %v3015_v24 = vpop.eup %3014 }
 0x8b0   :  { %v3017_v40 = vpop.eup %3016 }
 0x8dd   :  { %v2392_v10 = vpop.f32.mrb[52].mxu0  ;;  %v2433_v19 = vpop.f32.mrb[52].mxu1 }
 0x8de   :  { %v2444_v27 = vadd.f32 %v2392_v10, %v2270_v33  ;;  %v2446_v29 = vadd.f32 %v2433_v19, %v2272_v41  ;;  %v2394_v62 = vpop.f32.mrb[53].mxu0  ;;  %v2435_v55 = vpop.f32.mrb[53].mxu1  ;;  %v2468_v41 = vadd.f32 1.0, %v3013_v0  ;;  %v2460_v19 = vadd.f32 1.0, %v3017_v40 }
 0x8df   :  { %v2445_v63 = vadd.f32 %v2394_v62, %v2271_v2  ;;  %v2447_v35 = vadd.f32 %v2435_v55, %v2273_v26  ;;  %v2396_v37 = vpop.f32.mrb[54].mxu0  ;;  %v2437_v4 = vpop.f32.mrb[54].mxu1  ;;  %v2469_v26 = vadd.f32 1.0, %v3015_v24 }
 0x8e0   :  { %v2452_v61 = vadd.f32 %v2444_v27, %v3686_v18  ;;  %v2397_v12 = vpop.f32.mrb[55].mxu0  ;;  %v2438_v25 = vpop.f32.mrb[55].mxu1  ;;  %v2454_v15 = vadd.f32 %v2446_v29, %v3690_v56  ;;  %v2470_v62 = vmul.f32 0.5, %v2468_v41  ;;  %v2462_v29 = vmul.f32 0.5, %v2460_v19 }
 0x8e1   :  { %v2453_v28 = vadd.f32 %v2445_v63, %v3688_v59  ;;  %v2455_v3 = vadd.f32 %v2447_v35, %v3692_v38  ;;  %v3019_v33 = vpop.eup %3018  ;;  %v2471_v55 = vmul.f32 0.5, %v2469_v26 }
 0x8e2   :  { %3020 = vtanh.f32 %v2452_v61  ;;  %v2474_v2 = vmul.f32 0.5, %v2454_v15  ;;  %v2461_v27 = vadd.f32 1.0, %v3019_v33  ;;  %v2482_v35 = vmul.f32 %v2470_v62, %v4448_v31 }
 0x8e3   :  { %3022 = vtanh.f32 %v2453_v28  ;;  %v2475_v10 = vmul.f32 0.5, %v2455_v3  ;;  %v2483_v12 = vmul.f32 %v2471_v55, %v4450_v57 }
 0x8e4   :  { %3024 = vtanh.f32 %v2474_v2  ;;  %v2463_v37 = vmul.f32 0.5, %v2461_v27 }
 0x8e5   :  { %3026 = vtanh.f32 %v2475_v10 }
 0x8ec   :  { %v3021_v63 = vpop.eup %3020 }
 0x8ed   :  { %v3023_v4 = vpop.eup %3022  ;;  %v2484_v61 = vmul.f32 %v3021_v63, %v2462_v29 }
 0x8ee   :  { %v2485_v25 = vmul.f32 %v3023_v4, %v2463_v37  ;;  %v3025_v0 = vpop.eup %3024 }
 0x8ef   :  { %v4598_v28 = vadd.f32 %v2484_v61, %v2482_v35  ;;  %v3027_v3 = vpop.eup %3026  ;;  %v2478_v24 = vadd.f32 1.0, %v3025_v0  ;;  %v2494_v61 = vld [vmem:[#allocation4 + $0xe8] sm:$0xff] }
 0x8f0   :  { %v4600_v15 = vadd.f32 %v2485_v25, %v2483_v12  ;;  %v2479_v40 = vadd.f32 1.0, %v3027_v3  ;;  %v2493_v12 = vld [vmem:[#allocation4 + $0xe0] sm:$0xff]  ;;  %v2499_v25 = vunpack.c.l.bf16 %v2494_v61  ;;  %v2500_v0 = vunpack.c.h.bf16 %v2494_v61 }
 0x8f1   :  { %3028 = vtanh.f32 %v4598_v28  ;;  %v2480_v33 = vmul.f32 0.5, %v2478_v24  ;;  %v2497_v3 = vunpack.c.l.bf16 %v2493_v12  ;;  %v2498_v24 = vunpack.c.h.bf16 %v2493_v12 }
 0x8f2   :  { %3030 = vtanh.f32 %v4600_v15  ;;  %v2481_v2 = vmul.f32 0.5, %v2479_v40 }
 0x8fb   :  { %v3029_v41 = vpop.eup %3028 }
 0x8fc   :  { %v3031_v31 = vpop.eup %3030  ;;  %v2490_v26 = vmul.f32 %v3029_v41, %v2480_v33 }
 0x8fd   :  { %v2491_v10 = vmul.f32 %v3031_v31, %v2481_v2 }
 0x8fe   :  { %v4604_v19 = vpack.c.bf16 %v2490_v26, %v2490_v26 }
 0x8ff   :  { %v2506_v57 = vpack.c.bf16 %v2491_v10, %v2491_v10 }
 0x901   :  { %2539 = vmatprep.mubr.bf16.mxu0 %v2506_v57  ;;  %2580 = vmatprep.mubr.bf16.mxu1 %v2506_v57 }
 0x902   :  { %2540 = vmatmul.mubr.bf16.vlgmr.msra.gmra.mrb[56].mxu0 %v4604_v19  ;;  %2581 = vmatmul.mubr.bf16.vlgmr.msra.gmra.mrb[56].mxu1 %v4604_v19 }
 0x903   :  { %2590 = vmatpush1.bf16.msra.mxu0 %v5137_v49  ;;  %2631 = vmatpush1.bf16.msra.mxu1 %v5138_v39  ;;  %v5716_v49 = vld [vmem:[#allocation111_spill] sm:$0xff]  ;;  %v5717_v39 = vld [vmem:[#allocation112_spill] sm:$0xff] }
 0x904   :  { %2621 = vmatprep.mubr.bf16.mxu0 %v2506_v57  ;;  %2662 = vmatprep.mubr.bf16.mxu1 %v2506_v57 }
 0x905   :  { %2591 = vmatprep.subr.bf16.mxu0 %v5139_v23  ;;  %2632 = vmatprep.subr.bf16.mxu1 %v5140_v14  ;;  %v5718_v23 = vld [vmem:[#allocation114_spill] sm:$0xff]  ;;  %v5719_v14 = vld [vmem:[#allocation113_spill] sm:$0xff] }
 0x907   :  { %2592 = vmatpush1.bf16.msra.mxu0 %v5141_v34  ;;  %2633 = vmatpush1.bf16.msra.mxu1 %v5142_v7  ;;  %v5720_v34 = vld [vmem:[#allocation115_spill] sm:$0xff]  ;;  %v5721_v7 = vld [vmem:[#allocation116_spill] sm:$0xff] }
 0x908   :  { %2593 = vmatprep.subr.bf16.mxu0 %v5143_v6  ;;  %2634 = vmatprep.subr.bf16.mxu1 %v5144_v46  ;;  %v5722_v6 = vld [vmem:[#allocation118_spill] sm:$0xff]  ;;  %v5723_v46 = vld [vmem:[#allocation117_spill] sm:$0xff] }
 0x90b   :  { %2594 = vmatpush1.bf16.msra.mxu0 %v5231_v43  ;;  %2635 = vmatpush1.bf16.msra.mxu1 %v5232_v45  ;;  %v5724_v43 = vld [vmem:[#allocation119_spill] sm:$0xff]  ;;  %v5725_v45 = vld [vmem:[#allocation120_spill] sm:$0xff] }
 0x90c   :  { %2595 = vmatprep.subr.bf16.mxu0 %v5233_v44  ;;  %2636 = vmatprep.subr.bf16.mxu1 %v5234_v21  ;;  %v5726_v44 = vld [vmem:[#allocation122_spill] sm:$0xff]  ;;  %v5727_v21 = vld [vmem:[#allocation121_spill] sm:$0xff] }
 0x90f   :  { %2596 = vmatpush1.bf16.msra.mxu0 %v5235_v48  ;;  %2637 = vmatpush1.bf16.msra.mxu1 %v5236_v5  ;;  %v5728_v48 = vld [vmem:[#allocation123_spill] sm:$0xff]  ;;  %v5729_v5 = vld [vmem:[#allocation124_spill] sm:$0xff] }
 0x910   :  { %2597 = vmatprep.subr.bf16.mxu0 %v5237_v51  ;;  %2638 = vmatprep.subr.bf16.mxu1 %v5238_v9  ;;  %v5730_v51 = vld [vmem:[#allocation126_spill] sm:$0xff]  ;;  %v5731_v9 = vld [vmem:[#allocation125_spill] sm:$0xff] }
 0x913   :  { %2598 = vmatpush1.bf16.msra.mxu0 %v5239_v52  ;;  %2639 = vmatpush1.bf16.msra.mxu1 %v5240_v53  ;;  %v5732_v52 = vld [vmem:[#allocation127_spill] sm:$0xff]  ;;  %v5733_v53 = vld [vmem:[#allocation128_spill] sm:$0xff] }
 0x914   :  { %2599 = vmatprep.subr.bf16.mxu0 %v5241_v30  ;;  %2640 = vmatprep.subr.bf16.mxu1 %v5328_v58  ;;  %v5734_v30 = vld [vmem:[#allocation130_spill] sm:$0xff]  ;;  %v5739_v58 = vld [vmem:[#allocation133_spill] sm:$0xff] }
 0x917   :  { %2600 = vmatpush1.bf16.msra.mxu0 %v5329_v42  ;;  %2641 = vmatpush1.bf16.msra.mxu1 %v5330_v13  ;;  %v5740_v42 = vld [vmem:[#allocation135_spill] sm:$0xff]  ;;  %v5741_v13 = vld [vmem:[#allocation136_spill] sm:$0xff] }
 0x918   :  { %2601 = vmatprep.subr.bf16.mxu0 %v5331_v1  ;;  %2642 = vmatprep.subr.bf16.mxu1 %v5332_v47  ;;  %v5742_v1 = vld [vmem:[#allocation138_spill] sm:$0xff]  ;;  %v5743_v47 = vld [vmem:[#allocation137_spill] sm:$0xff] }
 0x91b   :  { %2602 = vmatpush1.bf16.msra.mxu0 %v5333_v60  ;;  %2643 = vmatpush1.bf16.msra.mxu1 %v5334_v22  ;;  %v5744_v60 = vld [vmem:[#allocation139_spill] sm:$0xff]  ;;  %v5745_v22 = vld [vmem:[#allocation140_spill] sm:$0xff] }
 0x91c   :  { %2603 = vmatprep.subr.bf16.mxu0 %v5249_v50  ;;  %2644 = vmatprep.subr.bf16.mxu1 %v5250_v20  ;;  %v5736_v50 = vld [vmem:[#allocation131_spill] sm:$0xff]  ;;  %v5737_v20 = vld [vmem:[#allocation132_spill] sm:$0xff] }
 0x91f   :  { %2604 = vmatpush1.bf16.msra.mxu0 %v5251_v36  ;;  %2645 = vmatpush1.bf16.msra.mxu1 %v5335_v8  ;;  %v5738_v36 = vld [vmem:[#allocation134_spill] sm:$0xff]  ;;  %v5746_v8 = vld [vmem:[#allocation141_spill] sm:$0xff] }
 0x920   :  { %2605 = vmatprep.subr.bf16.mxu0 %v5253_v54  ;;  %2646 = vmatprep.subr.bf16.mxu1 %v5716_v49  ;;  %v5735_v54 = vld [vmem:[#allocation129_spill] sm:$0xff] }
 0x923   :  { %2606 = vmatpush1.bf16.msra.mxu0 %v5717_v39  ;;  %2647 = vmatpush1.bf16.msra.mxu1 %v5718_v23 }
 0x924   :  { %2607 = vmatprep.subr.bf16.mxu0 %v5719_v14  ;;  %2648 = vmatprep.subr.bf16.mxu1 %v5720_v34  ;;  %v2495_v14 = vld [vmem:[#allocation4 + $0xf0] sm:$0xff]  ;;  %v2496_v34 = vld [vmem:[#allocation4 + $0xf8] sm:$0xff] }
 0x927   :  { %2608 = vmatpush1.bf16.msra.mxu0 %v5721_v7  ;;  %2649 = vmatpush1.bf16.msra.mxu1 %v5722_v6  ;;  %v2501_v7 = vunpack.c.l.bf16 %v2495_v14  ;;  %v2503_v6 = vunpack.c.l.bf16 %v2496_v34 }
 0x928   :  { %2609 = vmatprep.subr.bf16.mxu0 %v5723_v46  ;;  %2650 = vmatprep.subr.bf16.mxu1 %v5724_v43  ;;  %v2502_v46 = vunpack.c.h.bf16 %v2495_v14 }
 0x92b   :  { %2610 = vmatpush1.bf16.msra.mxu0 %v5725_v45  ;;  %2651 = vmatpush1.bf16.msra.mxu1 %v5726_v44 }
 0x92c   :  { %2611 = vmatprep.subr.bf16.mxu0 %v5727_v21  ;;  %2652 = vmatprep.subr.bf16.mxu1 %v5728_v48 }
 0x92f   :  { %2612 = vmatpush1.bf16.msra.mxu0 %v5729_v5  ;;  %2653 = vmatpush1.bf16.msra.mxu1 %v5730_v51 }
 0x930   :  { %2613 = vmatprep.subr.bf16.mxu0 %v5731_v9  ;;  %2654 = vmatprep.subr.bf16.mxu1 %v5732_v52 }
 0x933   :  { %2614 = vmatpush1.bf16.msra.mxu0 %v5733_v53  ;;  %2655 = vmatpush1.bf16.msra.mxu1 %v5734_v30 }
 0x934   :  { %2615 = vmatprep.subr.bf16.mxu0 %v5735_v54  ;;  %2656 = vmatprep.subr.bf16.mxu1 %v5736_v50 }
 0x937   :  { %2616 = vmatpush1.bf16.msra.mxu0 %v5737_v20  ;;  %2657 = vmatpush1.bf16.msra.mxu1 %v5738_v36 }
 0x938   :  { %2617 = vmatprep.subr.bf16.mxu0 %v5739_v58  ;;  %2658 = vmatprep.subr.bf16.mxu1 %v5740_v42 }
 0x93b   :  { %2618 = vmatpush1.bf16.msra.mxu0 %v5741_v13  ;;  %2659 = vmatpush1.bf16.msra.mxu1 %v5742_v1 }
 0x93c   :  { %2619 = vmatprep.subr.bf16.mxu0 %v5743_v47  ;;  %2660 = vmatprep.subr.bf16.mxu1 %v5744_v60 }
 0x93f   :  { %2620 = vmatpush1.bf16.msra.mxu0 %v5745_v22  ;;  %2661 = vmatpush1.bf16.msra.mxu1 %v5746_v8 }
 0x942   :  { %2622 = vmatmul.mubr.bf16.vlgmr.msra.gmra.mrb[60].mxu0 %v4604_v19  ;;  %2663 = vmatmul.mubr.bf16.vlgmr.msra.gmra.mrb[60].mxu1 %v4604_v19 }
 0x9d5   :  { %v2541_v27 = vpop.f32.mrb[56].mxu0  ;;  %v2582_v62 = vpop.f32.mrb[56].mxu1 }
 0x9d6   :  { %v2543_v55 = vpop.f32.mrb[57].mxu0  ;;  %v2584_v29 = vpop.f32.mrb[57].mxu1  ;;  %v2673_v40 = vadd.f32 %v2582_v62, %v2499_v25  ;;  %v2671_v41 = vadd.f32 %v2541_v27, %v2497_v3 }
 0x9d7   :  { %v2545_v63 = vpop.f32.mrb[58].mxu0  ;;  %v2586_v37 = vpop.f32.mrb[58].mxu1  ;;  %v2674_v33 = vadd.f32 %v2584_v29, %v2500_v0  ;;  %v2672_v2 = vadd.f32 %v2543_v55, %v2498_v24 }
 0x9d8   :  { %v2546_v4 = vpop.f32.mrb[59].mxu0  ;;  %v2587_v35 = vpop.f32.mrb[59].mxu1  ;;  %v2681_v31 = vadd.f32 %v2673_v40, %v5227_v16  ;;  %v2679_v10 = vadd.f32 %v2671_v41, %v5229_v11  ;;  %v2504_v16 = vunpack.c.h.bf16 %v2496_v34 }
 0x9d9   :  { %v2682_v26 = vadd.f32 %v2674_v33, %v5228_v17  ;;  %v2680_v57 = vadd.f32 %v2672_v2, %v5230_v32 }
 0x9da   :  { %v2695_v19 = vmul.f32 0.5, %v2681_v31  ;;  %v2687_v39 = vmul.f32 0.5, %v2679_v10 }
 0x9db   :  { %v2696_v49 = vmul.f32 0.5, %v2682_v26  ;;  %v2688_v23 = vmul.f32 0.5, %v2680_v57 }
 0x9dc   :  { %3032 = vtanh.f32 %v2695_v19 }
 0x9dd   :  { %3034 = vtanh.f32 %v2696_v49 }
 0x9de   :  { %3036 = vtanh.f32 %v2687_v39 }
 0x9df   :  { %3038 = vtanh.f32 %v2688_v23 }
 0x9e6   :  { %v3033_v50 = vpop.eup %3032 }
 0x9e7   :  { %v3035_v36 = vpop.eup %3034  ;;  %v2699_v13 = vadd.f32 1.0, %v3033_v50 }
 0x9e8   :  { %v3037_v58 = vpop.eup %3036  ;;  %v2700_v47 = vadd.f32 1.0, %v3035_v36 }
 0x9e9   :  { %v3039_v42 = vpop.eup %3038  ;;  %v2691_v22 = vadd.f32 1.0, %v3037_v58  ;;  %v2701_v8 = vmul.f32 0.5, %v2699_v13 }
 0x9ea   :  { %v2702_v27 = vmul.f32 0.5, %v2700_v47 }
 0x9ec   :  { %v2714_v63 = vmul.f32 %v2702_v27, %v4600_v15 }
 0xa15   :  { %v2623_v43 = vpop.f32.mrb[60].mxu0  ;;  %v2664_v17 = vpop.f32.mrb[60].mxu1 }
 0xa16   :  { %v2675_v45 = vadd.f32 %v2623_v43, %v2501_v7  ;;  %v2677_v11 = vadd.f32 %v2664_v17, %v2503_v6  ;;  %v2625_v44 = vpop.f32.mrb[61].mxu0  ;;  %v2666_v32 = vpop.f32.mrb[61].mxu1 }
 0xa17   :  { %v2676_v21 = vadd.f32 %v2625_v44, %v2502_v46  ;;  %v2678_v48 = vadd.f32 %v2666_v32, %v2504_v16  ;;  %v2627_v5 = vpop.f32.mrb[62].mxu0  ;;  %v2668_v51 = vpop.f32.mrb[62].mxu1 }
 0xa18   :  { %v2683_v9 = vadd.f32 %v2675_v45, %v3686_v18  ;;  %v2628_v52 = vpop.f32.mrb[63].mxu0  ;;  %v2669_v53 = vpop.f32.mrb[63].mxu1  ;;  %v2685_v30 = vadd.f32 %v2677_v11, %v3690_v56  ;;  %v2692_v18 = vadd.f32 1.0, %v3039_v42  ;;  %v2693_v56 = vmul.f32 0.5, %v2691_v22 }
 0xa19   :  { %v2684_v54 = vadd.f32 %v2676_v21, %v3688_v59  ;;  %v2686_v20 = vadd.f32 %v2678_v48, %v3692_v38  ;;  %v2713_v38 = vmul.f32 %v2701_v8, %v4598_v28 }
 0xa1a   :  { %3040 = vtanh.f32 %v2683_v9  ;;  %v2705_v1 = vmul.f32 0.5, %v2685_v30  ;;  %v2694_v62 = vmul.f32 0.5, %v2692_v18 }
 0xa1b   :  { %3042 = vtanh.f32 %v2684_v54  ;;  %v2706_v60 = vmul.f32 0.5, %v2686_v20 }
 0xa1c   :  { %3044 = vtanh.f32 %v2705_v1 }
 0xa1d   :  { %3046 = vtanh.f32 %v2706_v60 }
 0xa24   :  { %v3041_v59 = vpop.eup %3040 }
 0xa25   :  { %v3043_v55 = vpop.eup %3042  ;;  %v2715_v29 = vmul.f32 %v3041_v59, %v2693_v56 }
 0xa26   :  { %v2716_v37 = vmul.f32 %v3043_v55, %v2694_v62  ;;  %v3045_v61 = vpop.eup %3044 }
 0xa27   :  { %v2717_v4 = vadd.f32 %v2715_v29, %v2713_v38  ;;  %v3047_v12 = vpop.eup %3046  ;;  %v2709_v25 = vadd.f32 1.0, %v3045_v61 }
 0xa28   :  { %v2718_v35 = vadd.f32 %v2716_v37, %v2714_v63  ;;  %v2710_v0 = vadd.f32 1.0, %v3047_v12 }
 0xa29   :  { %3048 = vtanh.f32 %v2717_v4  ;;  %v2711_v3 = vmul.f32 0.5, %v2709_v25 }
 0xa2a   :  { %3050 = vtanh.f32 %v2718_v35  ;;  %v2712_v40 = vmul.f32 0.5, %v2710_v0 }
 0xa33   :  { %v3049_v24 = vpop.eup %3048 }
 0xa34   :  { %v3051_v33 = vpop.eup %3050  ;;  %v2721_v41 = vmul.f32 %v3049_v24, %v2711_v3 }
 0xa35   :  { %v2722_v28 = vmul.f32 %v3051_v33, %v2712_v40 }
 0xa37   :  { %v2884_v2 = vpack.c.bf16 %v2722_v28, %v2721_v41 }
 0xa39   :  { %2738 = vst [vmem:[#allocation10] sm:$0xff] %v2884_v2 }
 0xa3a   :  { %3129 = shalt.err (!%p3126_p0)
}
 0xa3b   :  { %s3130_s25 = scalar_lea.hbm %s4697_s3, 128 }
 0xa3c   :  { %p3131_p1 = scmp.ne.s32.totalorder %s4697_s3, %s3130_s25  ;;  %p3134_p2 = scmp.lt.u32.totalorder %s3130_s25, %s4697_s3 }
 0xa3e   :  { %p3136_p3 = pnand %p3134_p2, %p3131_p1 }
 0xa40   :  { %3139 = shalt.err (!%p3136_p3)
}
 0xa41   :  { %2748 = dma.vmem_to_hbm [thread:$0]  %s2746_s21, 128, %s4697_s3, [#allocation6]  }
 0xa42   :  { %3144 = dma.done.wait [#allocation6], 128  }
 0xa43   :  { %3145 = vsyncadd [#allocation6], 4294967168 }
 0xa44   :  { %2752 = vsyncpa [#allocation5], 1 }
 0xa45   :  { %2753 = vsyncpa [#allocation8], 1 }
 0xa46   :  { %2754 = vsyncpa [#allocation6], 1 }

</bundles_post_ra>
